<compile_context>
chip_gen: v6e
topology: v6e:2x2x1
jax: 0.10.0
libtpu: 0.0.40
codegen_flags: <defaults>
</compile_context>

<pallas_src>
import functools

import numpy as np
import jax
import jax.numpy as jnp
from jax.experimental import pallas as pl
from jax.experimental.pallas import tpu as pltpu

H, W = 28, 28          # spatial size implied by fc1 (16*7*7 features)
HP = 32                # rows per image after zero-padding (8-aligned, inter-image margin)
TB = 8                 # images per grid step -> M = TB*HP = 256 rows per matmul


# ------------------------------ in-kernel helpers ----------------------------

def _shift_up(a, k):
    """b[r] = a[r + k]; zero fill at the bottom (SAME padding below)."""
    return jnp.concatenate([a[k:, :], jnp.zeros((k, a.shape[1]), a.dtype)], axis=0)


def _shift_down(a, k):
    """b[r] = a[r - k]; zero fill at the top (SAME padding above)."""
    return jnp.concatenate([jnp.zeros((k, a.shape[1]), a.dtype), a[:-k, :]], axis=0)


# --------------------------------- the kernel --------------------------------

def _fused_cnn_kernel(x_ref, b1_ref, bias1_ref, b2_ref, bias2_ref,
                      wfc_ref, bfc_ref, out_ref, p2_ref):
    tb = out_ref.shape[0]
    x = x_ref[...]                                            # (tb*32, 84) bf16

    # conv1 + ReLU: single MXU matmul; the 3 y-taps are stacked along K by the wrapper.
    acc1 = jnp.dot(x, b1_ref[...], preferred_element_type=jnp.float32)
    a1 = jnp.maximum(acc1 + bias1_ref[...], 0.0)              # (R, 256) f32

    # maxpool #1: x-pairs live in the two 128-lane halves (baked into B1 columns);
    # y-pairs via a row shift.  Zero the 4 pad rows per image so conv2's +/-2 row
    # shifts see SAME-padding zeros at image boundaries.
    q1 = jnp.maximum(a1[:, :128], a1[:, 128:])
    p1 = jnp.maximum(q1, _shift_up(q1, 1))                    # valid at even rows
    rid = jax.lax.broadcasted_iota(jnp.int32, p1.shape, 0)
    p1 = jnp.where(rid % HP < H, p1, 0.0).astype(jnp.bfloat16)   # (R, 128) bf16

    # conv2 + ReLU: 3 Toeplitz taps; pooled rows sit at even rows -> y shifts of +/-2.
    acc2 = jnp.dot(p1, b2_ref[1], preferred_element_type=jnp.float32)
    acc2 = acc2 + jnp.dot(_shift_down(p1, 2), b2_ref[0],
                          preferred_element_type=jnp.float32)
    acc2 = acc2 + jnp.dot(_shift_up(p1, 2), b2_ref[2],
                          preferred_element_type=jnp.float32)
    a2 = jnp.maximum(acc2 + bias2_ref[...], 0.0)              # (R, 256) f32

    # maxpool #2 (same trick); valid outputs at rows 4*zo per image, lanes [0,112).
    q2 = jnp.maximum(a2[:, :128], a2[:, 128:])
    p2_ref[...] = jnp.maximum(q2, _shift_up(q2, 2))           # f32 scratch

    # fc1: accumulate 7 small matmuls; a strided read grabs pooled row zo of every image.
    acc = jnp.zeros((tb, bfc_ref.shape[1]), jnp.float32)
    for zo in range(wfc_ref.shape[0]):
        rows = p2_ref[pl.ds(4 * zo, tb, stride=HP), :].astype(jnp.bfloat16)  # (tb, 128)
        acc = acc + jnp.dot(rows, wfc_ref[zo], preferred_element_type=jnp.float32)
    out_ref[...] = acc + bfc_ref[...]                         # lane-dense (tb, 128) store


# --------------------------- one-time weight-table prep -----------------------

def build_tables(params, dtype=jnp.bfloat16):
    """Precompute Toeplitz conv matrices, lane-tiled biases and FC chunks (runs once)."""
    w1, b1, w2, b2, fc_w, fc_b = (np.asarray(p) for p in params)
    kH, kW, Cin, C1 = w1.shape                 # (3, 3, 1, 8)
    _, _, _, C2 = w2.shape                     # (3, 3, 8, 16)
    W1, W2 = W // 2, W // 4                    # 14, 7
    ncls = fc_b.shape[0]
    NC = 128                                   # classes padded to a full lane tile

    # conv output lane layouts: even-x columns -> lanes [0,128), odd-x -> [128,256)
    def lane1(x, c):
        return (x % 2) * 128 + (x // 2) * C1 + c

    def lane2(x2, c):
        return (x2 % 2) * 128 + (x2 // 2) * C2 + c

    # conv1: stacked Toeplitz (3*W*Cin, 256); row block dy matches the wrapper's
    # y-shifted input copy for tap dy.
    B1s = np.zeros((kH * W * Cin, 256), np.float32)
    for dy in range(kH):
        for xo in range(W):
            for c in range(C1):
                col = lane1(xo, c)
                for kx in range(kW):
                    xi = xo + kx - 1
                    if 0 <= xi < W:
                        B1s[dy * W * Cin + xi * Cin, col] = w1[dy, kx, 0, c]
    bias1 = np.zeros((1, 256), np.float32)
    for xo in range(W):
        for c in range(C1):
            bias1[0, lane1(xo, c)] = b1[c]

    # conv2: per-tap Toeplitz (3, 128, 256); input lanes are pooled-1 layout x1*C1+c1.
    B2 = np.zeros((kH, 128, 256), np.float32)
    for dy in range(kH):
        for x2 in range(W1):
            for c2 in range(C2):
                col = lane2(x2, c2)
                for kx in range(kW):
                    x1 = x2 + kx - 1
                    if 0 <= x1 < W1:
                        for c1 in range(C1):
                            B2[dy, x1 * C1 + c1, col] = w2[dy, kx, c1, c2]
    bias2 = np.zeros((1, 256), np.float32)
    for x2 in range(W1):
        for c2 in range(C2):
            bias2[0, lane2(x2, c2)] = b2[c2]

    # fc1: per-pooled-row chunks (7, 128, 128); torch flatten order is (c2, zo, xo).
    Wfc = np.zeros((W2, 128, NC), np.float32)
    for zo in range(W2):
        for xo in range(W2):
            for c2 in range(C2):
                Wfc[zo, xo * C2 + c2, :ncls] = fc_w[:, c2 * (W2 * W2) + zo * W2 + xo]
    bfc = np.zeros((1, NC), np.float32)
    bfc[0, :ncls] = fc_b

    return (jnp.asarray(B1s, dtype), jnp.asarray(bias1),
            jnp.asarray(B2, dtype), jnp.asarray(bias2),
            jnp.asarray(Wfc, dtype), jnp.asarray(bfc))


# ----------------------------------- wrapper ----------------------------------

def cnn_forward(x_nchw, tables, ncls=10):
    """Forward of the PyTorch CNN; x_nchw: (N, 1, 28, 28)."""
    B1s, bias1, B2, bias2, Wfc, bfc = tables
    N, Cin, Himg, Wimg = x_nchw.shape
    assert (Himg, Wimg, Cin) == (H, W, 1)
    nb = pl.cdiv(N, TB) * TB
    ncls_pad = bfc.shape[1]

    x = x_nchw.reshape(N, H, W).astype(jnp.float32)
    # SAME-padding y-shifted copies for the 3 conv1 taps, stacked along lanes (K=84).
    xm = jnp.pad(x, ((0, 0), (1, 0), (0, 0)))[:, :H, :]     # row y holds image row y-1
    xp = jnp.pad(x, ((0, 0), (0, 1), (0, 0)))[:, 1:, :]     # row y holds image row y+1
    xs = jnp.concatenate([xm, x, xp], axis=2)               # (N, 28, 84)
    # pad each image to 32 rows (sublane alignment + zero margin) and pad the batch.
    xs = jnp.pad(xs, ((0, nb - N), (0, HP - H), (0, 0))).astype(jnp.bfloat16)
    xs = xs.reshape(nb * HP, 3 * W)

    out = pl.pallas_call(
        _fused_cnn_kernel,
        out_shape=jax.ShapeDtypeStruct((nb, ncls_pad), jnp.float32),
        grid=(nb // TB,),
        in_specs=[
            pl.BlockSpec((TB * HP, 3 * W), lambda n: (n, 0)),
            pl.BlockSpec(B1s.shape, lambda n: (0, 0)),
            pl.BlockSpec(bias1.shape, lambda n: (0, 0)),
            pl.BlockSpec(B2.shape, lambda n: (0, 0, 0)),
            pl.BlockSpec(bias2.shape, lambda n: (0, 0)),
            pl.BlockSpec(Wfc.shape, lambda n: (0, 0, 0)),
            pl.BlockSpec(bfc.shape, lambda n: (0, 0)),
        ],
        out_specs=pl.BlockSpec((TB, ncls_pad), lambda n: (n, 0)),
        scratch_shapes=[pltpu.VMEM((TB * HP, 128), jnp.float32)],
        compiler_params=pltpu.CompilerParams(dimension_semantics=("parallel",)),
    )(xs, B1s, bias1, B2, bias2, Wfc, bfc)
    return out[:N, :ncls]


# ------------------------------ pure-JAX reference ----------------------------

def reference_forward(x_nchw, params):
    w1, b1, w2, b2, fc_w, fc_b = params
    dn = ('NHWC', 'HWIO', 'NHWC')
    hp = jax.lax.Precision.HIGHEST
    x = jnp.transpose(x_nchw, (0, 2, 3, 1))
    y = jax.lax.conv_general_dilated(x, w1, (1, 1), 'SAME', dimension_numbers=dn, precision=hp)
    y = jnp.maximum(y + b1, 0.0)
    y = jax.lax.reduce_window(y, -jnp.inf, jax.lax.max, (1, 2, 2, 1), (1, 2, 2, 1), 'VALID')
    y = jax.lax.conv_general_dilated(y, w2, (1, 1), 'SAME', dimension_numbers=dn, precision=hp)
    y = jnp.maximum(y + b2, 0.0)
    y = jax.lax.reduce_window(y, -jnp.inf, jax.lax.max, (1, 2, 2, 1), (1, 2, 2, 1), 'VALID')
    feat = jnp.transpose(y, (0, 3, 1, 2)).reshape(y.shape[0], -1)   # torch (C,H,W) flatten
    return jnp.dot(feat, fc_w.T, precision=hp) + fc_b


# ----------------------------------- main -------------------------------------

if __name__ == "__main__":
    in_channels, class_num = 1, 10
    N = 16   # two grid steps of 8 images (keeps both v7x TensorCores busy)

    key = jax.random.PRNGKey(0)
    ks = jax.random.split(key, 7)
    w1 = jax.random.normal(ks[0], (3, 3, in_channels, 8), jnp.float32) * 0.1     # HWIO
    b1 = jax.random.normal(ks[1], (8,), jnp.float32) * 0.1
    w2 = jax.random.normal(ks[2], (3, 3, 8, 16), jnp.float32) * 0.1              # HWIO
    b2 = jax.random.normal(ks[3], (16,), jnp.float32) * 0.1
    fc_w = jax.random.normal(ks[4], (class_num, 16 * 7 * 7), jnp.float32) * 0.05  # torch layout
    fc_b = jax.random.normal(ks[5], (class_num,), jnp.float32) * 0.05
    x = jax.random.normal(ks[6], (N, in_channels, H, W), jnp.float32)            # NCHW input

    params = (w1, b1, w2, b2, fc_w, fc_b)
    tables = build_tables(params)                      # hoisted out of the jitted forward
    fwd = jax.jit(functools.partial(cnn_forward, tables=tables, ncls=class_num))

    out = jax.block_until_ready(fwd(x))

    ref = reference_forward(x, params)
    assert out.shape == (N, class_num), out.shape
    max_err = float(jnp.max(jnp.abs(out - ref)))
    assert jnp.allclose(out, ref, rtol=2e-2, atol=2e-2), max_err

    print("KERNEL_OK")
</pallas_src>

<mosaic_0001>
module attributes {stable_mosaic.version = 11 : i64} {
  func.func @_fused_cnn_kernel(%arg0: i32, %arg1: memref<256x84xbf16, #tpu.memory_space<vmem>>, %arg2: memref<84x256xbf16, #tpu.memory_space<vmem>>, %arg3: memref<1x256xf32, #tpu.memory_space<vmem>>, %arg4: memref<3x128x256xbf16, #tpu.memory_space<vmem>>, %arg5: memref<1x256xf32, #tpu.memory_space<vmem>>, %arg6: memref<7x128x128xbf16, #tpu.memory_space<vmem>>, %arg7: memref<1x128xf32, #tpu.memory_space<vmem>>, %arg8: memref<8x128xf32, #tpu.memory_space<vmem>>, %arg9: memref<256x128xf32, #tpu.memory_space<vmem>>) attributes {dimension_semantics = [#tpu.dimension_semantics<parallel>], iteration_bounds = array<i64: 2>, scalar_prefetch = 0 : i64, scratch_operands = 1 : i64, tpu.core_type = #tpu.core_type<tc>, window_params = [{transform_indices = @transform_0, window_bounds = array<i64: 256, 84>}, {pipeline_mode = #tpu.pipeline_mode<synchronous>, transform_indices = @transform_1, window_bounds = array<i64: 84, 256>}, {pipeline_mode = #tpu.pipeline_mode<synchronous>, transform_indices = @transform_2, window_bounds = array<i64: 1, 256>}, {pipeline_mode = #tpu.pipeline_mode<synchronous>, transform_indices = @transform_3, window_bounds = array<i64: 3, 128, 256>}, {pipeline_mode = #tpu.pipeline_mode<synchronous>, transform_indices = @transform_4, window_bounds = array<i64: 1, 256>}, {pipeline_mode = #tpu.pipeline_mode<synchronous>, transform_indices = @transform_5, window_bounds = array<i64: 7, 128, 128>}, {pipeline_mode = #tpu.pipeline_mode<synchronous>, transform_indices = @transform_6, window_bounds = array<i64: 1, 128>}, {transform_indices = @transform_7, window_bounds = array<i64: 8, 128>}]} {
    %c0 = arith.constant 0 : index
    %c0_0 = arith.constant 0 : index
    %0 = vector.load %arg1[%c0, %c0_0] : memref<256x84xbf16, #tpu.memory_space<vmem>>, vector<256x84xbf16>
    %c0_1 = arith.constant 0 : index
    %c0_2 = arith.constant 0 : index
    %1 = vector.load %arg2[%c0_1, %c0_2] : memref<84x256xbf16, #tpu.memory_space<vmem>>, vector<84x256xbf16>
    %cst = arith.constant dense<0.000000e+00> : vector<256x256xf32>
    %2 = tpu.matmul %0, %1, %cst {dimension_numbers = #tpu.dot_dimension_numbers<[1], [0], [0], [1], [0, 0, 1, 1], [], []>} : vector<256x84xbf16>, vector<84x256xbf16>, vector<256x256xf32> -> vector<256x256xf32>
    %c0_3 = arith.constant 0 : index
    %c0_4 = arith.constant 0 : index
    %3 = vector.load %arg3[%c0_3, %c0_4] : memref<1x256xf32, #tpu.memory_space<vmem>>, vector<1x256xf32>
    %4 = vector.broadcast %3 : vector<1x256xf32> to vector<256x256xf32>
    %5 = arith.addf %2, %4 : vector<256x256xf32>
    %cst_5 = arith.constant 0.000000e+00 : f32
    %6 = vector.broadcast %cst_5 : f32 to vector<256x256xf32>
    %7 = arith.maximumf %5, %6 : vector<256x256xf32>
    %8 = vector.extract_strided_slice %7 {offsets = [0, 0], sizes = [256, 128], strides = [1, 1]} : vector<256x256xf32> to vector<256x128xf32>
    %9 = vector.extract_strided_slice %7 {offsets = [0, 128], sizes = [256, 128], strides = [1, 1]} : vector<256x256xf32> to vector<256x128xf32>
    %10 = arith.maximumf %8, %9 : vector<256x128xf32>
    %11 = vector.extract_strided_slice %10 {offsets = [1, 0], sizes = [255, 128], strides = [1, 1]} : vector<256x128xf32> to vector<255x128xf32>
    %cst_6 = arith.constant 0.000000e+00 : f32
    %12 = vector.broadcast %cst_6 : f32 to vector<1x128xf32>
    %13 = tpu.concatenate %11, %12 in 0 : vector<255x128xf32>, vector<1x128xf32> -> vector<256x128xf32>
    %14 = arith.maximumf %10, %13 : vector<256x128xf32>
    %15 = tpu.iota {dimensions = array<i32: 0>} : vector<256x128xi32>
    %c32_i32 = arith.constant 32 : i32
    %c0_i32 = arith.constant 0 : i32
    %16 = arith.cmpi eq, %c32_i32, %c0_i32 : i32
    %c1_i32 = arith.constant 1 : i32
    %17 = arith.select %16, %c1_i32, %c32_i32 : i32
    %18 = vector.broadcast %17 : i32 to vector<256x128xi32>
    %19 = arith.remsi %15, %18 : vector<256x128xi32>
    %c0_i32_7 = arith.constant 0 : i32
    %20 = vector.broadcast %c0_i32_7 : i32 to vector<256x128xi32>
    %21 = arith.cmpi ne, %19, %20 : vector<256x128xi32>
    %c0_i32_8 = arith.constant 0 : i32
    %22 = vector.broadcast %c0_i32_8 : i32 to vector<256x128xi32>
    %23 = arith.cmpi slt, %19, %22 : vector<256x128xi32>
    %c0_i32_9 = arith.constant 0 : i32
    %24 = arith.cmpi slt, %17, %c0_i32_9 : i32
    %25 = vector.broadcast %24 : i1 to vector<256x128xi1>
    %26 = vector.broadcast %25 : vector<256x128xi1> to vector<256x128xi1>
    %27 = arith.xori %23, %26 : vector<256x128xi1>
    %28 = arith.andi %27, %21 : vector<256x128xi1>
    %29 = vector.broadcast %17 : i32 to vector<256x128xi32>
    %30 = arith.addi %19, %29 : vector<256x128xi32>
    %31 = arith.select %28, %30, %19 : vector<256x128xi1>, vector<256x128xi32>
    %c28_i32 = arith.constant 28 : i32
    %32 = vector.broadcast %c28_i32 : i32 to vector<256x128xi32>
    %33 = arith.cmpi slt, %31, %32 : vector<256x128xi32>
    %cst_10 = arith.constant 0.000000e+00 : f32
    %34 = vector.broadcast %cst_10 : f32 to vector<256x128xf32>
    %35 = arith.select %33, %14, %34 : vector<256x128xi1>, vector<256x128xf32>
    %36 = arith.truncf %35 : vector<256x128xf32> to vector<256x128xbf16>
    %c1 = arith.constant 1 : index
    %c0_11 = arith.constant 0 : index
    %c0_12 = arith.constant 0 : index
    %37 = vector.load %arg4[%c1, %c0_11, %c0_12] : memref<3x128x256xbf16, #tpu.memory_space<vmem>>, vector<1x128x256xbf16>
    %38 = vector.shape_cast %37 : vector<1x128x256xbf16> to vector<128x256xbf16>
    %cst_13 = arith.constant dense<0.000000e+00> : vector<256x256xf32>
    %39 = tpu.matmul %36, %38, %cst_13 {dimension_numbers = #tpu.dot_dimension_numbers<[1], [0], [0], [1], [0, 0, 1, 1], [], []>} : vector<256x128xbf16>, vector<128x256xbf16>, vector<256x256xf32> -> vector<256x256xf32>
    %cst_14 = arith.constant 0.000000e+00 : bf16
    %40 = vector.broadcast %cst_14 : bf16 to vector<2x128xbf16>
    %41 = vector.extract_strided_slice %36 {offsets = [0, 0], sizes = [254, 128], strides = [1, 1]} : vector<256x128xbf16> to vector<254x128xbf16>
    %42 = tpu.concatenate %40, %41 in 0 : vector<2x128xbf16>, vector<254x128xbf16> -> vector<256x128xbf16>
    %c0_15 = arith.constant 0 : index
    %c0_16 = arith.constant 0 : index
    %c0_17 = arith.constant 0 : index
    %43 = vector.load %arg4[%c0_15, %c0_16, %c0_17] : memref<3x128x256xbf16, #tpu.memory_space<vmem>>, vector<1x128x256xbf16>
    %44 = vector.shape_cast %43 : vector<1x128x256xbf16> to vector<128x256xbf16>
    %cst_18 = arith.constant dense<0.000000e+00> : vector<256x256xf32>
    %45 = tpu.matmul %42, %44, %cst_18 {dimension_numbers = #tpu.dot_dimension_numbers<[1], [0], [0], [1], [0, 0, 1, 1], [], []>} : vector<256x128xbf16>, vector<128x256xbf16>, vector<256x256xf32> -> vector<256x256xf32>
    %46 = arith.addf %39, %45 : vector<256x256xf32>
    %47 = vector.extract_strided_slice %36 {offsets = [2, 0], sizes = [254, 128], strides = [1, 1]} : vector<256x128xbf16> to vector<254x128xbf16>
    %cst_19 = arith.constant 0.000000e+00 : bf16
    %48 = vector.broadcast %cst_19 : bf16 to vector<2x128xbf16>
    %49 = tpu.concatenate %47, %48 in 0 : vector<254x128xbf16>, vector<2x128xbf16> -> vector<256x128xbf16>
    %c2 = arith.constant 2 : index
    %c0_20 = arith.constant 0 : index
    %c0_21 = arith.constant 0 : index
    %50 = vector.load %arg4[%c2, %c0_20, %c0_21] : memref<3x128x256xbf16, #tpu.memory_space<vmem>>, vector<1x128x256xbf16>
    %51 = vector.shape_cast %50 : vector<1x128x256xbf16> to vector<128x256xbf16>
    %cst_22 = arith.constant dense<0.000000e+00> : vector<256x256xf32>
    %52 = tpu.matmul %49, %51, %cst_22 {dimension_numbers = #tpu.dot_dimension_numbers<[1], [0], [0], [1], [0, 0, 1, 1], [], []>} : vector<256x128xbf16>, vector<128x256xbf16>, vector<256x256xf32> -> vector<256x256xf32>
    %53 = arith.addf %46, %52 : vector<256x256xf32>
    %c0_23 = arith.constant 0 : index
    %c0_24 = arith.constant 0 : index
    %54 = vector.load %arg5[%c0_23, %c0_24] : memref<1x256xf32, #tpu.memory_space<vmem>>, vector<1x256xf32>
    %55 = vector.broadcast %54 : vector<1x256xf32> to vector<256x256xf32>
    %56 = arith.addf %53, %55 : vector<256x256xf32>
    %cst_25 = arith.constant 0.000000e+00 : f32
    %57 = vector.broadcast %cst_25 : f32 to vector<256x256xf32>
    %58 = arith.maximumf %56, %57 : vector<256x256xf32>
    %59 = vector.extract_strided_slice %58 {offsets = [0, 0], sizes = [256, 128], strides = [1, 1]} : vector<256x256xf32> to vector<256x128xf32>
    %60 = vector.extract_strided_slice %58 {offsets = [0, 128], sizes = [256, 128], strides = [1, 1]} : vector<256x256xf32> to vector<256x128xf32>
    %61 = arith.maximumf %59, %60 : vector<256x128xf32>
    %62 = vector.extract_strided_slice %61 {offsets = [2, 0], sizes = [254, 128], strides = [1, 1]} : vector<256x128xf32> to vector<254x128xf32>
    %cst_26 = arith.constant 0.000000e+00 : f32
    %63 = vector.broadcast %cst_26 : f32 to vector<2x128xf32>
    %64 = tpu.concatenate %62, %63 in 0 : vector<254x128xf32>, vector<2x128xf32> -> vector<256x128xf32>
    %65 = arith.maximumf %61, %64 : vector<256x128xf32>
    %c0_27 = arith.constant 0 : index
    %c0_28 = arith.constant 0 : index
    %66 = vector.load %arg9[%c0_27, %c0_28] : memref<256x128xf32, #tpu.memory_space<vmem>>, vector<256x128xf32>
    tpu.vector_store %arg9[%c0_27, %c0_28], %65 {strides = array<i32>} : memref<256x128xf32, #tpu.memory_space<vmem>>, vector<256x128xf32>,
    %cst_29 = arith.constant 0.000000e+00 : f32
    %67 = vector.broadcast %cst_29 : f32 to vector<8x128xf32>
    %c0_30 = arith.constant 0 : index
    %c0_31 = arith.constant 0 : index
    %68 = tpu.strided_load %arg9[%c0_30, %c0_31] {strides = array<i32: 32, 1>} : memref<256x128xf32, #tpu.memory_space<vmem>>, vector<8x128xf32>
    %69 = arith.truncf %68 : vector<8x128xf32> to vector<8x128xbf16>
    %c0_32 = arith.constant 0 : index
    %c0_33 = arith.constant 0 : index
    %c0_34 = arith.constant 0 : index
    %70 = vector.load %arg6[%c0_32, %c0_33, %c0_34] : memref<7x128x128xbf16, #tpu.memory_space<vmem>>, vector<1x128x128xbf16>
    %71 = vector.shape_cast %70 : vector<1x128x128xbf16> to vector<128x128xbf16>
    %cst_35 = arith.constant dense<0.000000e+00> : vector<8x128xf32>
    %72 = tpu.matmul %69, %71, %cst_35 {dimension_numbers = #tpu.dot_dimension_numbers<[1], [0], [0], [1], [0, 0, 1, 1], [], []>} : vector<8x128xbf16>, vector<128x128xbf16>, vector<8x128xf32> -> vector<8x128xf32>
    %73 = arith.addf %67, %72 : vector<8x128xf32>
    %c4 = arith.constant 4 : index
    %c0_36 = arith.constant 0 : index
    %74 = tpu.strided_load %arg9[%c4, %c0_36] {strides = array<i32: 32, 1>} : memref<256x128xf32, #tpu.memory_space<vmem>>, vector<8x128xf32>
    %75 = arith.truncf %74 : vector<8x128xf32> to vector<8x128xbf16>
    %c1_37 = arith.constant 1 : index
    %c0_38 = arith.constant 0 : index
    %c0_39 = arith.constant 0 : index
    %76 = vector.load %arg6[%c1_37, %c0_38, %c0_39] : memref<7x128x128xbf16, #tpu.memory_space<vmem>>, vector<1x128x128xbf16>
    %77 = vector.shape_cast %76 : vector<1x128x128xbf16> to vector<128x128xbf16>
    %cst_40 = arith.constant dense<0.000000e+00> : vector<8x128xf32>
    %78 = tpu.matmul %75, %77, %cst_40 {dimension_numbers = #tpu.dot_dimension_numbers<[1], [0], [0], [1], [0, 0, 1, 1], [], []>} : vector<8x128xbf16>, vector<128x128xbf16>, vector<8x128xf32> -> vector<8x128xf32>
    %79 = arith.addf %73, %78 : vector<8x128xf32>
    %c8 = arith.constant 8 : index
    %c0_41 = arith.constant 0 : index
    %80 = tpu.strided_load %arg9[%c8, %c0_41] {strides = array<i32: 32, 1>} : memref<256x128xf32, #tpu.memory_space<vmem>>, vector<8x128xf32>
    %81 = arith.truncf %80 : vector<8x128xf32> to vector<8x128xbf16>
    %c2_42 = arith.constant 2 : index
    %c0_43 = arith.constant 0 : index
    %c0_44 = arith.constant 0 : index
    %82 = vector.load %arg6[%c2_42, %c0_43, %c0_44] : memref<7x128x128xbf16, #tpu.memory_space<vmem>>, vector<1x128x128xbf16>
    %83 = vector.shape_cast %82 : vector<1x128x128xbf16> to vector<128x128xbf16>
    %cst_45 = arith.constant dense<0.000000e+00> : vector<8x128xf32>
    %84 = tpu.matmul %81, %83, %cst_45 {dimension_numbers = #tpu.dot_dimension_numbers<[1], [0], [0], [1], [0, 0, 1, 1], [], []>} : vector<8x128xbf16>, vector<128x128xbf16>, vector<8x128xf32> -> vector<8x128xf32>
    %85 = arith.addf %79, %84 : vector<8x128xf32>
    %c12 = arith.constant 12 : index
    %c0_46 = arith.constant 0 : index
    %86 = tpu.strided_load %arg9[%c12, %c0_46] {strides = array<i32: 32, 1>} : memref<256x128xf32, #tpu.memory_space<vmem>>, vector<8x128xf32>
    %87 = arith.truncf %86 : vector<8x128xf32> to vector<8x128xbf16>
    %c3 = arith.constant 3 : index
    %c0_47 = arith.constant 0 : index
    %c0_48 = arith.constant 0 : index
    %88 = vector.load %arg6[%c3, %c0_47, %c0_48] : memref<7x128x128xbf16, #tpu.memory_space<vmem>>, vector<1x128x128xbf16>
    %89 = vector.shape_cast %88 : vector<1x128x128xbf16> to vector<128x128xbf16>
    %cst_49 = arith.constant dense<0.000000e+00> : vector<8x128xf32>
    %90 = tpu.matmul %87, %89, %cst_49 {dimension_numbers = #tpu.dot_dimension_numbers<[1], [0], [0], [1], [0, 0, 1, 1], [], []>} : vector<8x128xbf16>, vector<128x128xbf16>, vector<8x128xf32> -> vector<8x128xf32>
    %91 = arith.addf %85, %90 : vector<8x128xf32>
    %c16 = arith.constant 16 : index
    %c0_50 = arith.constant 0 : index
    %92 = tpu.strided_load %arg9[%c16, %c0_50] {strides = array<i32: 32, 1>} : memref<256x128xf32, #tpu.memory_space<vmem>>, vector<8x128xf32>
    %93 = arith.truncf %92 : vector<8x128xf32> to vector<8x128xbf16>
    %c4_51 = arith.constant 4 : index
    %c0_52 = arith.constant 0 : index
    %c0_53 = arith.constant 0 : index
    %94 = vector.load %arg6[%c4_51, %c0_52, %c0_53] : memref<7x128x128xbf16, #tpu.memory_space<vmem>>, vector<1x128x128xbf16>
    %95 = vector.shape_cast %94 : vector<1x128x128xbf16> to vector<128x128xbf16>
    %cst_54 = arith.constant dense<0.000000e+00> : vector<8x128xf32>
    %96 = tpu.matmul %93, %95, %cst_54 {dimension_numbers = #tpu.dot_dimension_numbers<[1], [0], [0], [1], [0, 0, 1, 1], [], []>} : vector<8x128xbf16>, vector<128x128xbf16>, vector<8x128xf32> -> vector<8x128xf32>
    %97 = arith.addf %91, %96 : vector<8x128xf32>
    %c20 = arith.constant 20 : index
    %c0_55 = arith.constant 0 : index
    %98 = tpu.strided_load %arg9[%c20, %c0_55] {strides = array<i32: 32, 1>} : memref<256x128xf32, #tpu.memory_space<vmem>>, vector<8x128xf32>
    %99 = arith.truncf %98 : vector<8x128xf32> to vector<8x128xbf16>
    %c5 = arith.constant 5 : index
    %c0_56 = arith.constant 0 : index
    %c0_57 = arith.constant 0 : index
    %100 = vector.load %arg6[%c5, %c0_56, %c0_57] : memref<7x128x128xbf16, #tpu.memory_space<vmem>>, vector<1x128x128xbf16>
    %101 = vector.shape_cast %100 : vector<1x128x128xbf16> to vector<128x128xbf16>
    %cst_58 = arith.constant dense<0.000000e+00> : vector<8x128xf32>
    %102 = tpu.matmul %99, %101, %cst_58 {dimension_numbers = #tpu.dot_dimension_numbers<[1], [0], [0], [1], [0, 0, 1, 1], [], []>} : vector<8x128xbf16>, vector<128x128xbf16>, vector<8x128xf32> -> vector<8x128xf32>
    %103 = arith.addf %97, %102 : vector<8x128xf32>
    %c24 = arith.constant 24 : index
    %c0_59 = arith.constant 0 : index
    %104 = tpu.strided_load %arg9[%c24, %c0_59] {strides = array<i32: 32, 1>} : memref<256x128xf32, #tpu.memory_space<vmem>>, vector<8x128xf32>
    %105 = arith.truncf %104 : vector<8x128xf32> to vector<8x128xbf16>
    %c6 = arith.constant 6 : index
    %c0_60 = arith.constant 0 : index
    %c0_61 = arith.constant 0 : index
    %106 = vector.load %arg6[%c6, %c0_60, %c0_61] : memref<7x128x128xbf16, #tpu.memory_space<vmem>>, vector<1x128x128xbf16>
    %107 = vector.shape_cast %106 : vector<1x128x128xbf16> to vector<128x128xbf16>
    %cst_62 = arith.constant dense<0.000000e+00> : vector<8x128xf32>
    %108 = tpu.matmul %105, %107, %cst_62 {dimension_numbers = #tpu.dot_dimension_numbers<[1], [0], [0], [1], [0, 0, 1, 1], [], []>} : vector<8x128xbf16>, vector<128x128xbf16>, vector<8x128xf32> -> vector<8x128xf32>
    %109 = arith.addf %103, %108 : vector<8x128xf32>
    %c0_63 = arith.constant 0 : index
    %c0_64 = arith.constant 0 : index
    %110 = vector.load %arg7[%c0_63, %c0_64] : memref<1x128xf32, #tpu.memory_space<vmem>>, vector<1x128xf32>
    %111 = vector.broadcast %110 : vector<1x128xf32> to vector<8x128xf32>
    %112 = arith.addf %109, %111 : vector<8x128xf32>
    %c0_65 = arith.constant 0 : index
    %c0_66 = arith.constant 0 : index
    %113 = vector.load %arg8[%c0_65, %c0_66] : memref<8x128xf32, #tpu.memory_space<vmem>>, vector<8x128xf32>
    tpu.vector_store %arg8[%c0_65, %c0_66], %112 {strides = array<i32>} : memref<8x128xf32, #tpu.memory_space<vmem>>, vector<8x128xf32>,
    return
  }
  func.func @transform_0(%arg0: i32) -> (i32, i32) {
    %c0_i32 = arith.constant 0 : i32
    %c0_i32_0 = arith.constant 0 : i32
    return %arg0, %c0_i32 : i32, i32
  }
  func.func @transform_1(%arg0: i32) -> (i32, i32) {
    %c0_i32 = arith.constant 0 : i32
    %c0_i32_0 = arith.constant 0 : i32
    %c0_i32_1 = arith.constant 0 : i32
    return %c0_i32, %c0_i32_0 : i32, i32
  }
  func.func @transform_2(%arg0: i32) -> (i32, i32) {
    %c0_i32 = arith.constant 0 : i32
    %c0_i32_0 = arith.constant 0 : i32
    %c0_i32_1 = arith.constant 0 : i32
    return %c0_i32, %c0_i32_0 : i32, i32
  }
  func.func @transform_3(%arg0: i32) -> (i32, i32, i32) {
    %c0_i32 = arith.constant 0 : i32
    %c0_i32_0 = arith.constant 0 : i32
    %c0_i32_1 = arith.constant 0 : i32
    %c0_i32_2 = arith.constant 0 : i32
    return %c0_i32, %c0_i32_0, %c0_i32_1 : i32, i32, i32
  }
  func.func @transform_4(%arg0: i32) -> (i32, i32) {
    %c0_i32 = arith.constant 0 : i32
    %c0_i32_0 = arith.constant 0 : i32
    %c0_i32_1 = arith.constant 0 : i32
    return %c0_i32, %c0_i32_0 : i32, i32
  }
  func.func @transform_5(%arg0: i32) -> (i32, i32, i32) {
    %c0_i32 = arith.constant 0 : i32
    %c0_i32_0 = arith.constant 0 : i32
    %c0_i32_1 = arith.constant 0 : i32
    %c0_i32_2 = arith.constant 0 : i32
    return %c0_i32, %c0_i32_0, %c0_i32_1 : i32, i32, i32
  }
  func.func @transform_6(%arg0: i32) -> (i32, i32) {
    %c0_i32 = arith.constant 0 : i32
    %c0_i32_0 = arith.constant 0 : i32
    %c0_i32_1 = arith.constant 0 : i32
    return %c0_i32, %c0_i32_0 : i32, i32
  }
  func.func @transform_7(%arg0: i32) -> (i32, i32) {
    %c0_i32 = arith.constant 0 : i32
    %c0_i32_0 = arith.constant 0 : i32
    return %arg0, %c0_i32 : i32, i32
  }
}

</mosaic_0001>

<bundles_post_ra>
// kernel: cnn_forward.1
= control target key start
LH: loop header
LB: loop body
LE: loop exit
PB: predicated region body
PF: predicated region fallthrough
CT: control target
= control target key end

     0   :  { %12 = vsyncpa [#allocation4], 0  ;;  %s6052_s0 = inlined_call_operand.vmem [shape: bf16[512,84], index: 0, kind: input, shape index: {}]   ;;  %s6053_s1 = inlined_call_operand.vmem [shape: bf16[84,256], index: 1, kind: input, shape index: {}]   ;;  %s6054_s2 = inlined_call_operand.vmem [shape: f32[1,256], index: 2, kind: input, shape index: {}]   ;;  %s6055_s3 = inlined_call_operand.vmem [shape: bf16[3,128,256], index: 3, kind: input, shape index: {}]   ;;  %s6056_s4 = inlined_call_operand.vmem [shape: f32[1,256], index: 4, kind: input, shape index: {}]   ;;  %s6057_s5 = inlined_call_operand.vmem [shape: bf16[7,128,128], index: 5, kind: input, shape index: {}]   ;;  %s6058_s6 = inlined_call_operand.vmem [shape: f32[1,128], index: 6, kind: input, shape index: {}]   ;;  %s6059_s7 = inlined_call_operand.hbm [shape: f32[16,128], index: 7, kind: output, shape index: {}]  }
   0x1   :  { %14 = vsyncpa [#allocation4 + $0x1], 0  ;;  %s4658_s24 = smov 0   ;;  %s4660_s25 = smov 0  }
   0x2   :  { %s4662_s26 = smov 0   ;;  %s4664_s27 = smov 0  }
   0x3 LB: > { %s4679_s28 = sadd.s32 4294967295, %s4611_s27   ;;  %s3828_s29 = sadd.s32 4294967294, %s4611_s27   ;;  %s4611_s27 = sphi %s4664_s27, %s6182_s27   ;;  %s4607_s26 = sphi %s4662_s26, %s6181_s26   ;;  %s4603_s25 = sphi %s4660_s25, %s6180_s25   ;;  %s4599_s24 = sphi %s4658_s24, %s6179_s24  }
   0x4   : > { %s4683_s30 = sadd.s32 1, %s4611_s27   ;;  %s179_s8 = sadd.s32 1, %s4607_s26 }
   0x5   : > { %s176_s9 = ssub.s32 %s4611_s27, %s4683_s30  ;;  %p189_p0 = scmp.ne.s32.totalorder %s4607_s26, %s4603_s25 }
   0x6   : > { %p177_p1 = scmp.eq.s32.totalorder %s176_s9, 0  ;;  %p190_p2 = scmp.eq.s32.totalorder %s4679_s28, 1 }
   0x7   : > { %p195_p3 = scmp.ne.s32.totalorder %s4603_s25, %s4599_s24  ;;  %p196_p4 = scmp.eq.s32.totalorder %s3828_s29, 1 }
   0x8   : > { %s4694_s10 = scalar_select %p177_p1, %s4607_s26, %s179_s8  }
   0x9   : > { %p4696_p5 = por %p190_p2, %p189_p0  ;;  %p4700_p6 = por %p196_p4, %p195_p3 }
   0xa   : > { %p3831_p7 = scmp.ge.s32.totalorder %s4611_s27, 1  ;;  %p241_p8 = scmp.lt.s32.totalorder %s4611_s27, 3 }
   0xc   : > { %p242_p9 = pnand %p3831_p7, %p241_p8 }
   0xe   : > { %245 = sbr.rel (%p242_p9) target bundleno = 1038 (0x40e), region = 48 }
  0x13   : > { %v322_v0 = vld [vmem:[%s6053_s1 + $0x50] sm:$0x33]  ;;  %vm519_vm0 = vcmask 1041408   ;;  %v4392_v3 = vld [vmem:[%s6053_s1 + $0x44] ss:$8 sps:$4 sm:$0xff]   ;;  %v4613_v4 = vmov 0  }
  0x14   : > { %v3862_v1 = vcombine.high %v322_v0, %v322_v0  ;;  %v3861_v2 = vcombine.low %v322_v0, %v322_v0  ;;  %558 = vmatprep.mubr.bf16.mxu0 %v4613_v4  ;;  %s3833_s17 = sshll.u32 %s4679_s28, 5  ;;  %1686 = vmatprep.mubr.bf16.mxu1 %v4613_v4  ;;  %v4394_v6 = vld [vmem:[%s6053_s1 + $0x40] ss:$8 sps:$4 sm:$0xff]   ;;  %v4395_v7 = vld [vmem:[%s6053_s1 + $0x34] ss:$8 sps:$4 sm:$0xff]   ;;  %vm470_vm1 = vcmask 687104   ;;  %v325_v0 = vlaneseq }
  0x15   : > { %p274_p10 = scmp.lt.s32.totalorder %s3833_s17, 63  ;;  %v4397_v8 = vld [vmem:[%s6053_s1 + $0x30] ss:$8 sps:$4 sm:$0xff]   ;;  %v4398_v9 = vld [vmem:[%s6053_s1 + $0x24] ss:$8 sps:$4 sm:$0xff]   ;;  %vm847_vm2 = vcmask 1046528  }
  0x16   : > { %3863 = vmatprep.subr.msk.bf16.mxu0 %vm519_vm0, %v3862_v1  ;;  %v521_v5 = vsel %vm519_vm0, %v3861_v2, 0  ;;  %v4400_v10 = vld [vmem:[%s6053_s1 + $0x20] ss:$8 sps:$4 sm:$0xff]   ;;  %v4401_v11 = vld [vmem:[%s6053_s1 + $0x14] ss:$8 sps:$4 sm:$0xff]   ;;  %v4894_v1 = vshrl.u32 %v325_v0, 7 }
  0x17   : > { %531 = vmatpush1.bf16.msra.mxu0 %v521_v5  ;;  %s6184_s17 = smov (!%p274_p10, %s3833_s17), 63  ;;  %v4403_v12 = vld [vmem:[%s6053_s1 + $0x10] ss:$8 sps:$4 sm:$0xff]   ;;  %v4404_v13 = vld [vmem:[%s6053_s1 + $0x4] ss:$8 sps:$4 sm:$0xff]   ;;  %vm1506_vm3 = vcmask 1040384  }
  0x18   : > { %532 = vmatprep.subr.bf16.mxu0 %v4392_v3  ;;  %s3834_s22 = sshll.u32 %s6184_s17, 2  ;;  %v4406_v14 = vld [vmem:[%s6053_s1] ss:$8 sps:$4 sm:$0xff]   ;;  %v4423_v16 = vld [vmem:[%s6055_s3 + $0xf0] ss:$8 sps:$4 sm:$0xff]   ;;  %v6060_v2 = vsub.s32 1, %v4894_v1  ;;  %vm3912_vm4 = vmneg %vm1506_vm3 }
  0x19   : > { %s4724_s8 = scalar_lea.vmem %s6052_s0, %s3834_s22  ;;  %v4425_v17 = vld [vmem:[%s6055_s3 + $0xf4] ss:$8 sps:$4 sm:$0xff]   ;;  %v4428_v19 = vld [vmem:[%s6055_s3 + $0x70] ss:$8 sps:$4 sm:$0xff]   ;;  %v4431_v20 = vld [vmem:[%s6055_s3 + $0xe4] ss:$8 sps:$4 sm:$0xff]  }
  0x1a   : > { %v4407_v15 = vld [vmem:[%s4724_s8] sm:$0xff]   ;;  %v4426_v18 = vld [vmem:[%s6055_s3 + $0x74] ss:$8 sps:$4 sm:$0xff]   ;;  %v4408_v24 = vld [vmem:[%s4724_s8 + $0x8] sm:$0xff]   ;;  %v6061_v3 = vsub.s32 0, %v4894_v1  ;;  %vm4614_vm6 = vmmov 1  }
  0x1b   : > { %533 = vmatpush1.bf16.msra.mxu0 %v4394_v6  ;;  %1654 = vmatprep.subr.bf16.mxu1 %v4426_v18  ;;  %v4432_v21 = vld [vmem:[%s6055_s3 + $0x64] ss:$8 sps:$4 sm:$0xff]   ;;  %v4429_v22 = vld [vmem:[%s6055_s3 + $0xe0] ss:$8 sps:$4 sm:$0xff]   ;;  %v4409_v25 = vld [vmem:[%s4724_s8 + $0x10] sm:$0xff]   ;;  %s270_s19 = sand.u32 1, %s4603_s25  }
  0x1c   : > { %534 = vmatprep.subr.bf16.mxu0 %v4395_v7  ;;  %v4434_v23 = vld [vmem:[%s6055_s3 + $0x60] ss:$8 sps:$4 sm:$0xff]   ;;  %1655 = vmatpush1.bf16.msra.mxu1 %v4428_v19  ;;  %v4410_v26 = vld [vmem:[%s4724_s8 + $0x18] sm:$0xff]   ;;  %v4413_v29 = vld [vmem:[%s4724_s8 + $0x30] sm:$0xff]   ;;  %s3832_s20 = sshll.u32 %s270_s19, 3  ;;  %s4141_s23 = sshll.u32 %s4679_s28, 7 }
  0x1d   : > { %1656 = vmatprep.subr.bf16.mxu1 %v4432_v21  ;;  %v4411_v27 = vld [vmem:[%s4724_s8 + $0x20] sm:$0xff]   ;;  %v4412_v28 = vld [vmem:[%s4724_s8 + $0x28] sm:$0xff]   ;;  %v4414_v30 = vld [vmem:[%s4724_s8 + $0x38] sm:$0xff]   ;;  %s272_s29 = scalar_lea.vmem [#allocation3], %s3832_s20  ;;  %s6011_s15 = scalar_lea.hbm %s6059_s7, %s4141_s23 }
  0x1e   : > { %v4415_v31 = vld [vmem:[%s4724_s8 + $0x40] sm:$0xff]   ;;  %v4437_v32 = vld [vmem:[%s6055_s3 + $0xd4] ss:$8 sps:$4 sm:$0xff]   ;;  %v4435_v33 = vld [vmem:[%s6055_s3 + $0xd0] ss:$8 sps:$4 sm:$0xff]   ;;  %s3769_s9 = sshll.u32 %s272_s29, 4  ;;  %s6013_s9 = int_to_ptr.vmem [resolvable:$true] %s3769_s9 }
  0x1f   : > { %535 = vmatpush1.bf16.msra.mxu0 %v4397_v8  ;;  %v4438_v34 = vld [vmem:[%s6055_s3 + $0x54] ss:$8 sps:$4 sm:$0xff]   ;;  %v4440_v35 = vld [vmem:[%s6055_s3 + $0x50] ss:$8 sps:$4 sm:$0xff]   ;;  %v4443_v36 = vld [vmem:[%s6055_s3 + $0xc4] ss:$8 sps:$4 sm:$0xff]  }
  0x20   : > { %536 = vmatprep.subr.bf16.mxu0 %v4398_v9  ;;  %1657 = vmatpush1.bf16.msra.mxu1 %v4434_v23  ;;  %v4441_v37 = vld [vmem:[%s6055_s3 + $0xc0] ss:$8 sps:$4 sm:$0xff]   ;;  %v4444_v39 = vld [vmem:[%s6055_s3 + $0x44] ss:$8 sps:$4 sm:$0xff]   ;;  %v4449_v41 = vld [vmem:[%s6055_s3 + $0xb4] ss:$8 sps:$4 sm:$0xff]  }
  0x21   : > { %1658 = vmatprep.subr.bf16.mxu1 %v4438_v34  ;;  %v4416_v38 = vld [vmem:[%s4724_s8 + $0x48] sm:$0xff]   ;;  %v4447_v42 = vld [vmem:[%s6055_s3 + $0xb0] ss:$8 sps:$4 sm:$0xff]   ;;  %v4450_v43 = vld [vmem:[%s6055_s3 + $0x34] ss:$8 sps:$4 sm:$0xff]   ;;  %s4551_s28 = scalar_lea.vmem %s6013_s9, 128 }
  0x22   : > { %v4446_v40 = vld [vmem:[%s6055_s3 + $0x40] ss:$8 sps:$4 sm:$0xff]   ;;  %v4452_v44 = vld [vmem:[%s6055_s3 + $0x30] ss:$8 sps:$4 sm:$0xff]   ;;  %v4455_v45 = vld [vmem:[%s6055_s3 + $0xa4] ss:$8 sps:$4 sm:$0xff]   ;;  %p4552_p11 = scmp.ne.s32.totalorder %s6013_s9, %s4551_s28 }
  0x23   : > { %537 = vmatpush1.bf16.msra.mxu0 %v4400_v10  ;;  %v4453_v46 = vld [vmem:[%s6055_s3 + $0xa0] ss:$8 sps:$4 sm:$0xff]   ;;  %v4417_v47 = vld [vmem:[%s4724_s8 + $0x50] sm:$0xff]   ;;  %v4456_v48 = vld [vmem:[%s6055_s3 + $0x24] ss:$8 sps:$4 sm:$0xff]   ;;  %s4617_s16 = smov [#allocation3]  }
  0x24   : > { %538 = vmatprep.subr.bf16.mxu0 %v4401_v11  ;;  %1659 = vmatpush1.bf16.msra.mxu1 %v4440_v35  ;;  %v4458_v49 = vld [vmem:[%s6055_s3 + $0x20] ss:$8 sps:$4 sm:$0xff]   ;;  %v4461_v50 = vld [vmem:[%s6055_s3 + $0x94] ss:$8 sps:$4 sm:$0xff]   ;;  %v4459_v51 = vld [vmem:[%s6055_s3 + $0x90] ss:$8 sps:$4 sm:$0xff]   ;;  %p4553_p12 = pnand %p4552_p11, %p4696_p5 }
  0x25   : > { %1660 = vmatprep.subr.bf16.mxu1 %v4444_v39  ;;  %v4462_v52 = vld [vmem:[%s6055_s3 + $0x14] ss:$8 sps:$4 sm:$0xff]   ;;  %v4464_v53 = vld [vmem:[%s6055_s3 + $0x10] ss:$8 sps:$4 sm:$0xff]   ;;  %v4467_v54 = vld [vmem:[%s6055_s3 + $0x84] ss:$8 sps:$4 sm:$0xff]  }
  0x26   : > { %v4465_v55 = vld [vmem:[%s6055_s3 + $0x80] ss:$8 sps:$4 sm:$0xff]   ;;  %v4418_v56 = vld [vmem:[%s4724_s8 + $0x58] sm:$0xff]   ;;  %v4468_v57 = vld [vmem:[%s6055_s3 + $0x4] ss:$8 sps:$4 sm:$0xff]   ;;  %p4554_p13 = pneg %p4553_p12  ;;  %s4555_s18 = sshll.u32 %s4617_s16, 4  ;;  %s4556_s18 = int_to_ptr.vmem [resolvable:$false] %s4555_s18 }
  0x27   : > { %539 = vmatpush1.bf16.msra.mxu0 %v4403_v12  ;;  %v4470_v58 = vld [vmem:[%s6055_s3] ss:$8 sps:$4 sm:$0xff]   ;;  %v4473_v60 = vld [vmem:[%s6055_s3 + $0x174] ss:$8 sps:$4 sm:$0xff]   ;;  %s4557_s17 = scalar_lea.vmem %s4556_s18, 256  ;;  %p4558_p0 = scmp.lt.s32.totalorder %s6013_s9, %s4556_s18 }
  0x28   : > { %540 = vmatprep.subr.bf16.mxu0 %v4404_v13  ;;  %1661 = vmatpush1.bf16.msra.mxu1 %v4446_v40  ;;  %v4419_v59 = vld [vmem:[%s4724_s8 + $0x60] sm:$0xff]   ;;  %v4420_v61 = vld [vmem:[%s4724_s8 + $0x68] sm:$0xff]   ;;  %v4421_v62 = vld [vmem:[%s4724_s8 + $0x70] sm:$0xff]   ;;  %p4559_p1 = scmp.lt.s32.totalorder %s4557_s17, %s4551_s28 }
  0x29   : > { %1662 = vmatprep.subr.bf16.mxu1 %v4450_v43  ;;  %v4422_v63 = vld [vmem:[%s4724_s8 + $0x78] sm:$0xff]   ;;  %v323_v5 = vld [vmem:[%s6054_s2] sm:$0x3]  ;;  %s3756_s8 = scalar_lea.sflag [#allocation4], %s270_s19 }
  0x2a   : > { %v4903_v6 = vrot.slane %v323_v5, %v6060_v2  ;;  %v4907_v7 = vrot.slane %v323_v5, %v6061_v3  ;;  %v4500_v2 = vld [vmem:[%s6057_s5 + $0x60] sm:$0xff]   ;;  %p4560_p2 = por %p4559_p1, %p4558_p0 }
  0x2b   : > { %541 = vmatpush1.bf16.msra.mxu0 %v4406_v14 }
  0x2c   : > { %1927 = vmatprep.subr.bf16.mxu0 %v4425_v17  ;;  %1663 = vmatpush1.bf16.msra.mxu1 %v4452_v44  ;;  %p4561_p3 = pnand %p4560_p2, %p4554_p13 }
  0x2d   : > { %1664 = vmatprep.subr.bf16.mxu1 %v4456_v48 }
  0x2e   : > { %3864 = vmatmul.mubr.msk.bf16.vlgmr.msra.gmra.mxu0 %vm470_vm1, %v4407_v15 }
  0x2f   : > { %568 = vmatprep.mubr.bf16.mxu0 %v4613_v4  ;;  %1928 = vmatpush1.bf16.msra.mxu0 %v4423_v16 }
  0x30   : > { %1929 = vmatprep.subr.bf16.mxu0 %v4431_v20  ;;  %1665 = vmatpush1.bf16.msra.mxu1 %v4458_v49 }
  0x31   : > { %1666 = vmatprep.subr.bf16.mxu1 %v4462_v52 }
  0x33   : > { %1930 = vmatpush1.bf16.msra.mxu0 %v4429_v22 }
  0x34   : > { %1931 = vmatprep.subr.bf16.mxu0 %v4437_v32  ;;  %1667 = vmatpush1.bf16.msra.mxu1 %v4464_v53 }
  0x35   : > { %1668 = vmatprep.subr.bf16.mxu1 %v4468_v57 }
  0x36   : > { %3865 = vmatmul.mubr.msk.bf16.gmra.mxu0 %vm470_vm1, %v4408_v24 }
  0x37   : > { %578 = vmatprep.mubr.bf16.mxu0 %v4613_v4  ;;  %1932 = vmatpush1.bf16.msra.mxu0 %v4435_v33 }
  0x38   : > { %1933 = vmatprep.subr.bf16.mxu0 %v4443_v36  ;;  %1669 = vmatpush1.bf16.msra.mxu1 %v4470_v58  ;;  %v4471_v58 = vld [vmem:[%s6055_s3 + $0x170] ss:$8 sps:$4 sm:$0xff]  }
  0x39   : > { %2267 = vmatprep.subr.bf16.mxu1 %v4473_v60 }
  0x3b   : > { %1934 = vmatpush1.bf16.msra.mxu0 %v4441_v37 }
  0x3c   : > { %1935 = vmatprep.subr.bf16.mxu0 %v4449_v41 }
  0x3e   : > { %3866 = vmatmul.mubr.msk.bf16.gmra.mxu0 %vm470_vm1, %v4409_v25 }
  0x3f   : > { %588 = vmatprep.mubr.bf16.mxu0 %v4613_v4  ;;  %1936 = vmatpush1.bf16.msra.mxu0 %v4447_v42  ;;  %v980_v42 = vadd.s32 24, %v4894_v1 }
  0x40   : > { %1937 = vmatprep.subr.bf16.mxu0 %v4455_v45 }
  0x43   : > { %1938 = vmatpush1.bf16.msra.mxu0 %v4453_v46 }
  0x44   : > { %1939 = vmatprep.subr.bf16.mxu0 %v4461_v50 }
  0x46   : > { %3867 = vmatmul.mubr.msk.bf16.gmra.mxu0 %vm470_vm1, %v4410_v26 }
  0x47   : > { %598 = vmatprep.mubr.bf16.mxu0 %v4613_v4  ;;  %1940 = vmatpush1.bf16.msra.mxu0 %v4459_v51 }
  0x48   : > { %1941 = vmatprep.subr.bf16.mxu0 %v4467_v54 }
  0x4b   : > { %1942 = vmatpush1.bf16.msra.mxu0 %v4465_v55  ;;  %v1034_v55 = vand.u32 31, %v980_v42 }
  0x4d   : > { %vm4941_vm5 = vcmp.lt.s32.totalorder %v1034_v55, 28 }
  0x4e   : > { %3868 = vmatmul.mubr.msk.bf16.gmra.mxu0 %vm470_vm1, %v4411_v27  ;;  %vm3930_vm7 = vmpackc.low %vm4941_vm5, %vm4614_vm6 }
  0x4f   : > { %608 = vmatprep.mubr.bf16.mxu0 %v4613_v4 }
  0x56   : > { %3869 = vmatmul.mubr.msk.bf16.gmra.mxu0 %vm470_vm1, %v4412_v28 }
  0x57   : > { %618 = vmatprep.mubr.bf16.mxu0 %v4613_v4 }
  0x5e   : > { %3870 = vmatmul.mubr.msk.bf16.gmra.mxu0 %vm470_vm1, %v4413_v29 }
  0x5f   : > { %628 = vmatprep.mubr.bf16.mxu0 %v4613_v4 }
  0x66   : > { %3871 = vmatmul.mubr.msk.bf16.gmra.mxu0 %vm470_vm1, %v4414_v30 }
  0x67   : > { %638 = vmatprep.mubr.bf16.mxu0 %v4613_v4 }
  0x6e   : > { %3872 = vmatmul.mubr.msk.bf16.gmra.mxu0 %vm470_vm1, %v4415_v31 }
  0x6f   : > { %648 = vmatprep.mubr.bf16.mxu0 %v4613_v4 }
  0x76   : > { %3873 = vmatmul.mubr.msk.bf16.gmra.mxu0 %vm470_vm1, %v4416_v38 }
  0x77   : > { %658 = vmatprep.mubr.bf16.mxu0 %v4613_v4 }
  0x7e   : > { %3874 = vmatmul.mubr.msk.bf16.gmra.mxu0 %vm470_vm1, %v4417_v47 }
  0x7f   : > { %668 = vmatprep.mubr.bf16.mxu0 %v4613_v4 }
  0x86   : > { %3875 = vmatmul.mubr.msk.bf16.gmra.mxu0 %vm470_vm1, %v4418_v56 }
  0x87   : > { %678 = vmatprep.mubr.bf16.mxu0 %v4613_v4 }
  0x8e   : > { %3876 = vmatmul.mubr.msk.bf16.gmra.mxu0 %vm470_vm1, %v4419_v59 }
  0x8f   : > { %688 = vmatprep.mubr.bf16.mxu0 %v4613_v4 }
  0x96   : > { %3877 = vmatmul.mubr.msk.bf16.gmra.mxu0 %vm470_vm1, %v4420_v61 }
  0x97   : > { %698 = vmatprep.mubr.bf16.mxu0 %v4613_v4 }
  0x9e   : > { %3878 = vmatmul.mubr.msk.bf16.gmra.mxu0 %vm470_vm1, %v4421_v62  ;;  %v4476_v62 = vld [vmem:[%s6055_s3 + $0x164] ss:$8 sps:$4 sm:$0xff]  }
  0x9f   : > { %708 = vmatprep.mubr.bf16.mxu0 %v4613_v4 }
  0xa6   : > { %3879 = vmatmul.mubr.msk.bf16.gmra.mxu0 %vm470_vm1, %v4422_v63 }
  0xa7   : > { %1959 = vmatprep.mubr.bf16.mxu0 %v4613_v4 }
  0xee   : > { %v560_v8 = vpop.f32.mrf.mxu0 }
  0xef   : > { %v561_v11 = vadd.f32 %v560_v8, %v4907_v7 }
  0xf0   : > { %v562_v9 = vpop.f32.mrf.mxu0 }
  0xf1   : > { %v563_v10 = vadd.f32 %v562_v9, %v4903_v6  ;;  %v719_v17 = vmax.f32 %v561_v11, 0.0 }
  0xf2   : > { %v564_v12 = vpop.f32.mrf.mxu0 }
  0xf3   : > { %v565_v13 = vadd.f32 %v564_v12, %v4907_v7  ;;  %v720_v14 = vmax.f32 %v563_v10, 0.0 }
  0xf4   : > { %v566_v15 = vpop.f32.mrf.mxu0 }
  0xf5   : > { %v567_v16 = vadd.f32 %v566_v15, %v4903_v6  ;;  %v721_v19 = vmax.f32 %v565_v13, 0.0  ;;  %v783_v22 = vmax.f32 %v719_v17, %v720_v14  ;;  %v4474_v14 = vld [vmem:[%s6055_s3 + $0x160] ss:$8 sps:$4 sm:$0xff]  }
  0xf6   : > { %v570_v18 = vpop.f32.mrf.mxu0 }
  0xf7   : > { %v722_v20 = vmax.f32 %v567_v16, 0.0  ;;  %v571_v21 = vadd.f32 %v570_v18, %v4907_v7  ;;  %v848_v31 = vrot.slane %v783_v22, 1  ;;  %v4479_v18 = vld [vmem:[%s6055_s3 + $0x154] ss:$8 sps:$4 sm:$0xff]  }
  0xf8   : > { %v572_v23 = vpop.f32.mrf.mxu0 }
  0xf9   : > { %v784_v24 = vmax.f32 %v721_v19, %v722_v20  ;;  %v573_v25 = vadd.f32 %v572_v23, %v4903_v6  ;;  %v723_v28 = vmax.f32 %v571_v21, 0.0 }
  0xfa   : > { %v574_v26 = vpop.f32.mrf.mxu0 }
  0xfb   : > { %v849_v27 = vrot.slane %v784_v24, 1  ;;  %v724_v29 = vmax.f32 %v573_v25, 0.0  ;;  %v575_v30 = vadd.f32 %v574_v26, %v4907_v7 }
  0xfc   : > { %v576_v32 = vpop.f32.mrf.mxu0 }
  0xfd   : > { %v785_v33 = vmax.f32 %v723_v28, %v724_v29  ;;  %v577_v34 = vadd.f32 %v576_v32, %v4903_v6  ;;  %v850_v35 = vsel %vm847_vm2, %v848_v31, %v849_v27  ;;  %v725_v38 = vmax.f32 %v575_v30, 0.0  ;;  %v4477_v29 = vld [vmem:[%s6055_s3 + $0x150] ss:$8 sps:$4 sm:$0xff]  }
  0xfe   : > { %v580_v36 = vpop.f32.mrf.mxu0  ;;  %v944_v46 = vmax.f32 %v783_v22, %v850_v35 }
  0xff   : > { %v851_v37 = vrot.slane %v785_v33, 1  ;;  %v726_v39 = vmax.f32 %v577_v34, 0.0  ;;  %v581_v40 = vadd.f32 %v580_v36, %v4907_v7 }
 0x100   : > { %v582_v41 = vpop.f32.mrf.mxu0 }
 0x101   : > { %v852_v43 = vsel %vm847_vm2, %v849_v27, %v851_v37  ;;  %v786_v44 = vmax.f32 %v725_v38, %v726_v39  ;;  %v583_v45 = vadd.f32 %v582_v41, %v4903_v6  ;;  %v727_v50 = vmax.f32 %v581_v40, 0.0 }
 0x102   : > { %v945_v47 = vmax.f32 %v784_v24, %v852_v43  ;;  %v584_v48 = vpop.f32.mrf.mxu0  ;;  %v984_v40 = vadd.s32 56, %v4894_v1 }
 0x103   : > { %v853_v49 = vrot.slane %v786_v44, 1  ;;  %v728_v51 = vmax.f32 %v583_v45, 0.0  ;;  %v585_v52 = vadd.f32 %v584_v48, %v4907_v7  ;;  %v4480_v45 = vld [vmem:[%s6055_s3 + $0x140] ss:$8 sps:$4 sm:$0xff]  }
 0x104   : > { %v586_v53 = vpop.f32.mrf.mxu0  ;;  %v4923_v54 = vpack.c.bf16 %v945_v47, %v944_v46 }
 0x105   : > { %v4925_v56 = vmax.f32 %v727_v50, %v728_v51  ;;  %v587_v57 = vadd.f32 %v586_v53, %v4903_v6  ;;  %v729_v59 = vmax.f32 %v585_v52, 0.0  ;;  %v854_v8 = vsel %vm847_vm2, %v851_v37, %v853_v49  ;;  %v4485_v50 = vld [vmem:[%s6055_s3 + $0x134] ss:$8 sps:$4 sm:$0xff]  }
 0x106   : > { %v590_v60 = vpop.f32.mrf.mxu0  ;;  %1960 = vmatmul.mubr.bf16.vlgmr.msra.gmra.mxu0 %v4923_v54  ;;  %v1507_v61 = vrot.slane %v4923_v54, 7  ;;  %v946_v16 = vmax.f32 %v785_v33, %v854_v8  ;;  %v4482_v33 = vld [vmem:[%s6055_s3 + $0x144] ss:$8 sps:$4 sm:$0xff]   ;;  %v2121_v41 = vrot.slane %v4923_v54, 1 }
 0x107   : > { %v855_v63 = vrot.slane %v4925_v56, 1  ;;  %v730_v0 = vmax.f32 %v587_v57, 0.0  ;;  %v591_v5 = vadd.f32 %v590_v60, %v4907_v7  ;;  %1969 = vmatprep.mubr.bf16.mxu0 %v4613_v4 }
 0x108   : > { %v592_v9 = vpop.f32.mrf.mxu0  ;;  %3913 = vmatmul.mubr.msk.bf16.vlgmr.msra.gmra.mxu1 %vm3912_vm4, %v1507_v61 }
 0x109   : > { %v788_v11 = vmax.f32 %v729_v59, %v730_v0  ;;  %v593_v12 = vadd.f32 %v592_v9, %v4903_v6  ;;  %2268 = vmatpush1.bf16.msra.mxu1 %v4471_v58  ;;  %v856_v13 = vsel %vm847_vm2, %v853_v49, %v855_v63  ;;  %1696 = vmatprep.mubr.bf16.mxu1 %v4613_v4  ;;  %v731_v20 = vmax.f32 %v591_v5, 0.0  ;;  %v4488_v5 = vld [vmem:[%s6055_s3 + $0x124] ss:$8 sps:$4 sm:$0xff]  }
 0x10a   : > { %v594_v15 = vpop.f32.mrf.mxu0  ;;  %v947_v17 = vmax.f32 %v786_v44, %v856_v13  ;;  %2269 = vmatprep.subr.bf16.mxu1 %v4476_v62 }
 0x10b   : > { %v857_v19 = vrot.slane %v788_v11, 1  ;;  %v732_v21 = vmax.f32 %v593_v12, 0.0  ;;  %v595_v22 = vadd.f32 %v594_v15, %v4907_v7 }
 0x10c   : > { %v596_v23 = vpop.f32.mrf.mxu0  ;;  %v1428_v24 = vsel %vm4941_vm5, %v947_v17, 0.0  ;;  %v3931_v25 = vpack.c.bf16 %v947_v17, %v946_v16 }
 0x10d   : > { %v4960_v26 = vmax.f32 %v731_v20, %v732_v21  ;;  %v597_v27 = vadd.f32 %v596_v23, %v4903_v6  ;;  %v1458_v28 = vpack.c.bf16 %v1428_v24, %v946_v16  ;;  %2270 = vmatpush1.bf16.msra.mxu1 %v4474_v14  ;;  %v733_v30 = vmax.f32 %v595_v22, 0.0  ;;  %v4486_v20 = vld [vmem:[%s6055_s3 + $0x120] ss:$8 sps:$4 sm:$0xff]   ;;  %v4491_v24 = vld [vmem:[%s6055_s3 + $0x114] ss:$8 sps:$4 sm:$0xff]  }
 0x10e   : > { %v600_v31 = vpop.f32.mrf.mxu0  ;;  %3932 = vmatmul.mubr.msk.bf16.gmra.mxu0 %vm3930_vm7, %v3931_v25  ;;  %v858_v32 = vsel %vm847_vm2, %v855_v63, %v857_v19  ;;  %2271 = vmatprep.subr.bf16.mxu1 %v4479_v18 }
 0x10f   : > { %v859_v34 = vrot.slane %v4960_v26, 1  ;;  %v734_v35 = vmax.f32 %v597_v27, 0.0  ;;  %v601_v36 = vadd.f32 %v600_v31, %v4907_v7  ;;  %v2122_v37 = vrot.slane %v1458_v28, 1  ;;  %1979 = vmatprep.mubr.bf16.mxu0 %v4613_v4 }
 0x110   : > { %v602_v38 = vpop.f32.mrf.mxu0  ;;  %v1508_v39 = vrot.slane %v1458_v28, 7  ;;  %v948_v48 = vmax.f32 %v4925_v56, %v858_v32  ;;  %v1062_v56 = vand.u32 31, %v984_v40 }
 0x111   : > { %v790_v42 = vmax.f32 %v733_v30, %v734_v35  ;;  %v603_v43 = vadd.f32 %v602_v38, %v4903_v6  ;;  %v860_v44 = vsel %vm847_vm2, %v857_v19, %v859_v34  ;;  %2272 = vmatpush1.bf16.msra.mxu1 %v4477_v29  ;;  %v4986_v51 = vsel %vm847_vm2, %v2121_v41, %v2122_v37  ;;  %v4489_v35 = vld [vmem:[%s6055_s3 + $0x110] ss:$8 sps:$4 sm:$0xff]  }
 0x112   : > { %v604_v46 = vpop.f32.mrf.mxu0  ;;  %v1509_v47 = vsel %vm1506_vm3, %v1507_v61, %v1508_v39  ;;  %v949_v49 = vmax.f32 %v788_v11, %v860_v44  ;;  %2273 = vmatprep.subr.bf16.mxu1 %v4482_v33  ;;  %v735_v53 = vmax.f32 %v601_v36, 0.0  ;;  %v4483_v61 = vld [vmem:[%s6055_s3 + $0x130] ss:$8 sps:$4 sm:$0xff]   ;;  %vm5009_vm8 = vcmp.lt.s32.totalorder %v1062_v56, 28 }
 0x113   : > { %v861_v52 = vrot.slane %v790_v42, 1  ;;  %v736_v54 = vmax.f32 %v603_v43, 0.0  ;;  %v605_v55 = vadd.f32 %v604_v46, %v4907_v7  ;;  %1697 = vmatmul.mubr.bf16.gmra.mxu1 %v1509_v47  ;;  %vm3933_vm9 = vmpackc.low %vm5009_vm8, %vm4614_vm6 }
 0x114   : > { %v606_v57 = vpop.f32.mrf.mxu0  ;;  %v4989_v58 = vpack.c.bf16 %v949_v49, %v948_v48  ;;  %1706 = vmatprep.mubr.bf16.mxu1 %v4613_v4  ;;  %v4492_v49 = vld [vmem:[%s6055_s3 + $0x100] ss:$8 sps:$4 sm:$0xff]  }
 0x115   : > { %v4992_v59 = vmax.f32 %v735_v53, %v736_v54  ;;  %v607_v60 = vadd.f32 %v606_v57, %v4903_v6  ;;  %2274 = vmatpush1.bf16.msra.mxu1 %v4480_v45  ;;  %v737_v62 = vmax.f32 %v605_v55, 0.0  ;;  %v862_v12 = vsel %vm847_vm2, %v859_v34, %v861_v52 }
 0x116   : > { %v610_v63 = vpop.f32.mrf.mxu0  ;;  %1980 = vmatmul.mubr.bf16.gmra.mxu0 %v4989_v58  ;;  %v1510_v0 = vrot.slane %v4989_v58, 7  ;;  %2275 = vmatprep.subr.bf16.mxu1 %v4485_v50  ;;  %v2124_v8 = vrot.slane %v4989_v58, 1  ;;  %v950_v22 = vmax.f32 %v4960_v26, %v862_v12  ;;  %v988_v54 = vadd.s32 88, %v4894_v1 }
 0x117   : > { %v863_v9 = vrot.slane %v4992_v59, 1  ;;  %v738_v10 = vmax.f32 %v607_v60, 0.0  ;;  %v611_v11 = vadd.f32 %v610_v63, %v4907_v7  ;;  %1989 = vmatprep.mubr.bf16.mxu0 %v4613_v4 }
 0x118   : > { %v612_v13 = vpop.f32.mrf.mxu0  ;;  %v1511_v14 = vsel %vm1506_vm3, %v1508_v39, %v1510_v0  ;;  %v5014_v16 = vsel %vm847_vm2, %v2122_v37, %v2124_v8  ;;  %v4494_v39 = vld [vmem:[%s6055_s3 + $0x104] ss:$8 sps:$4 sm:$0xff]  }
 0x119   : > { %v792_v17 = vmax.f32 %v737_v62, %v738_v10  ;;  %v613_v18 = vadd.f32 %v612_v13, %v4903_v6  ;;  %v864_v19 = vsel %vm847_vm2, %v861_v52, %v863_v9  ;;  %2276 = vmatpush1.bf16.msra.mxu1 %v4483_v61  ;;  %v739_v27 = vmax.f32 %v611_v11, 0.0 }
 0x11a   : > { %v614_v21 = vpop.f32.mrf.mxu0  ;;  %v951_v23 = vmax.f32 %v790_v42, %v864_v19  ;;  %2277 = vmatprep.subr.bf16.mxu1 %v4488_v5 }
 0x11b   : > { %v865_v25 = vrot.slane %v792_v17, 1  ;;  %v740_v28 = vmax.f32 %v613_v18, 0.0  ;;  %v615_v29 = vadd.f32 %v614_v21, %v4907_v7  ;;  %1707 = vmatmul.mubr.bf16.gmra.mxu1 %v1511_v14 }
 0x11c   : > { %v616_v30 = vpop.f32.mrf.mxu0  ;;  %v1432_v26 = vsel %vm5009_vm8, %v951_v23, 0.0  ;;  %v3934_v31 = vpack.c.bf16 %v951_v23, %v950_v22  ;;  %1716 = vmatprep.mubr.bf16.mxu1 %v4613_v4 }
 0x11d   : > { %v5032_v32 = vmax.f32 %v739_v27, %v740_v28  ;;  %v617_v33 = vadd.f32 %v616_v30, %v4903_v6  ;;  %v1460_v34 = vpack.c.bf16 %v1432_v26, %v950_v22  ;;  %2278 = vmatpush1.bf16.msra.mxu1 %v4486_v20  ;;  %v741_v36 = vmax.f32 %v615_v29, 0.0 }
 0x11e   : > { %v620_v37 = vpop.f32.mrf.mxu0  ;;  %3935 = vmatmul.mubr.msk.bf16.gmra.mxu0 %vm3933_vm9, %v3934_v31  ;;  %v866_v38 = vsel %vm847_vm2, %v863_v9, %v865_v25  ;;  %2279 = vmatprep.subr.bf16.mxu1 %v4491_v24 }
 0x11f   : > { %v867_v40 = vrot.slane %v5032_v32, 1  ;;  %v742_v41 = vmax.f32 %v617_v33, 0.0  ;;  %v621_v42 = vadd.f32 %v620_v37, %v4907_v7  ;;  %v1512_v43 = vrot.slane %v1460_v34, 7  ;;  %1999 = vmatprep.mubr.bf16.mxu0 %v4613_v4 }
 0x120   : > { %v622_v44 = vpop.f32.mrf.mxu0  ;;  %v2126_v45 = vrot.slane %v1460_v34, 1  ;;  %v952_v53 = vmax.f32 %v4992_v59, %v866_v38 }
 0x121   : > { %v794_v46 = vmax.f32 %v741_v36, %v742_v41  ;;  %v623_v47 = vadd.f32 %v622_v44, %v4903_v6  ;;  %v1513_v48 = vsel %vm1506_vm3, %v1510_v0, %v1512_v43  ;;  %2280 = vmatpush1.bf16.msra.mxu1 %v4489_v35  ;;  %v868_v52 = vsel %vm847_vm2, %v865_v25, %v867_v40 }
 0x122   : > { %v624_v50 = vpop.f32.mrf.mxu0  ;;  %2281 = vmatprep.subr.bf16.mxu1 %v4494_v39  ;;  %v5054_v55 = vsel %vm847_vm2, %v2124_v8, %v2126_v45  ;;  %v743_v57 = vmax.f32 %v621_v42, 0.0  ;;  %v953_v60 = vmax.f32 %v792_v17, %v868_v52  ;;  %v1090_v8 = vand.u32 31, %v988_v54 }
 0x123   : > { %v744_v58 = vmax.f32 %v623_v47, 0.0  ;;  %v625_v56 = vadd.f32 %v624_v50, %v4907_v7  ;;  %1717 = vmatmul.mubr.bf16.gmra.mxu1 %v1513_v48  ;;  %v869_v62 = vrot.slane %v794_v46, 1 }
 0x124   : > { %v626_v61 = vpop.f32.mrf.mxu0  ;;  %1726 = vmatprep.mubr.bf16.mxu1 %v4613_v4  ;;  %v1461_v0 = vpack.c.bf16 %v953_v60, %v952_v53  ;;  %vm5068_vm10 = vcmp.lt.s32.totalorder %v1090_v8, 28 }
 0x125   : > { %v5058_v63 = vmax.f32 %v743_v57, %v744_v58  ;;  %v627_v59 = vadd.f32 %v626_v61, %v4903_v6  ;;  %2282 = vmatpush1.bf16.msra.mxu1 %v4492_v49  ;;  %v745_v5 = vmax.f32 %v625_v56, 0.0  ;;  %v870_v20 = vsel %vm847_vm2, %v867_v40, %v869_v62  ;;  %vm3936_vm11 = vmpackc.low %vm5068_vm10, %vm4614_vm6 }
 0x126   : > { %v630_v9 = vpop.f32.mrf.mxu0  ;;  %2000 = vmatmul.mubr.bf16.gmra.mxu0 %v1461_v0  ;;  %v1514_v13 = vrot.slane %v1461_v0, 7  ;;  %v2128_v15 = vrot.slane %v1461_v0, 1  ;;  %v954_v31 = vmax.f32 %v5032_v32, %v870_v20  ;;  %v992_v49 = vadd.s32 120, %v4894_v1 }
 0x127   : > { %v871_v10 = vrot.slane %v5058_v63, 1  ;;  %v746_v11 = vmax.f32 %v627_v59, 0.0  ;;  %v631_v12 = vadd.f32 %v630_v9, %v4907_v7  ;;  %2009 = vmatprep.mubr.bf16.mxu0 %v4613_v4 }
 0x128   : > { %v632_v14 = vpop.f32.mrf.mxu0  ;;  %v1515_v19 = vsel %vm1506_vm3, %v1512_v43, %v1514_v13  ;;  %v5073_v25 = vsel %vm847_vm2, %v2126_v45, %v2128_v15  ;;  %v1118_v9 = vand.u32 31, %v992_v49 }
 0x129   : > { %v796_v17 = vmax.f32 %v745_v5, %v746_v11  ;;  %v633_v18 = vadd.f32 %v632_v14, %v4903_v6  ;;  %v747_v21 = vmax.f32 %v631_v12, 0.0  ;;  %v872_v23 = vsel %vm847_vm2, %v869_v62, %v871_v10 }
 0x12a   : > { %v634_v22 = vpop.f32.mrf.mxu0  ;;  %v955_v30 = vmax.f32 %v794_v46, %v872_v23  ;;  %vm5110_vm12 = vcmp.lt.s32.totalorder %v1118_v9, 28 }
 0x12b   : > { %v873_v27 = vrot.slane %v796_v17, 1  ;;  %v748_v28 = vmax.f32 %v633_v18, 0.0  ;;  %v635_v29 = vadd.f32 %v634_v22, %v4907_v7  ;;  %1727 = vmatmul.mubr.bf16.gmra.mxu1 %v1515_v19  ;;  %vm3939_vm13 = vmpackc.low %vm5110_vm12, %vm4614_vm6 }
 0x12c   : > { %v636_v26 = vpop.f32.mrf.mxu0  ;;  %1736 = vmatprep.mubr.bf16.mxu1 %v4613_v4  ;;  %v1436_v35 = vsel %vm5068_vm10, %v955_v30, 0.0  ;;  %v3937_v39 = vpack.c.bf16 %v955_v30, %v954_v31 }
 0x12d   : > { %v797_v33 = vmax.f32 %v747_v21, %v748_v28  ;;  %v637_v34 = vadd.f32 %v636_v26, %v4903_v6  ;;  %v749_v36 = vmax.f32 %v635_v29, 0.0  ;;  %v1462_v38 = vpack.c.bf16 %v1436_v35, %v954_v31 }
 0x12e   : > { %v640_v37 = vpop.f32.mrf.mxu0  ;;  %v874_v42 = vsel %vm847_vm2, %v871_v10, %v873_v27  ;;  %3938 = vmatmul.mubr.msk.bf16.gmra.mxu0 %vm3936_vm11, %v3937_v39 }
 0x12f   : > { %v875_v40 = vrot.slane %v797_v33, 1  ;;  %v750_v41 = vmax.f32 %v637_v34, 0.0  ;;  %v641_v32 = vadd.f32 %v640_v37, %v4907_v7  ;;  %v1516_v44 = vrot.slane %v1462_v38, 7  ;;  %2019 = vmatprep.mubr.bf16.mxu0 %v4613_v4 }
 0x130   : > { %v642_v43 = vpop.f32.mrf.mxu0  ;;  %v2130_v45 = vrot.slane %v1462_v38, 1  ;;  %v956_v53 = vmax.f32 %v5058_v63, %v874_v42 }
 0x131   : > { %v798_v46 = vmax.f32 %v749_v36, %v750_v41  ;;  %v643_v47 = vadd.f32 %v642_v43, %v4903_v6  ;;  %v876_v48 = vsel %vm847_vm2, %v873_v27, %v875_v40  ;;  %v1517_v52 = vsel %vm1506_vm3, %v1514_v13, %v1516_v44 }
 0x132   : > { %v644_v50 = vpop.f32.mrf.mxu0  ;;  %v957_v54 = vmax.f32 %v796_v17, %v876_v48  ;;  %v5093_v57 = vsel %vm847_vm2, %v2128_v15, %v2130_v45  ;;  %v751_v56 = vmax.f32 %v641_v32, 0.0 }
 0x133   : > { %v877_v58 = vrot.slane %v798_v46, 1  ;;  %v752_v60 = vmax.f32 %v643_v47, 0.0  ;;  %v645_v61 = vadd.f32 %v644_v50, %v4907_v7  ;;  %1737 = vmatmul.mubr.bf16.gmra.mxu1 %v1517_v52 }
 0x134   : > { %v646_v62 = vpop.f32.mrf.mxu0  ;;  %v1463_v59 = vpack.c.bf16 %v957_v54, %v956_v53  ;;  %1746 = vmatprep.mubr.bf16.mxu1 %v4613_v4  ;;  %v996_v54 = vadd.s32 152, %v4894_v1 }
 0x135   : > { %v5097_v0 = vmax.f32 %v751_v56, %v752_v60  ;;  %v647_v5 = vadd.f32 %v646_v62, %v4903_v6  ;;  %v753_v63 = vmax.f32 %v645_v61, 0.0  ;;  %v878_v15 = vsel %vm847_vm2, %v875_v40, %v877_v58 }
 0x136   : > { %v650_v8 = vpop.f32.mrf.mxu0  ;;  %v1518_v10 = vrot.slane %v1463_v59, 7  ;;  %v2132_v11 = vrot.slane %v1463_v59, 1  ;;  %2020 = vmatmul.mubr.bf16.gmra.mxu0 %v1463_v59  ;;  %v958_v27 = vmax.f32 %v797_v33, %v878_v15 }
 0x137   : > { %v879_v12 = vrot.slane %v5097_v0, 1  ;;  %v754_v13 = vmax.f32 %v647_v5, 0.0  ;;  %v651_v14 = vadd.f32 %v650_v8, %v4907_v7  ;;  %2029 = vmatprep.mubr.bf16.mxu0 %v4613_v4 }
 0x138   : > { %v652_v17 = vpop.f32.mrf.mxu0  ;;  %v1519_v18 = vsel %vm1506_vm3, %v1516_v44, %v1518_v10  ;;  %v5105_v19 = vsel %vm847_vm2, %v2130_v45, %v2132_v11 }
 0x139   : > { %v800_v20 = vmax.f32 %v753_v63, %v754_v13  ;;  %v653_v21 = vadd.f32 %v652_v17, %v4903_v6  ;;  %v880_v22 = vsel %vm847_vm2, %v877_v58, %v879_v12  ;;  %v755_v30 = vmax.f32 %v651_v14, 0.0 }
 0x13a   : > { %v654_v24 = vpop.f32.mrf.mxu0  ;;  %v959_v28 = vmax.f32 %v798_v46, %v880_v22 }
 0x13b   : > { %v881_v29 = vrot.slane %v800_v20, 1  ;;  %v756_v26 = vmax.f32 %v653_v21, 0.0  ;;  %v655_v31 = vadd.f32 %v654_v24, %v4907_v7  ;;  %1747 = vmatmul.mubr.bf16.gmra.mxu1 %v1519_v18 }
 0x13c   : > { %v656_v34 = vpop.f32.mrf.mxu0  ;;  %v1440_v35 = vsel %vm5110_vm12, %v959_v28, 0.0  ;;  %v3940_v36 = vpack.c.bf16 %v959_v28, %v958_v27  ;;  %1756 = vmatprep.mubr.bf16.mxu1 %v4613_v4 }
 0x13d   : > { %v801_v37 = vmax.f32 %v755_v30, %v756_v26  ;;  %v657_v38 = vadd.f32 %v656_v34, %v4903_v6  ;;  %v1464_v39 = vpack.c.bf16 %v1440_v35, %v958_v27  ;;  %v757_v33 = vmax.f32 %v655_v31, 0.0 }
 0x13e   : > { %v660_v40 = vpop.f32.mrf.mxu0  ;;  %v882_v41 = vsel %vm847_vm2, %v879_v12, %v881_v29  ;;  %3941 = vmatmul.mubr.msk.bf16.gmra.mxu0 %vm3939_vm13, %v3940_v36  ;;  %v1146_v12 = vand.u32 31, %v996_v54  ;;  %v1000_v54 = vadd.s32 184, %v4894_v1 }
 0x13f   : > { %v883_v32 = vrot.slane %v801_v37, 1  ;;  %v758_v42 = vmax.f32 %v657_v38, 0.0  ;;  %v661_v43 = vadd.f32 %v660_v40, %v4907_v7  ;;  %v1520_v44 = vrot.slane %v1464_v39, 7  ;;  %2039 = vmatprep.mubr.bf16.mxu0 %v4613_v4 }
 0x140   : > { %v662_v45 = vpop.f32.mrf.mxu0  ;;  %v2134_v46 = vrot.slane %v1464_v39, 1  ;;  %v960_v53 = vmax.f32 %v5097_v0, %v882_v41  ;;  %vm5145_vm14 = vcmp.lt.s32.totalorder %v1146_v12, 28 }
 0x141   : > { %v802_v47 = vmax.f32 %v757_v33, %v758_v42  ;;  %v663_v48 = vadd.f32 %v662_v45, %v4903_v6  ;;  %v1521_v49 = vsel %vm1506_vm3, %v1518_v10, %v1520_v44  ;;  %v884_v52 = vsel %vm847_vm2, %v881_v29, %v883_v32  ;;  %vm3942_vm15 = vmpackc.low %vm5145_vm14, %vm4614_vm6 }
 0x142   : > { %v664_v50 = vpop.f32.mrf.mxu0  ;;  %v5131_v58 = vsel %vm847_vm2, %v2132_v11, %v2134_v46  ;;  %v759_v56 = vmax.f32 %v661_v43, 0.0  ;;  %v961_v62 = vmax.f32 %v800_v20, %v884_v52 }
 0x143   : > { %v760_v60 = vmax.f32 %v663_v48, 0.0  ;;  %v665_v61 = vadd.f32 %v664_v50, %v4907_v7  ;;  %1757 = vmatmul.mubr.bf16.gmra.mxu1 %v1521_v49  ;;  %v885_v5 = vrot.slane %v802_v47, 1 }
 0x144   : > { %v666_v59 = vpop.f32.mrf.mxu0  ;;  %1766 = vmatprep.mubr.bf16.mxu1 %v4613_v4  ;;  %v1465_v0 = vpack.c.bf16 %v961_v62, %v960_v53 }
 0x145   : > { %v5135_v9 = vmax.f32 %v759_v56, %v760_v60  ;;  %v667_v63 = vadd.f32 %v666_v59, %v4903_v6  ;;  %v761_v8 = vmax.f32 %v665_v61, 0.0  ;;  %v886_v23 = vsel %vm847_vm2, %v883_v32, %v885_v5 }
 0x146   : > { %v670_v10 = vpop.f32.mrf.mxu0  ;;  %v1522_v15 = vrot.slane %v1465_v0, 7  ;;  %2040 = vmatmul.mubr.bf16.gmra.mxu0 %v1465_v0  ;;  %v2136_v18 = vrot.slane %v1465_v0, 1  ;;  %v962_v38 = vmax.f32 %v801_v37, %v886_v23 }
 0x147   : > { %v887_v11 = vrot.slane %v5135_v9, 1  ;;  %v762_v13 = vmax.f32 %v667_v63, 0.0  ;;  %v671_v14 = vadd.f32 %v670_v10, %v4907_v7  ;;  %2049 = vmatprep.mubr.bf16.mxu0 %v4613_v4 }
 0x148   : > { %v672_v17 = vpop.f32.mrf.mxu0  ;;  %v1523_v22 = vsel %vm1506_vm3, %v1520_v44, %v1522_v15  ;;  %v5150_v30 = vsel %vm847_vm2, %v2134_v46, %v2136_v18 }
 0x149   : > { %v804_v20 = vmax.f32 %v761_v8, %v762_v13  ;;  %v673_v21 = vadd.f32 %v672_v17, %v4903_v6  ;;  %v763_v24 = vmax.f32 %v671_v14, 0.0  ;;  %v888_v28 = vsel %vm847_vm2, %v885_v5, %v887_v11 }
 0x14a   : > { %v674_v27 = vpop.f32.mrf.mxu0  ;;  %v963_v35 = vmax.f32 %v802_v47, %v888_v28  ;;  %v1174_v14 = vand.u32 31, %v1000_v54 }
 0x14b   : > { %v889_v26 = vrot.slane %v804_v20, 1  ;;  %v764_v31 = vmax.f32 %v673_v21, 0.0  ;;  %v675_v34 = vadd.f32 %v674_v27, %v4907_v7  ;;  %1767 = vmatmul.mubr.bf16.gmra.mxu1 %v1523_v22 }
 0x14c   : > { %v676_v36 = vpop.f32.mrf.mxu0  ;;  %1776 = vmatprep.mubr.bf16.mxu1 %v4613_v4  ;;  %v1444_v40 = vsel %vm5145_vm14, %v963_v35, 0.0  ;;  %v3943_v43 = vpack.c.bf16 %v963_v35, %v962_v38  ;;  %vm5186_vm0 = vcmp.lt.s32.totalorder %v1174_v14, 28 }
 0x14d   : > { %v805_v39 = vmax.f32 %v763_v24, %v764_v31  ;;  %v677_v33 = vadd.f32 %v676_v36, %v4903_v6  ;;  %v765_v41 = vmax.f32 %v675_v34, 0.0  ;;  %v1466_v42 = vpack.c.bf16 %v1444_v40, %v962_v38  ;;  %vm3945_vm1 = vmpackc.low %vm5186_vm0, %vm4614_vm6 }
 0x14e   : > { %v680_v32 = vpop.f32.mrf.mxu0  ;;  %v890_v46 = vsel %vm847_vm2, %v887_v11, %v889_v26  ;;  %3944 = vmatmul.mubr.msk.bf16.gmra.mxu0 %vm3942_vm15, %v3943_v43 }
 0x14f   : > { %v891_v44 = vrot.slane %v805_v39, 1  ;;  %v766_v45 = vmax.f32 %v677_v33, 0.0  ;;  %v681_v37 = vadd.f32 %v680_v32, %v4907_v7  ;;  %v1524_v48 = vrot.slane %v1466_v42, 7  ;;  %2059 = vmatprep.mubr.bf16.mxu0 %v4613_v4 }
 0x150   : > { %v682_v47 = vpop.f32.mrf.mxu0  ;;  %v2138_v49 = vrot.slane %v1466_v42, 1  ;;  %v964_v61 = vmax.f32 %v5135_v9, %v890_v46 }
 0x151   : > { %v806_v50 = vmax.f32 %v765_v41, %v766_v45  ;;  %v683_v52 = vadd.f32 %v682_v47, %v4903_v6  ;;  %v892_v53 = vsel %vm847_vm2, %v889_v26, %v891_v44  ;;  %v1525_v60 = vsel %vm1506_vm3, %v1522_v15, %v1524_v48 }
 0x152   : > { %v684_v56 = vpop.f32.mrf.mxu0  ;;  %v965_v62 = vmax.f32 %v804_v20, %v892_v53  ;;  %v5169_v59 = vsel %vm847_vm2, %v2136_v18, %v2138_v49  ;;  %v767_v63 = vmax.f32 %v681_v37, 0.0 }
 0x153   : > { %v893_v5 = vrot.slane %v806_v50, 1  ;;  %v768_v0 = vmax.f32 %v683_v52, 0.0  ;;  %v685_v8 = vadd.f32 %v684_v56, %v4907_v7  ;;  %1777 = vmatmul.mubr.bf16.gmra.mxu1 %v1525_v60  ;;  %v1004_v56 = vadd.s32 216, %v4894_v1 }
 0x154   : > { %v686_v10 = vpop.f32.mrf.mxu0  ;;  %v1467_v12 = vpack.c.bf16 %v965_v62, %v964_v61  ;;  %1786 = vmatprep.mubr.bf16.mxu1 %v4613_v4 }
 0x155   : > { %v5173_v11 = vmax.f32 %v767_v63, %v768_v0  ;;  %v687_v13 = vadd.f32 %v686_v10, %v4903_v6  ;;  %v769_v9 = vmax.f32 %v685_v8, 0.0  ;;  %v894_v23 = vsel %vm847_vm2, %v891_v44, %v893_v5 }
 0x156   : > { %v690_v15 = vpop.f32.mrf.mxu0  ;;  %v1526_v17 = vrot.slane %v1467_v12, 7  ;;  %v2140_v18 = vrot.slane %v1467_v12, 1  ;;  %2060 = vmatmul.mubr.bf16.gmra.mxu0 %v1467_v12  ;;  %v966_v36 = vmax.f32 %v805_v39, %v894_v23 }
 0x157   : > { %v895_v20 = vrot.slane %v5173_v11, 1  ;;  %v770_v21 = vmax.f32 %v687_v13, 0.0  ;;  %v691_v22 = vadd.f32 %v690_v15, %v4907_v7  ;;  %2069 = vmatprep.mubr.bf16.mxu0 %v4613_v4 }
 0x158   : > { %v692_v24 = vpop.f32.mrf.mxu0  ;;  %v1527_v27 = vsel %vm1506_vm3, %v1524_v48, %v1526_v17  ;;  %v5181_v28 = vsel %vm847_vm2, %v2138_v49, %v2140_v18 }
 0x159   : > { %v808_v29 = vmax.f32 %v769_v9, %v770_v21  ;;  %v693_v26 = vadd.f32 %v692_v24, %v4903_v6  ;;  %v896_v31 = vsel %vm847_vm2, %v893_v5, %v895_v20  ;;  %v771_v40 = vmax.f32 %v691_v22, 0.0 }
 0x15a   : > { %v694_v35 = vpop.f32.mrf.mxu0  ;;  %v967_v38 = vmax.f32 %v806_v50, %v896_v31  ;;  %v1202_v22 = vand.u32 31, %v1004_v56 }
 0x15b   : > { %v897_v33 = vrot.slane %v808_v29, 1  ;;  %v772_v41 = vmax.f32 %v693_v26, 0.0  ;;  %v695_v32 = vadd.f32 %v694_v35, %v4907_v7  ;;  %1787 = vmatmul.mubr.bf16.gmra.mxu1 %v1527_v27 }
 0x15c   : > { %v696_v42 = vpop.f32.mrf.mxu0  ;;  %v1448_v43 = vsel %vm5186_vm0, %v967_v38, 0.0  ;;  %v3946_v44 = vpack.c.bf16 %v967_v38, %v966_v36  ;;  %1796 = vmatprep.mubr.bf16.mxu1 %v4613_v4  ;;  %vm5215_vm4 = vcmp.lt.s32.totalorder %v1202_v22, 28 }
 0x15d   : > { %v809_v45 = vmax.f32 %v771_v40, %v772_v41  ;;  %v697_v37 = vadd.f32 %v696_v42, %v4903_v6  ;;  %v898_v39 = vsel %vm847_vm2, %v895_v20, %v897_v33  ;;  %v1468_v47 = vpack.c.bf16 %v1448_v43, %v966_v36  ;;  %vm3948_vm5 = vmpackc.low %vm5215_vm4, %vm4614_vm6 }
 0x15e   : > { %v700_v46 = vpop.f32.mrf.mxu0  ;;  %v773_v49 = vmax.f32 %v695_v32, 0.0  ;;  %3947 = vmatmul.mubr.msk.bf16.gmra.mxu0 %vm3945_vm1, %v3946_v44  ;;  %v968_v8 = vmax.f32 %v5173_v11, %v898_v39 }
 0x15f   : > { %v899_v48 = vrot.slane %v809_v45, 1  ;;  %v774_v50 = vmax.f32 %v697_v37, 0.0  ;;  %v701_v52 = vadd.f32 %v700_v46, %v4907_v7  ;;  %v1528_v54 = vrot.slane %v1468_v47, 7  ;;  %2079 = vmatprep.mubr.bf16.mxu0 %v4613_v4 }
 0x160   : > { %v702_v53 = vpop.f32.mrf.mxu0  ;;  %v2142_v60 = vrot.slane %v1468_v47, 1 }
 0x161   : > { %v900_v61 = vsel %vm847_vm2, %v897_v33, %v899_v48  ;;  %v810_v62 = vmax.f32 %v773_v49, %v774_v50  ;;  %v703_v5 = vadd.f32 %v702_v53, %v4903_v6  ;;  %v1529_v0 = vsel %vm1506_vm3, %v1526_v17, %v1528_v54 }
 0x162   : > { %v704_v63 = vpop.f32.mrf.mxu0  ;;  %v969_v10 = vmax.f32 %v808_v29, %v900_v61  ;;  %v5207_v12 = vsel %vm847_vm2, %v2140_v18, %v2142_v60  ;;  %v775_v14 = vmax.f32 %v701_v52, 0.0 }
 0x163   : > { %v901_v13 = vrot.slane %v810_v62, 1  ;;  %v776_v9 = vmax.f32 %v703_v5, 0.0  ;;  %v705_v15 = vadd.f32 %v704_v63, %v4907_v7  ;;  %1797 = vmatmul.mubr.bf16.gmra.mxu1 %v1529_v0 }
 0x164   : > { %v706_v20 = vpop.f32.mrf.mxu0  ;;  %v1469_v21 = vpack.c.bf16 %v969_v10, %v968_v8  ;;  %1806 = vmatprep.mubr.bf16.mxu1 %v4613_v4 }
 0x165   : > { %v811_v23 = vmax.f32 %v775_v14, %v776_v9  ;;  %v707_v17 = vadd.f32 %v706_v20, %v4903_v6  ;;  %v902_v11 = vsel %vm847_vm2, %v899_v48, %v901_v13  ;;  %v777_v26 = vmax.f32 %v705_v15, 0.0 }
 0x166   : > { %v710_v24 = vpop.f32.mrf.mxu0  ;;  %v1530_v27 = vrot.slane %v1469_v21, 7  ;;  %v2144_v18 = vrot.slane %v1469_v21, 1  ;;  %2080 = vmatmul.mubr.bf16.gmra.mxu0 %v1469_v21  ;;  %v970_v43 = vmax.f32 %v809_v45, %v902_v11  ;;  %v1008_v45 = vadd.s32 248, %v4894_v1 }
 0x167   : > { %v903_v29 = vrot.slane %v811_v23, 1  ;;  %v778_v31 = vmax.f32 %v707_v17, 0.0  ;;  %v711_v34 = vadd.f32 %v710_v24, %v4907_v7  ;;  %2089 = vmatprep.mubr.bf16.mxu0 %v4613_v4 }
 0x168   : > { %v712_v35 = vpop.f32.mrf.mxu0  ;;  %v1531_v36 = vsel %vm1506_vm3, %v1528_v54, %v1530_v27  ;;  %v5220_v33 = vsel %vm847_vm2, %v2142_v60, %v2144_v18 }
 0x169   : > { %v904_v40 = vsel %vm847_vm2, %v901_v13, %v903_v29  ;;  %v812_v41 = vmax.f32 %v777_v26, %v778_v31  ;;  %v779_v32 = vmax.f32 %v711_v34, 0.0  ;;  %v713_v42 = vadd.f32 %v712_v35, %v4903_v6 }
 0x16a   : > { %v714_v44 = vpop.f32.mrf.mxu0  ;;  %v971_v37 = vmax.f32 %v810_v62, %v904_v40 }
 0x16b   : > { %v905_v39 = vrot.slane %v812_v41, 1  ;;  %v780_v46 = vmax.f32 %v713_v42, 0.0  ;;  %v715_v47 = vadd.f32 %v714_v44, %v4907_v7  ;;  %1807 = vmatmul.mubr.bf16.gmra.mxu1 %v1531_v36 }
 0x16c   : > { %v716_v48 = vpop.f32.mrf.mxu0  ;;  %v1452_v49 = vsel %vm5215_vm4, %v971_v37, 0.0  ;;  %v3949_v50 = vpack.c.bf16 %v971_v37, %v970_v43  ;;  %1816 = vmatprep.mubr.bf16.mxu1 %v4613_v4 }
 0x16d   : > { %v813_v52 = vmax.f32 %v779_v32, %v780_v46  ;;  %v717_v53 = vadd.f32 %v716_v48, %v4903_v6  ;;  %v1470_v54 = vpack.c.bf16 %v1452_v49, %v970_v43  ;;  %v906_v7 = vsel %vm847_vm2, %v903_v29, %v905_v39  ;;  %v4495_v49 = vld [vmem:[%s6057_s5 + $0x78] sm:$0xff]  }
 0x16e   : > { %v781_v60 = vmax.f32 %v715_v47, 0.0  ;;  %3950 = vmatmul.mubr.msk.bf16.gmra.mxu0 %vm3948_vm5, %v3949_v50  ;;  %v1230_v6 = vand.u32 31, %v1008_v45  ;;  %v972_v10 = vmax.f32 %v811_v23, %v906_v7  ;;  %v6062_v50 = vmov 0.0  }
 0x16f   : > { %v907_v56 = vrot.slane %v813_v52, 1  ;;  %v782_v61 = vmax.f32 %v717_v53, 0.0  ;;  %v1532_v62 = vrot.slane %v1470_v54, 7  ;;  %v2146_v5 = vrot.slane %v1470_v54, 1  ;;  %2099 = vmatprep.mubr.bf16.mxu0 %v4613_v4  ;;  %4207 = vmatprep.subr.bf16.mxu0 %v6062_v50 }
 0x170   : > { %vm1424_vm7 = vcmp.lt.s32.totalorder %v1230_v6, 28  ;;  %4227 = vmatprep.subr.bf16.mxu1 %v6062_v50  ;;  %4208 = vmatpush3.bf16.msra.mxu0 %v4495_v49 }
 0x171   : > { %v908_v63 = vsel %vm847_vm2, %v905_v39, %v907_v56  ;;  %v814_v0 = vmax.f32 %v781_v60, %v782_v61  ;;  %v1533_v8 = vsel %vm1506_vm3, %v1530_v27, %v1532_v62  ;;  %v5239_v14 = vsel %vm847_vm2, %v2144_v18, %v2146_v5  ;;  %vm3951_vm8 = vmpackc.low %vm1424_vm7, %vm4614_vm6  ;;  %4209 = vmatprep.subr.bf16.mxu0 %v6062_v50 }
 0x172   : > { %v973_v13 = vmax.f32 %v812_v41, %v908_v63 }
 0x173   : > { %v909_v9 = vrot.slane %v814_v0, 1  ;;  %1817 = vmatmul.mubr.bf16.gmra.mxu1 %v1533_v8 }
 0x174   : > { %v1471_v15 = vpack.c.bf16 %v973_v13, %v972_v10  ;;  %1826 = vmatprep.mubr.bf16.mxu1 %v4613_v4 }
 0x175   : > { %v910_v20 = vsel %vm847_vm2, %v907_v56, %v909_v9  ;;  %v943_v21 = vsel %vm847_vm2, %v909_v9, 0.0 }
 0x176   : > { %v974_v22 = vmax.f32 %v813_v52, %v910_v20  ;;  %v975_v17 = vmax.f32 %v814_v0, %v943_v21  ;;  %v1534_v11 = vrot.slane %v1471_v15, 7  ;;  %v2148_v24 = vrot.slane %v1471_v15, 1  ;;  %2100 = vmatmul.mubr.bf16.gmra.mxu0 %v1471_v15  ;;  %v4496_v0 = vld [vmem:[%s6057_s5 + $0x70] sm:$0xff]  }
 0x177   : > { %2109 = vmatprep.mubr.bf16.mxu0 %v4613_v4  ;;  %4210 = vmatpush3.bf16.msra.mxu0 %v4496_v0 }
 0x178   : > { %v1535_v23 = vsel %vm1506_vm3, %v1532_v62, %v1534_v11  ;;  %v1456_v27 = vsel %vm1424_vm7, %v975_v17, 0.0  ;;  %v5246_v18 = vsel %vm847_vm2, %v2146_v5, %v2148_v24  ;;  %v3952_v34 = vpack.c.bf16 %v975_v17, %v974_v22  ;;  %4211 = vmatprep.subr.bf16.mxu0 %v6062_v50 }
 0x179   : > { %v5249_v29 = vpack.c.bf16 %v1456_v27, %v974_v22 }
 0x17b   : > { %1827 = vmatmul.mubr.bf16.gmra.mxu1 %v1535_v23  ;;  %v2150_v26 = vrot.slane %v5249_v29, 1  ;;  %v1536_v35 = vrot.slane %v5249_v29, 7 }
 0x17c   : > { %1836 = vmatprep.mubr.bf16.mxu1 %v4613_v4 }
 0x17d   : > { %v5257_v31 = vsel %vm847_vm2, %v2148_v24, %v2150_v26  ;;  %v1537_v36 = vsel %vm1506_vm3, %v1534_v11, %v1536_v35  ;;  %v4497_v11 = vld [vmem:[%s6057_s5 + $0x38] sm:$0xff]   ;;  %v4498_v24 = vld [vmem:[%s6057_s5 + $0x68] sm:$0xff]   ;;  %vm4616_vm3 = vmmov 0  }
 0x17e   : > { %3953 = vmatmul.mubr.msk.bf16.gmra.mxu0 %vm3951_vm8, %v3952_v34 }
 0x17f   : > { %4212 = vmatpush3.bf16.msra.mxu0 %v4498_v24  ;;  %v4499_v24 = vld [vmem:[%s6057_s5 + $0x30] sm:$0xff]  }
 0x180   : > { %4213 = vmatprep.subr.bf16.mxu0 %v6062_v50 }
 0x183   : > { %1837 = vmatmul.mubr.bf16.gmra.mxu1 %v1537_v36  ;;  %4214 = vmatpush3.bf16.msra.mxu0 %v4500_v2 }
 0x184   : > { %2299 = vmatprep.mubr.bf16.mxu1 %v4613_v4 }
 0x18b   : > { %2300 = vmatmul.mubr.bf16.vlgmr.msra.gmra.mxu1 %v4986_v51 }
 0x18c   : > { %2309 = vmatprep.mubr.bf16.mxu1 %v4613_v4  ;;  %4228 = vmatpush3.bf16.msra.mxu1 %v4497_v11 }
 0x18d   : > { %4229 = vmatprep.subr.bf16.mxu1 %v6062_v50 }
 0x190   : > { %4230 = vmatpush3.bf16.msra.mxu1 %v4499_v24 }
 0x193   : > { %2310 = vmatmul.mubr.bf16.gmra.mxu1 %v5014_v16 }
 0x194   : > { %2319 = vmatprep.mubr.bf16.mxu1 %v4613_v4 }
 0x19b   : > { %2320 = vmatmul.mubr.bf16.gmra.mxu1 %v5054_v55 }
 0x19c   : > { %2329 = vmatprep.mubr.bf16.mxu1 %v4613_v4 }
 0x1a3   : > { %2330 = vmatmul.mubr.bf16.gmra.mxu1 %v5073_v25 }
 0x1a4   : > { %2339 = vmatprep.mubr.bf16.mxu1 %v4613_v4 }
 0x1ab   : > { %2340 = vmatmul.mubr.bf16.gmra.mxu1 %v5093_v57 }
 0x1ac   : > { %2349 = vmatprep.mubr.bf16.mxu1 %v4613_v4 }
 0x1b3   : > { %2350 = vmatmul.mubr.bf16.gmra.mxu1 %v5105_v19 }
 0x1b4   : > { %2359 = vmatprep.mubr.bf16.mxu1 %v4613_v4 }
 0x1bb   : > { %2360 = vmatmul.mubr.bf16.gmra.mxu1 %v5131_v58 }
 0x1bc   : > { %2369 = vmatprep.mubr.bf16.mxu1 %v4613_v4 }
 0x1c3   : > { %2370 = vmatmul.mubr.bf16.gmra.mxu1 %v5150_v30 }
 0x1c4   : > { %2379 = vmatprep.mubr.bf16.mxu1 %v4613_v4 }
 0x1c6   : > { %v5280_v16 = vpop.f32.mrf.mxu0 }
 0x1c8   : > { %v5278_v51 = vpop.f32.mrf.mxu1  ;;  %v5288_v57 = vpop.f32.mrf.mxu0 }
 0x1ca   : > { %v5282_v55 = vpop.f32.mrf.mxu1  ;;  %v5292_v58 = vpop.f32.mrf.mxu0 }
 0x1cb   : > { %2380 = vmatmul.mubr.bf16.gmra.mxu1 %v5169_v59 }
 0x1cc   : > { %2389 = vmatprep.mubr.bf16.mxu1 %v4613_v4  ;;  %v5286_v25 = vpop.f32.mrf.mxu1  ;;  %v5300_v40 = vpop.f32.mrf.mxu0 }
 0x1ce   : > { %v5290_v19 = vpop.f32.mrf.mxu1  ;;  %v5306_v32 = vpop.f32.mrf.mxu0 }
 0x1d3   : > { %v5294_v30 = vpop.f32.mrf.mxu1  ;;  %2390 = vmatmul.mubr.bf16.gmra.mxu1 %v5181_v28  ;;  %v5314_v28 = vpop.f32.mrf.mxu0 }
 0x1d4   : > { %2399 = vmatprep.mubr.bf16.mxu1 %v4613_v4 }
 0x1d5   : > { %v5298_v38 = vpop.f32.mrf.mxu1  ;;  %v5320_v39 = vpop.f32.mrf.mxu0 }
 0x1d7   : > { %v5302_v59 = vpop.f32.mrf.mxu1 }
 0x1d9   : > { %v5304_v41 = vpop.f32.mrf.mxu1 }
 0x1db   : > { %v5308_v42 = vpop.f32.mrf.mxu1  ;;  %2400 = vmatmul.mubr.bf16.gmra.mxu1 %v5207_v12  ;;  %v5328_v12 = vpop.f32.mrf.mxu0 }
 0x1dc   : > { %2409 = vmatprep.mubr.bf16.mxu1 %v4613_v4 }
 0x1dd   : > { %v5312_v43 = vpop.f32.mrf.mxu1 }
 0x1df   : > { %v5316_v44 = vpop.f32.mrf.mxu1 }
 0x1e1   : > { %v5318_v37 = vpop.f32.mrf.mxu1 }
 0x1e3   : > { %v5322_v46 = vpop.f32.mrf.mxu1  ;;  %2410 = vmatmul.mubr.bf16.gmra.mxu1 %v5220_v33  ;;  %v5339_v33 = vpop.f32.mrf.mxu0 }
 0x1e4   : > { %2419 = vmatprep.mubr.bf16.mxu1 %v4613_v4 }
 0x1e5   : > { %v5326_v47 = vpop.f32.mrf.mxu1  ;;  %v5348_v54 = vpop.f32.mrf.mxu0 }
 0x1e7   : > { %v5330_v48 = vpop.f32.mrf.mxu1  ;;  %v5354_v60 = vpop.f32.mrf.mxu0 }
 0x1e9   : > { %v5337_v52 = vpop.f32.mrf.mxu1  ;;  %v5362_v5 = vpop.f32.mrf.mxu0 }
 0x1eb   : > { %v5342_v53 = vpop.f32.mrf.mxu1  ;;  %2420 = vmatmul.mubr.bf16.gmra.mxu1 %v5239_v14  ;;  %v5371_v8 = vpop.f32.mrf.mxu0 }
 0x1ec   : > { %2429 = vmatprep.mubr.bf16.mxu1 %v4613_v4 }
 0x1ed   : > { %v5346_v45 = vpop.f32.mrf.mxu1  ;;  %v5380_v14 = vpop.f32.mrf.mxu0 }
 0x1ef   : > { %v5350_v7 = vpop.f32.mrf.mxu1  ;;  %v5386_v20 = vpop.f32.mrf.mxu0 }
 0x1f1   : > { %v5352_v56 = vpop.f32.mrf.mxu1  ;;  %v5395_v17 = vpop.f32.mrf.mxu0 }
 0x1f3   : > { %v5356_v61 = vpop.f32.mrf.mxu1  ;;  %2430 = vmatmul.mubr.bf16.gmra.mxu1 %v5246_v18  ;;  %v5407_v27 = vpop.f32.mrf.mxu0 }
 0x1f4   : > { %2439 = vmatprep.mubr.bf16.mxu1 %v4613_v4 }
 0x1f5   : > { %v5360_v62 = vpop.f32.mrf.mxu1 }
 0x1f7   : > { %v5364_v63 = vpop.f32.mrf.mxu1 }
 0x1f9   : > { %v5369_v6 = vpop.f32.mrf.mxu1 }
 0x1fb   : > { %v5374_v10 = vpop.f32.mrf.mxu1  ;;  %2440 = vmatmul.mubr.bf16.gmra.mxu1 %v5257_v31 }
 0x1fc   : > { %2449 = vmatprep.mubr.bf16.mxu1 %v4613_v4 }
 0x1fd   : > { %v5378_v13 = vpop.f32.mrf.mxu1 }
 0x1fe   : > { %6080 = vst [vmem:[#allocation6_spill] sm:$0xff] %v5378_v13  ;;  %v4507_v13 = vld [vmem:[%s6057_s5 + $0x10] sm:$0xff]  }
 0x1ff   : > { %v5382_v9 = vpop.f32.mrf.mxu1 }
 0x200   : > { %6081 = vst [vmem:[#allocation7_spill] sm:$0xff] %v5382_v9 }
 0x201   : > { %v5384_v15 = vpop.f32.mrf.mxu1 }
 0x202   : > { %6082 = vst [vmem:[#allocation8_spill] sm:$0xff] %v5384_v15 }
 0x203   : > { %v5388_v21 = vpop.f32.mrf.mxu1  ;;  %3986 = vmatmul.mubr.msk.bf16.gmra.mxu1 %vm847_vm2, %v2150_v26  ;;  %v5415_v26 = vpop.f32.mrf.mxu0  ;;  %vm2728_vm2 = vcmask 1045504  }
 0x204   : > { %6083 = vst [vmem:[#allocation9_spill] sm:$0xff] %v5388_v21 }
 0x205   : > { %v5393_v22 = vpop.f32.mrf.mxu1  ;;  %v5421_v35 = vpop.f32.mrf.mxu0 }
 0x206   : > { %6084 = vst [vmem:[#allocation10_spill] sm:$0xff] %v5393_v22 }
 0x207   : > { %v5397_v4 = vpop.f32.mrf.mxu1  ;;  %v5427_v0 = vpop.f32.mrf.mxu0 }
 0x208   : > { %6085 = vst [vmem:[#allocation11_spill] sm:$0xff] %v5397_v4 }
 0x209   : > { %v5405_v23 = vpop.f32.mrf.mxu1  ;;  %v5439_v50 = vpop.f32.mrf.mxu0 }
 0x20a   : > { %6086 = vst [vmem:[#allocation12_spill] sm:$0xff] %v5405_v23 }
 0x20b   : > { %v5411_v18 = vpop.f32.mrf.mxu1 }
 0x20c   : > { %6087 = vst [vmem:[#allocation13_spill] sm:$0xff] %v5411_v18 }
 0x20d   : > { %v5413_v29 = vpop.f32.mrf.mxu1 }
 0x20e   : > { %6088 = vst [vmem:[#allocation14_spill] sm:$0xff] %v5413_v29 }
 0x20f   : > { %v5417_v31 = vpop.f32.mrf.mxu1 }
 0x210   : > { %6089 = vst [vmem:[#allocation15_spill] sm:$0xff] %v5417_v31 }
 0x211   : > { %v5419_v34 = vpop.f32.mrf.mxu1 }
 0x212   : > { %6090 = vst [vmem:[#allocation16_spill] sm:$0xff] %v5419_v34  ;;  %v5447_v34 = vpop.f32.mrf.mxu0 }
 0x213   : > { %v5423_v36 = vpop.f32.mrf.mxu1 }
 0x214   : > { %6091 = vst [vmem:[#allocation17_spill] sm:$0xff] %v5423_v36  ;;  %v6095_v36 = vmov 0.0   ;;  %v5453_v18 = vpop.f32.mrf.mxu0 }
 0x215   : > { %v5425_v49 = vpop.f32.mrf.mxu1  ;;  %4231 = vmatprep.subr.bf16.mxu1 %v6095_v36  ;;  %4215 = vmatprep.subr.bf16.mxu0 %v6095_v36 }
 0x216   : > { %6092 = vst [vmem:[#allocation18_spill] sm:$0xff] %v5425_v49  ;;  %4223 = vmatprep.mubr.msk.bf16.mxu0 %vm4616_vm3, %v6095_v36  ;;  %4243 = vmatprep.mubr.msk.bf16.mxu1 %vm4616_vm3, %v6095_v36 }
 0x217   : > { %v5429_v11 = vpop.f32.mrf.mxu1 }
 0x218   : > { %6093 = vst [vmem:[#allocation19_spill] sm:$0xff] %v5429_v11 }
 0x219   : > { %v5437_v3 = vpop.f32.mrf.mxu1 }
 0x21a   : > { %6094 = vst [vmem:[#allocation20_spill] sm:$0xff] %v5437_v3  ;;  %v5459_v3 = vpop.f32.mrf.mxu0 }
 0x21b   : > { %v5443_v49 = vpop.f32.mrf.mxu1 }
 0x21c   : > { %6096 = vst [vmem:[#allocation21_spill] sm:$0xff] %v5443_v49 }
 0x21d   : > { %v5445_v11 = vpop.f32.mrf.mxu1 }
 0x21e   : > { %6097 = vst [vmem:[#allocation22_spill] sm:$0xff] %v5445_v11  ;;  %v4501_v11 = vld [vmem:[%s6057_s5 + $0x28] sm:$0xff]  }
 0x21f   : > { %v5449_v31 = vpop.f32.mrf.mxu1  ;;  %4232 = vmatpush3.bf16.msra.mxu1 %v4501_v11 }
 0x220   : > { %6098 = vst [vmem:[#allocation23_spill] sm:$0xff] %v5449_v31  ;;  %v4502_v31 = vld [vmem:[%s6057_s5 + $0x58] sm:$0xff]   ;;  %4233 = vmatprep.subr.bf16.mxu1 %v6095_v36 }
 0x221   : > { %v5451_v29 = vpop.f32.mrf.mxu1  ;;  %4216 = vmatpush3.bf16.msra.mxu0 %v4502_v31 }
 0x222   : > { %6099 = vst [vmem:[#allocation24_spill] sm:$0xff] %v5451_v29  ;;  %v5471_v29 = vpop.f32.mrf.mxu0  ;;  %4217 = vmatprep.subr.bf16.mxu0 %v6095_v36 }
 0x223   : > { %v5455_v24 = vpop.f32.mrf.mxu1  ;;  %6104 = vst [vmem:[#allocation29_spill] sm:$0xff] %v5471_v29 }
 0x224   : > { %6100 = vst [vmem:[#allocation25_spill] sm:$0xff] %v5455_v24  ;;  %v5479_v24 = vpop.f32.mrf.mxu0 }
 0x225   : > { %v5457_v2 = vpop.f32.mrf.mxu1  ;;  %6107 = vst [vmem:[#allocation32_spill] sm:$0xff] %v5479_v24 }
 0x226   : > { %6101 = vst [vmem:[#allocation26_spill] sm:$0xff] %v5457_v2  ;;  %v5485_v21 = vpop.f32.mrf.mxu0 }
 0x227   : > { %v5461_v23 = vpop.f32.mrf.mxu1  ;;  %6110 = vst [vmem:[#allocation35_spill] sm:$0xff] %v5485_v21 }
 0x228   : > { %6102 = vst [vmem:[#allocation27_spill] sm:$0xff] %v5461_v23 }
 0x229   : > { %v5469_v49 = vpop.f32.mrf.mxu1 }
 0x22a   : > { %6103 = vst [vmem:[#allocation28_spill] sm:$0xff] %v5469_v49  ;;  %v5491_v49 = vpop.f32.mrf.mxu0 }
 0x22b   : > { %v5475_v2 = vpop.f32.mrf.mxu1  ;;  %6113 = vst [vmem:[#allocation38_spill] sm:$0xff] %v5491_v49 }
 0x22c   : > { %6105 = vst [vmem:[#allocation30_spill] sm:$0xff] %v5475_v2 }
 0x22d   : > { %v5477_v23 = vpop.f32.mrf.mxu1 }
 0x22e   : > { %6106 = vst [vmem:[#allocation31_spill] sm:$0xff] %v5477_v23  ;;  %v4503_v23 = vld [vmem:[%s6057_s5 + $0x20] sm:$0xff]  }
 0x22f   : > { %v5481_v4 = vpop.f32.mrf.mxu1  ;;  %4234 = vmatpush3.bf16.msra.mxu1 %v4503_v23 }
 0x230   : > { %6108 = vst [vmem:[#allocation33_spill] sm:$0xff] %v5481_v4  ;;  %v4504_v4 = vld [vmem:[%s6057_s5 + $0x50] sm:$0xff]   ;;  %4235 = vmatprep.subr.bf16.mxu1 %v6095_v36 }
 0x231   : > { %v5483_v22 = vpop.f32.mrf.mxu1  ;;  %4218 = vmatpush3.bf16.msra.mxu0 %v4504_v4 }
 0x232   : > { %6109 = vst [vmem:[#allocation34_spill] sm:$0xff] %v5483_v22  ;;  %v5503_v22 = vpop.f32.mrf.mxu0  ;;  %4219 = vmatprep.subr.bf16.mxu0 %v6095_v36 }
 0x233   : > { %v5487_v11 = vpop.f32.mrf.mxu1  ;;  %6116 = vst [vmem:[#allocation41_spill] sm:$0xff] %v5503_v22 }
 0x234   : > { %6111 = vst [vmem:[#allocation36_spill] sm:$0xff] %v5487_v11  ;;  %v5511_v11 = vpop.f32.mrf.mxu0 }
 0x235   : > { %v5489_v31 = vpop.f32.mrf.mxu1  ;;  %6119 = vst [vmem:[#allocation44_spill] sm:$0xff] %v5511_v11  ;;  %v1964_v11 = vadd.f32 %v5288_v57, %v5282_v55  ;;  %v1968_v55 = vadd.f32 %v5300_v40, %v5290_v19  ;;  %v4509_v19 = vld [vmem:[%s6057_s5 + $0x8] sm:$0xff]  }
 0x236   : > { %6112 = vst [vmem:[#allocation37_spill] sm:$0xff] %v5489_v31  ;;  %v5517_v9 = vpop.f32.mrf.mxu0 }
 0x237   : > { %v5493_v15 = vpop.f32.mrf.mxu1  ;;  %6122 = vst [vmem:[#allocation47_spill] sm:$0xff] %v5517_v9 }
 0x238   : > { %6114 = vst [vmem:[#allocation39_spill] sm:$0xff] %v5493_v15 }
 0x239   : > { %v5501_v2 = vpop.f32.mrf.mxu1 }
 0x23a   : > { %6115 = vst [vmem:[#allocation40_spill] sm:$0xff] %v5501_v2  ;;  %v5523_v2 = vpop.f32.mrf.mxu0 }
 0x23b   : > { %v5507_v31 = vpop.f32.mrf.mxu1  ;;  %6125 = vst [vmem:[#allocation50_spill] sm:$0xff] %v5523_v2 }
 0x23c   : > { %6117 = vst [vmem:[#allocation42_spill] sm:$0xff] %v5507_v31 }
 0x23d   : > { %v5509_v15 = vpop.f32.mrf.mxu1 }
 0x23e   : > { %6118 = vst [vmem:[#allocation43_spill] sm:$0xff] %v5509_v15  ;;  %v2524_v15 = vld [vmem:[%s6056_s4] sm:$0x3] }
 0x23f   : > { %v5513_v49 = vpop.f32.mrf.mxu1 }
 0x240   : > { %6120 = vst [vmem:[#allocation45_spill] sm:$0xff] %v5513_v49  ;;  %v4505_v49 = vld [vmem:[%s6057_s5 + $0x18] sm:$0xff]  }
 0x241   : > { %v5515_v21 = vpop.f32.mrf.mxu1  ;;  %4236 = vmatpush3.bf16.msra.mxu1 %v4505_v49 }
 0x242   : > { %6121 = vst [vmem:[#allocation46_spill] sm:$0xff] %v5515_v21  ;;  %v4506_v21 = vld [vmem:[%s6057_s5 + $0x48] sm:$0xff]   ;;  %4237 = vmatprep.subr.bf16.mxu1 %v6095_v36 }
 0x243   : > { %v5519_v23 = vpop.f32.mrf.mxu1  ;;  %4220 = vmatpush3.bf16.msra.mxu0 %v4506_v21  ;;  %v6130_v21 = vsub.s32 1, %v4894_v1 }
 0x244   : > { %6123 = vst [vmem:[#allocation48_spill] sm:$0xff] %v5519_v23  ;;  %v6129_v23 = vsub.s32 0, %v4894_v1  ;;  %4221 = vmatprep.subr.bf16.mxu0 %v6095_v36 }
 0x245   : > { %v5521_v4 = vpop.f32.mrf.mxu1  ;;  %v5552_v49 = vrot.slane %v2524_v15, %v6130_v21  ;;  %4238 = vmatpush3.bf16.msra.mxu1 %v4507_v13  ;;  %v1974_v13 = vadd.f32 %v5314_v28, %v5298_v38  ;;  %v4508_v38 = vld [vmem:[%s6057_s5 + $0x40] sm:$0xff]  }
 0x246   : > { %6124 = vst [vmem:[#allocation49_spill] sm:$0xff] %v5521_v4  ;;  %v1962_v4 = vadd.f32 %v5280_v16, %v5278_v51  ;;  %v5544_v2 = vrot.slane %v2524_v15, %v6129_v23  ;;  %v1966_v16 = vadd.f32 %v5292_v58, %v5286_v25  ;;  %v1972_v25 = vadd.f32 %v5306_v32, %v5294_v30  ;;  %v4510_v28 = vld [vmem:[%s6057_s5] sm:$0xff]  }
 0x247   : > { %v5525_v22 = vpop.f32.mrf.mxu1  ;;  %4239 = vmatprep.subr.bf16.mxu1 %v6095_v36  ;;  %4222 = vmatpush3.bf16.msra.mxu0 %v4508_v38 }
 0x248   : > { %6126 = vst [vmem:[#allocation51_spill] sm:$0xff] %v5525_v22  ;;  %v5540_v22 = vpop.f32.mrf.mxu0  ;;  %4247 = vmatprep.subr.bf16.mxu0 %v6095_v36 }
 0x249   : > { %v5536_v31 = vpop.f32.mrf.mxu1  ;;  %6128 = vst [vmem:[#allocation53_spill] sm:$0xff] %v5540_v22  ;;  %4240 = vmatpush3.bf16.msra.mxu1 %v4509_v19 }
 0x24a   : > { %6127 = vst [vmem:[#allocation52_spill] sm:$0xff] %v5536_v31  ;;  %v5556_v22 = vpop.f32.mrf.mxu0  ;;  %4241 = vmatprep.subr.bf16.mxu1 %v6095_v36 }
 0x24b   : > { %v2301_v9 = vpop.f32.mrf.mxu1 }
 0x24c   : > { %v2460_v31 = vadd.f32 %v2301_v9, %v1962_v4  ;;  %v5568_v9 = vpop.f32.mrf.mxu0 }
 0x24d   : > { %v2303_v51 = vpop.f32.mrf.mxu1  ;;  %4242 = vmatpush3.bf16.msra.mxu1 %v4510_v28 }
 0x24e   : > { %v2536_v23 = vadd.f32 %v5544_v2, %v2460_v31  ;;  %v2461_v24 = vadd.f32 %v2303_v51, %v1964_v11  ;;  %v5580_v51 = vpop.f32.mrf.mxu0  ;;  %4267 = vmatprep.subr.bf16.mxu1 %v6095_v36 }
 0x24f   : > { %v2305_v29 = vpop.f32.mrf.mxu1 }
 0x250   : > { %v2537_v1 = vadd.f32 %v5552_v49, %v2461_v24  ;;  %v2462_v57 = vadd.f32 %v2305_v29, %v1966_v16  ;;  %v2600_v15 = vmax.f32 %v2536_v23, 0.0  ;;  %v1976_v24 = vadd.f32 %v5320_v39, %v5302_v59 }
 0x251   : > { %v2307_v58 = vpop.f32.mrf.mxu1  ;;  %v1978_v59 = vadd.f32 %v5328_v12, %v5304_v41 }
 0x252   : > { %v2601_v11 = vmax.f32 %v2537_v1, 0.0  ;;  %v2538_v31 = vadd.f32 %v5544_v2, %v2462_v57  ;;  %v2463_v4 = vadd.f32 %v2307_v58, %v1968_v55 }
 0x253   : > { %v2311_v40 = vpop.f32.mrf.mxu1 }
 0x254   : > { %v2664_v29 = vmax.f32 %v2600_v15, %v2601_v11  ;;  %v2539_v30 = vadd.f32 %v5552_v49, %v2463_v4  ;;  %v2464_v32 = vadd.f32 %v2311_v40, %v1972_v25  ;;  %v2602_v16 = vmax.f32 %v2538_v31, 0.0  ;;  %v5596_v4 = vpop.f32.mrf.mxu0 }
 0x255   : > { %v2313_v21 = vpop.f32.mrf.mxu1 }
 0x256   : > { %v2603_v23 = vmax.f32 %v2539_v30, 0.0  ;;  %v2540_v55 = vadd.f32 %v5544_v2, %v2464_v32  ;;  %v2465_v1 = vadd.f32 %v2313_v21, %v1974_v13  ;;  %v2729_v15 = vrot.slane %v2664_v29, 2  ;;  %v5609_v28 = vpop.f32.mrf.mxu0 }
 0x257   : > { %v2315_v39 = vpop.f32.mrf.mxu1  ;;  %v1982_v13 = vadd.f32 %v5339_v33, %v5308_v42  ;;  %v1984_v32 = vadd.f32 %v5348_v54, %v5312_v43  ;;  %v1988_v43 = vadd.f32 %v5362_v5, %v5318_v37  ;;  %v1992_v5 = vadd.f32 %v5371_v8, %v5322_v46 }
 0x258   : > { %v2665_v57 = vmax.f32 %v2602_v16, %v2603_v23  ;;  %v2541_v25 = vadd.f32 %v5552_v49, %v2465_v1  ;;  %v2466_v58 = vadd.f32 %v2315_v39, %v1976_v24  ;;  %v2604_v11 = vmax.f32 %v2540_v55, 0.0 }
 0x259   : > { %v2317_v31 = vpop.f32.mrf.mxu1  ;;  %v1986_v23 = vadd.f32 %v5354_v60, %v5316_v44 }
 0x25a   : > { %v2730_v41 = vrot.slane %v2665_v57, 2  ;;  %v2605_v12 = vmax.f32 %v2541_v25, 0.0  ;;  %v2542_v19 = vadd.f32 %v5544_v2, %v2466_v58  ;;  %v2467_v40 = vadd.f32 %v2317_v31, %v1978_v59 }
 0x25b   : > { %v2321_v30 = vpop.f32.mrf.mxu1 }
 0x25c   : > { %v2731_v24 = vsel %vm2728_vm2, %v2729_v15, %v2730_v41  ;;  %v2666_v21 = vmax.f32 %v2604_v11, %v2605_v12  ;;  %v2543_v16 = vadd.f32 %v5552_v49, %v2467_v40  ;;  %v2468_v1 = vadd.f32 %v2321_v30, %v1982_v13  ;;  %v5616_v12 = vpop.f32.mrf.mxu0 }
 0x25d   : > { %v2825_v55 = vmax.f32 %v2664_v29, %v2731_v24  ;;  %v2323_v38 = vpop.f32.mrf.mxu1  ;;  %v2606_v39 = vmax.f32 %v2542_v19, 0.0 }
 0x25e   : > { %v2732_v59 = vrot.slane %v2666_v21, 2  ;;  %v2607_v42 = vmax.f32 %v2543_v16, 0.0  ;;  %v2469_v33 = vadd.f32 %v2323_v38, %v1984_v32  ;;  %v2544_v54 = vadd.f32 %v5544_v2, %v2468_v1  ;;  %v5627_v38 = vpop.f32.mrf.mxu0 }
 0x25f   : > { %2857 = vst [vmem:[#allocation2] sm:$0xff] %v2825_v55  ;;  %v2325_v25 = vpop.f32.mrf.mxu1  ;;  %v1996_v16 = vadd.f32 %v5386_v20, %v5330_v48 }
 0x260   : > { %v2733_v58 = vsel %vm2728_vm2, %v2730_v41, %v2732_v59  ;;  %v2667_v15 = vmax.f32 %v2606_v39, %v2607_v42  ;;  %v2545_v44 = vadd.f32 %v5552_v49, %v2469_v33  ;;  %v2470_v60 = vadd.f32 %v2325_v25, %v1986_v23 }
 0x261   : > { %v2826_v29 = vmax.f32 %v2665_v57, %v2733_v58  ;;  %v2608_v11 = vmax.f32 %v2544_v54, 0.0  ;;  %v2327_v31 = vpop.f32.mrf.mxu1  ;;  %v1994_v41 = vadd.f32 %v5380_v14, %v5326_v47  ;;  %v1998_v47 = vadd.f32 %v5395_v17, %v5337_v52  ;;  %v5634_v58 = vpop.f32.mrf.mxu0 }
 0x262   : > { %v2734_v19 = vrot.slane %v2667_v15, 2  ;;  %v2609_v40 = vmax.f32 %v2545_v44, 0.0  ;;  %v2546_v13 = vadd.f32 %v5544_v2, %v2470_v60  ;;  %v2471_v37 = vadd.f32 %v2327_v31, %v1988_v43 }
 0x263   : > { %2858 = vst [vmem:[#allocation2 + $0x8] sm:$0xff] %v2826_v29  ;;  %v2331_v30 = vpop.f32.mrf.mxu1  ;;  %v2002_v17 = vadd.f32 %v5407_v27, %v5342_v53  ;;  %v2004_v31 = vadd.f32 %v5415_v26, %v5346_v45  ;;  %v2008_v45 = vadd.f32 %v5427_v0, %v5352_v56  ;;  %v2012_v0 = vadd.f32 %v5439_v50, %v5356_v61 }
 0x264   : > { %v2735_v32 = vsel %vm2728_vm2, %v2732_v59, %v2734_v19  ;;  %v2668_v57 = vmax.f32 %v2608_v11, %v2609_v40  ;;  %v2547_v24 = vadd.f32 %v5552_v49, %v2471_v37  ;;  %v2472_v55 = vadd.f32 %v2331_v30, %v1992_v5 }
 0x265   : > { %v2827_v23 = vmax.f32 %v2666_v21, %v2735_v32  ;;  %v2333_v1 = vpop.f32.mrf.mxu1  ;;  %v2610_v46 = vmax.f32 %v2546_v13, 0.0  ;;  %v2006_v13 = vadd.f32 %v5421_v35, %v5350_v7 }
 0x266   : > { %v2736_v39 = vrot.slane %v2668_v57, 2  ;;  %v2611_v8 = vmax.f32 %v2547_v24, 0.0  ;;  %v2473_v42 = vadd.f32 %v2333_v1, %v1994_v41  ;;  %v2548_v14 = vadd.f32 %v5544_v2, %v2472_v55  ;;  %v5645_v41 = vpop.f32.mrf.mxu0 }
 0x267   : > { %2859 = vst [vmem:[#allocation2 + $0x10] sm:$0xff] %v2827_v23  ;;  %v2335_v59 = vpop.f32.mrf.mxu1 }
 0x268   : > { %v2737_v33 = vsel %vm2728_vm2, %v2734_v19, %v2736_v39  ;;  %v2669_v43 = vmax.f32 %v2610_v46, %v2611_v8  ;;  %v2549_v48 = vadd.f32 %v5552_v49, %v2473_v42  ;;  %v2474_v20 = vadd.f32 %v2335_v59, %v1996_v16  ;;  %v5652_v46 = vpop.f32.mrf.mxu0 }
 0x269   : > { %v2828_v21 = vmax.f32 %v2667_v15, %v2737_v33  ;;  %v2612_v54 = vmax.f32 %v2548_v14, 0.0  ;;  %v2337_v25 = vpop.f32.mrf.mxu1  ;;  %v2014_v59 = vadd.f32 %v5447_v34, %v5360_v62  ;;  %v2018_v62 = vadd.f32 %v5459_v3, %v5369_v6  ;;  %v6131_v6 = vld [vmem:[#allocation29_spill] sm:$0xff] }
 0x26a   : > { %v2738_v44 = vrot.slane %v2669_v43, 2  ;;  %v2613_v60 = vmax.f32 %v2549_v48, 0.0  ;;  %v2550_v29 = vadd.f32 %v5544_v2, %v2474_v20  ;;  %v2475_v52 = vadd.f32 %v2337_v25, %v1998_v47 }
 0x26b   : > { %2860 = vst [vmem:[#allocation2 + $0x18] sm:$0xff] %v2828_v21  ;;  %v2341_v11 = vpop.f32.mrf.mxu1  ;;  %v2016_v20 = vadd.f32 %v5453_v18, %v5364_v63 }
 0x26c   : > { %v2739_v19 = vsel %vm2728_vm2, %v2736_v39, %v2738_v44  ;;  %v2670_v15 = vmax.f32 %v2612_v54, %v2613_v60  ;;  %v2551_v40 = vadd.f32 %v5552_v49, %v2475_v52  ;;  %v2476_v5 = vadd.f32 %v2341_v11, %v2002_v17 }
 0x26d   : > { %v2829_v37 = vmax.f32 %v2668_v57, %v2739_v19  ;;  %v2343_v30 = vpop.f32.mrf.mxu1  ;;  %v2614_v53 = vmax.f32 %v2550_v29, 0.0 }
 0x26e   : > { %v2740_v32 = vrot.slane %v2670_v15, 2  ;;  %v2615_v27 = vmax.f32 %v2551_v40, 0.0  ;;  %v2477_v24 = vadd.f32 %v2343_v30, %v2004_v31  ;;  %v2552_v26 = vadd.f32 %v5544_v2, %v2476_v5 }
 0x26f   : > { %2861 = vst [vmem:[#allocation2 + $0x20] sm:$0xff] %v2829_v37  ;;  %v2345_v16 = vpop.f32.mrf.mxu1  ;;  %v2022_v30 = vadd.f32 %v6131_v6, %v5374_v10 }
 0x270   : > { %v2741_v23 = vsel %vm2728_vm2, %v2738_v44, %v2740_v32  ;;  %v2671_v55 = vmax.f32 %v2614_v53, %v2615_v27  ;;  %v2553_v7 = vadd.f32 %v5552_v49, %v2477_v24  ;;  %v2478_v35 = vadd.f32 %v2345_v16, %v2006_v13  ;;  %v5663_v44 = vpop.f32.mrf.mxu0  ;;  %v6132_v53 = vld [vmem:[#allocation6_spill] sm:$0xff]  ;;  %v6133_v27 = vld [vmem:[#allocation32_spill] sm:$0xff] }
 0x271   : > { %v2830_v57 = vmax.f32 %v2669_v43, %v2741_v23  ;;  %v2616_v1 = vmax.f32 %v2552_v26, 0.0  ;;  %v2347_v39 = vpop.f32.mrf.mxu1  ;;  %v2024_v24 = vadd.f32 %v6133_v27, %v6132_v53  ;;  %v6134_v23 = vld [vmem:[#allocation7_spill] sm:$0xff] }
 0x272   : > { %v2742_v8 = vrot.slane %v2671_v55, 2  ;;  %v2617_v42 = vmax.f32 %v2553_v7, 0.0  ;;  %v2554_v47 = vadd.f32 %v5544_v2, %v2478_v35  ;;  %v2479_v56 = vadd.f32 %v2347_v39, %v2008_v45  ;;  %v5670_v40 = vpop.f32.mrf.mxu0 }
 0x273   : > { %2862 = vst [vmem:[#allocation2 + $0x28] sm:$0xff] %v2830_v57  ;;  %v2351_v14 = vpop.f32.mrf.mxu1 }
 0x274   : > { %v2743_v33 = vsel %vm2728_vm2, %v2740_v32, %v2742_v8  ;;  %v2672_v43 = vmax.f32 %v2616_v1, %v2617_v42  ;;  %v2555_v48 = vadd.f32 %v5552_v49, %v2479_v56  ;;  %v2480_v54 = vadd.f32 %v2351_v14, %v2012_v0  ;;  %v5681_v39 = vpop.f32.mrf.mxu0  ;;  %v6136_v56 = vld [vmem:[#allocation8_spill] sm:$0xff]  ;;  %v6137_v0 = vld [vmem:[#allocation38_spill] sm:$0xff] }
 0x275   : > { %v2831_v21 = vmax.f32 %v2670_v15, %v2743_v33  ;;  %v2353_v25 = vpop.f32.mrf.mxu1  ;;  %v2618_v50 = vmax.f32 %v2554_v47, 0.0  ;;  %v2028_v14 = vadd.f32 %v6137_v0, %v6136_v56 }
 0x276   : > { %v2744_v60 = vrot.slane %v2672_v43, 2  ;;  %v2619_v61 = vmax.f32 %v2555_v48, 0.0  ;;  %v2481_v29 = vadd.f32 %v2353_v25, %v2014_v59  ;;  %v2556_v34 = vadd.f32 %v5544_v2, %v2480_v54 }
 0x277   : > { %2863 = vst [vmem:[#allocation2 + $0x30] sm:$0xff] %v2831_v21  ;;  %v2355_v52 = vpop.f32.mrf.mxu1 }
 0x278   : > { %v2745_v17 = vsel %vm2728_vm2, %v2742_v8, %v2744_v60  ;;  %v2673_v11 = vmax.f32 %v2618_v50, %v2619_v61  ;;  %v2557_v63 = vadd.f32 %v5552_v49, %v2481_v29  ;;  %v2482_v18 = vadd.f32 %v2355_v52, %v2016_v20  ;;  %v5688_v50 = vpop.f32.mrf.mxu0  ;;  %v6138_v52 = vld [vmem:[#allocation9_spill] sm:$0xff] }
 0x279   : > { %v2832_v31 = vmax.f32 %v2671_v55, %v2745_v17  ;;  %v2620_v19 = vmax.f32 %v2556_v34, 0.0  ;;  %v2357_v15 = vpop.f32.mrf.mxu1  ;;  %v6135_v55 = vld [vmem:[#allocation35_spill] sm:$0xff]  ;;  %v6139_v17 = vld [vmem:[#allocation41_spill] sm:$0xff] }
 0x27a   : > { %v2746_v13 = vrot.slane %v2673_v11, 2  ;;  %v2621_v37 = vmax.f32 %v2557_v63, 0.0  ;;  %v2558_v5 = vadd.f32 %v5544_v2, %v2482_v18  ;;  %v2483_v3 = vadd.f32 %v2357_v15, %v2018_v62  ;;  %v5699_v27 = vpop.f32.mrf.mxu0 }
 0x27b   : > { %2864 = vst [vmem:[#allocation2 + $0x38] sm:$0xff] %v2832_v31  ;;  %v2361_v32 = vpop.f32.mrf.mxu1  ;;  %v2026_v7 = vadd.f32 %v6135_v55, %v6134_v23  ;;  %v2032_v63 = vadd.f32 %v6139_v17, %v6138_v52  ;;  %v6140_v31 = vld [vmem:[#allocation10_spill] sm:$0xff]  ;;  %v6144_v55 = vld [vmem:[#allocation12_spill] sm:$0xff]  ;;  %v6149_v52 = vld [vmem:[#allocation15_spill] sm:$0xff] }
 0x27c   : > { %v2747_v45 = vsel %vm2728_vm2, %v2744_v60, %v2746_v13  ;;  %v2674_v26 = vmax.f32 %v2620_v19, %v2621_v37  ;;  %v2559_v16 = vadd.f32 %v5552_v49, %v2483_v3  ;;  %v2484_v57 = vadd.f32 %v2361_v32, %v2022_v30  ;;  %v6141_v19 = vld [vmem:[#allocation44_spill] sm:$0xff]  ;;  %v6143_v3 = vld [vmem:[#allocation47_spill] sm:$0xff] }
 0x27d   : > { %v2833_v35 = vmax.f32 %v2672_v43, %v2747_v45  ;;  %v2363_v1 = vpop.f32.mrf.mxu1  ;;  %v2622_v10 = vmax.f32 %v2558_v5, 0.0  ;;  %v2034_v15 = vadd.f32 %v6141_v19, %v6140_v31  ;;  %v6142_v5 = vld [vmem:[#allocation11_spill] sm:$0xff]  ;;  %v2046_v17 = vadd.f32 %v5568_v9, %v6149_v52 }
 0x27e   : > { %v2748_v8 = vrot.slane %v2674_v26, 2  ;;  %v2623_v42 = vmax.f32 %v2559_v16, 0.0  ;;  %v2485_v47 = vadd.f32 %v2363_v1, %v2024_v24  ;;  %v2560_v59 = vadd.f32 %v5544_v2, %v2484_v57 }
 0x27f   : > { %2865 = vst [vmem:[#allocation2 + $0x40] sm:$0xff] %v2833_v35  ;;  %v2365_v33 = vpop.f32.mrf.mxu1  ;;  %v2036_v6 = vadd.f32 %v6143_v3, %v6142_v5  ;;  %v6150_v3 = vld [vmem:[#allocation16_spill] sm:$0xff] }
 0x280   : > { %v2749_v48 = vsel %vm2728_vm2, %v2746_v13, %v2748_v8  ;;  %v2675_v20 = vmax.f32 %v2622_v10, %v2623_v42  ;;  %v2561_v43 = vadd.f32 %v5552_v49, %v2485_v47  ;;  %v2486_v21 = vadd.f32 %v2365_v33, %v2026_v7  ;;  %v6145_v7 = vld [vmem:[#allocation50_spill] sm:$0xff] }
 0x281   : > { %v2834_v54 = vmax.f32 %v2673_v11, %v2749_v48  ;;  %v2624_v25 = vmax.f32 %v2560_v59, 0.0  ;;  %v2367_v60 = vpop.f32.mrf.mxu1  ;;  %v2038_v35 = vadd.f32 %v6145_v7, %v6144_v55 }
 0x282   : > { %v2750_v61 = vrot.slane %v2675_v20, 2  ;;  %v2625_v29 = vmax.f32 %v2561_v43, 0.0  ;;  %v2562_v62 = vadd.f32 %v5544_v2, %v2486_v21  ;;  %v2487_v34 = vadd.f32 %v2367_v60, %v2028_v14  ;;  %v5706_v14 = vpop.f32.mrf.mxu0  ;;  %v6146_v21 = vld [vmem:[#allocation13_spill] sm:$0xff] }
 0x283   : > { %2866 = vst [vmem:[#allocation2 + $0x48] sm:$0xff] %v2834_v54  ;;  %v2371_v18 = vpop.f32.mrf.mxu1  ;;  %v6147_v54 = vld [vmem:[#allocation53_spill] sm:$0xff] }
 0x284   : > { %v2751_v13 = vsel %vm2728_vm2, %v2748_v8, %v2750_v61  ;;  %v2676_v11 = vmax.f32 %v2624_v25, %v2625_v29  ;;  %v2563_v37 = vadd.f32 %v5552_v49, %v2487_v34  ;;  %v2488_v32 = vadd.f32 %v2371_v18, %v2032_v63  ;;  %v5717_v19 = vpop.f32.mrf.mxu0 }
 0x285   : > { %v2835_v30 = vmax.f32 %v2674_v26, %v2751_v13  ;;  %v2373_v53 = vpop.f32.mrf.mxu1  ;;  %v2626_v45 = vmax.f32 %v2562_v62, 0.0  ;;  %v2042_v25 = vadd.f32 %v6147_v54, %v6146_v21 }
 0x286   : > { %v2752_v24 = vrot.slane %v2676_v11, 2  ;;  %v2627_v16 = vmax.f32 %v2563_v37, 0.0  ;;  %v2489_v23 = vadd.f32 %v2373_v53, %v2034_v15  ;;  %v2564_v57 = vadd.f32 %v5544_v2, %v2488_v32 }
 0x287   : > { %2867 = vst [vmem:[#allocation2 + $0x50] sm:$0xff] %v2835_v30  ;;  %v2375_v1 = vpop.f32.mrf.mxu1 }
 0x288   : > { %v2753_v8 = vsel %vm2728_vm2, %v2750_v61, %v2752_v24  ;;  %v2677_v10 = vmax.f32 %v2626_v45, %v2627_v16  ;;  %v2565_v26 = vadd.f32 %v5552_v49, %v2489_v23  ;;  %v2490_v42 = vadd.f32 %v2375_v1, %v2036_v6  ;;  %v6148_v61 = vld [vmem:[#allocation14_spill] sm:$0xff]  ;;  %v5724_v23 = vpop.f32.mrf.mxu0 }
 0x289   : > { %v2836_v47 = vmax.f32 %v2675_v20, %v2753_v8  ;;  %v2628_v56 = vmax.f32 %v2564_v57, 0.0  ;;  %v2377_v0 = vpop.f32.mrf.mxu1  ;;  %v2044_v29 = vadd.f32 %v5556_v22, %v6148_v61  ;;  %v2048_v22 = vadd.f32 %v5580_v51, %v6150_v3  ;;  %v6151_v57 = vld [vmem:[#allocation17_spill] sm:$0xff]  ;;  %v6154_v61 = vld [vmem:[#allocation20_spill] sm:$0xff] }
 0x28a   : > { %v2754_v59 = vrot.slane %v2677_v10, 2  ;;  %v2629_v33 = vmax.f32 %v2565_v26, 0.0  ;;  %v2566_v48 = vadd.f32 %v5544_v2, %v2490_v42  ;;  %v2491_v43 = vadd.f32 %v2377_v0, %v2038_v35  ;;  %v6152_v26 = vld [vmem:[#allocation18_spill] sm:$0xff]  ;;  %v6153_v0 = vld [vmem:[#allocation19_spill] sm:$0xff]  ;;  %v5735_v21 = vpop.f32.mrf.mxu0 }
 0x28b   : > { %2868 = vst [vmem:[#allocation2 + $0x58] sm:$0xff] %v2836_v47  ;;  %v2381_v60 = vpop.f32.mrf.mxu1  ;;  %v2052_v1 = vadd.f32 %v5596_v4, %v6151_v57  ;;  %v2054_v42 = vadd.f32 %v5609_v28, %v6152_v26  ;;  %v2058_v28 = vadd.f32 %v5627_v38, %v6154_v61  ;;  %v6160_v61 = vld [vmem:[#allocation26_spill] sm:$0xff] }
 0x28c   : > { %v2755_v62 = vsel %vm2728_vm2, %v2752_v24, %v2754_v59  ;;  %v2678_v20 = vmax.f32 %v2628_v56, %v2629_v33  ;;  %v2567_v34 = vadd.f32 %v5552_v49, %v2491_v43  ;;  %v2492_v18 = vadd.f32 %v2381_v60, %v2042_v25 }
 0x28d   : > { %v2837_v63 = vmax.f32 %v2676_v11, %v2755_v62  ;;  %v2383_v31 = vpop.f32.mrf.mxu1  ;;  %v2630_v13 = vmax.f32 %v2566_v48, 0.0 }
 0x28e   : > { %v2756_v15 = vrot.slane %v2678_v20, 2  ;;  %v2631_v37 = vmax.f32 %v2567_v34, 0.0  ;;  %v2493_v5 = vadd.f32 %v2383_v31, %v2044_v29  ;;  %v2568_v6 = vadd.f32 %v5544_v2, %v2492_v18  ;;  %v5742_v31 = vpop.f32.mrf.mxu0 }
 0x28f   : > { %2869 = vst [vmem:[#allocation2 + $0x60] sm:$0xff] %v2837_v63  ;;  %v2385_v30 = vpop.f32.mrf.mxu1 }
 0x290   : > { %v2757_v32 = vsel %vm2728_vm2, %v2754_v59, %v2756_v15  ;;  %v2679_v53 = vmax.f32 %v2630_v13, %v2631_v37  ;;  %v2569_v9 = vadd.f32 %v5552_v49, %v2493_v5  ;;  %v2494_v11 = vadd.f32 %v2385_v30, %v2046_v17  ;;  %v6155_v5 = vld [vmem:[#allocation21_spill] sm:$0xff] }
 0x291   : > { %v2838_v24 = vmax.f32 %v2677_v10, %v2757_v32  ;;  %v2632_v45 = vmax.f32 %v2568_v6, 0.0  ;;  %v2387_v16 = vpop.f32.mrf.mxu1  ;;  %v2056_v59 = vadd.f32 %v5616_v12, %v6153_v0  ;;  %v2062_v3 = vadd.f32 %v5634_v58, %v6155_v5  ;;  %v6156_v6 = vld [vmem:[#allocation22_spill] sm:$0xff] }
 0x292   : > { %v2758_v55 = vrot.slane %v2679_v53, 2  ;;  %v2633_v7 = vmax.f32 %v2569_v9, 0.0  ;;  %v2570_v35 = vadd.f32 %v5544_v2, %v2494_v11  ;;  %v2495_v51 = vadd.f32 %v2387_v16, %v2048_v22  ;;  %v6157_v11 = vld [vmem:[#allocation23_spill] sm:$0xff] }
 0x293   : > { %2870 = vst [vmem:[#allocation2 + $0x68] sm:$0xff] %v2838_v24  ;;  %v2391_v8 = vpop.f32.mrf.mxu1  ;;  %v2064_v30 = vadd.f32 %v5645_v41, %v6156_v6  ;;  %v2066_v24 = vadd.f32 %v5652_v46, %v6157_v11 }
 0x294   : > { %v2759_v47 = vsel %vm2728_vm2, %v2756_v15, %v2758_v55  ;;  %v2680_v10 = vmax.f32 %v2632_v45, %v2633_v7  ;;  %v2571_v56 = vadd.f32 %v5552_v49, %v2495_v51  ;;  %v2496_v48 = vadd.f32 %v2391_v8, %v2052_v1  ;;  %v5753_v7 = vpop.f32.mrf.mxu0  ;;  %v6158_v1 = vld [vmem:[#allocation24_spill] sm:$0xff] }
 0x295   : > { %v2839_v33 = vmax.f32 %v2678_v20, %v2759_v47  ;;  %v2393_v43 = vpop.f32.mrf.mxu1  ;;  %v2634_v4 = vmax.f32 %v2570_v35, 0.0  ;;  %v2068_v41 = vadd.f32 %v5663_v44, %v6158_v1 }
 0x296   : > { %v2760_v54 = vrot.slane %v2680_v10, 2  ;;  %v2635_v25 = vmax.f32 %v2571_v56, 0.0  ;;  %v2497_v60 = vadd.f32 %v2393_v43, %v2054_v42  ;;  %v2572_v29 = vadd.f32 %v5544_v2, %v2496_v48 }
 0x297   : > { %2871 = vst [vmem:[#allocation2 + $0x70] sm:$0xff] %v2839_v33  ;;  %v2395_v62 = vpop.f32.mrf.mxu1  ;;  %v5760_v33 = vpop.f32.mrf.mxu0 }
 0x298   : > { %v2761_v34 = vsel %vm2728_vm2, %v2758_v55, %v2760_v54  ;;  %v2681_v52 = vmax.f32 %v2634_v4, %v2635_v25  ;;  %v2573_v12 = vadd.f32 %v5552_v49, %v2497_v60  ;;  %v2498_v20 = vadd.f32 %v2395_v62, %v2056_v59  ;;  %v6159_v4 = vld [vmem:[#allocation25_spill] sm:$0xff] }
 0x299   : > { %v2840_v17 = vmax.f32 %v2679_v53, %v2761_v34  ;;  %v2636_v63 = vmax.f32 %v2572_v29, 0.0  ;;  %v2397_v18 = vpop.f32.mrf.mxu1  ;;  %v2072_v25 = vadd.f32 %v5670_v40, %v6159_v4 }
 0x29a   : > { %v2762_v15 = vrot.slane %v2681_v52, 2  ;;  %v2637_v13 = vmax.f32 %v2573_v12, 0.0  ;;  %v2574_v37 = vadd.f32 %v5544_v2, %v2498_v20  ;;  %v2499_v38 = vadd.f32 %v2397_v18, %v2058_v28  ;;  %v5771_v18 = vpop.f32.mrf.mxu0 }
 0x29b   : > { %2872 = vst [vmem:[#allocation2 + $0x78] sm:$0xff] %v2840_v17  ;;  %v2401_v22 = vpop.f32.mrf.mxu1  ;;  %v2074_v28 = vadd.f32 %v5681_v39, %v6160_v61 }
 0x29c   : > { %v2763_v32 = vsel %vm2728_vm2, %v2760_v54, %v2762_v15  ;;  %v2682_v53 = vmax.f32 %v2636_v63, %v2637_v13  ;;  %v2575_v9 = vadd.f32 %v5552_v49, %v2499_v38  ;;  %v2500_v16 = vadd.f32 %v2401_v22, %v2062_v3  ;;  %v6162_v38 = vld [vmem:[#allocation28_spill] sm:$0xff]  ;;  %v5778_v11 = vpop.f32.mrf.mxu0 }
 0x29d   : > { %v2841_v45 = vmax.f32 %v2680_v10, %v2763_v32  ;;  %v2403_v55 = vpop.f32.mrf.mxu1  ;;  %v2638_v58 = vmax.f32 %v2574_v37, 0.0  ;;  %v2078_v39 = vadd.f32 %v5699_v27, %v6162_v38 }
 0x29e   : > { %v2764_v35 = vrot.slane %v2682_v53, 2  ;;  %v2639_v51 = vmax.f32 %v2575_v9, 0.0  ;;  %v2501_v57 = vadd.f32 %v2403_v55, %v2064_v30  ;;  %v2576_v8 = vadd.f32 %v5544_v2, %v2500_v16  ;;  %v6163_v55 = vld [vmem:[#allocation30_spill] sm:$0xff] }
 0x29f   : > { %2873 = vst [vmem:[#allocation2 + $0x80] sm:$0xff] %v2841_v45  ;;  %v2405_v26 = vpop.f32.mrf.mxu1 }
 0x2a0   : > { %v2765_v42 = vsel %vm2728_vm2, %v2762_v15, %v2764_v35  ;;  %v2683_v47 = vmax.f32 %v2638_v58, %v2639_v51  ;;  %v2577_v46 = vadd.f32 %v5552_v49, %v2501_v57  ;;  %v2502_v10 = vadd.f32 %v2405_v26, %v2066_v24  ;;  %v6164_v51 = vld [vmem:[#allocation31_spill] sm:$0xff]  ;;  %v6165_v26 = vld [vmem:[#allocation33_spill] sm:$0xff] }
 0x2a1   : > { %v2842_v56 = vmax.f32 %v2681_v52, %v2765_v42  ;;  %v2640_v0 = vmax.f32 %v2576_v8, 0.0  ;;  %v2407_v59 = vpop.f32.mrf.mxu1  ;;  %v6161_v52 = vld [vmem:[#allocation27_spill] sm:$0xff]  ;;  %v2084_v57 = vadd.f32 %v5717_v19, %v6164_v51  ;;  %v2086_v42 = vadd.f32 %v5724_v23, %v6165_v26 }
 0x2a2   : > { %v2766_v48 = vrot.slane %v2683_v47, 2  ;;  %v2641_v43 = vmax.f32 %v2577_v46, 0.0  ;;  %v2578_v54 = vadd.f32 %v5544_v2, %v2502_v10  ;;  %v2503_v44 = vadd.f32 %v2407_v59, %v2068_v41 }
 0x2a3   : > { %2874 = vst [vmem:[#allocation2 + $0x88] sm:$0xff] %v2842_v56  ;;  %v2411_v60 = vpop.f32.mrf.mxu1  ;;  %v2076_v12 = vadd.f32 %v5688_v50, %v6161_v52  ;;  %v2103_v56 = vpop.f32.mrf.mxu0 }
 0x2a4   : > { %v2767_v29 = vsel %vm2728_vm2, %v2764_v35, %v2766_v48  ;;  %v2684_v62 = vmax.f32 %v2640_v0, %v2641_v43  ;;  %v2579_v34 = vadd.f32 %v5552_v49, %v2503_v44  ;;  %v2504_v17 = vadd.f32 %v2411_v60, %v2072_v25  ;;  %v6166_v43 = vld [vmem:[#allocation34_spill] sm:$0xff] }
 0x2a5   : > { %v2843_v20 = vmax.f32 %v2682_v53, %v2767_v29  ;;  %v2413_v63 = vpop.f32.mrf.mxu1  ;;  %v2642_v40 = vmax.f32 %v2578_v54, 0.0  ;;  %v2082_v35 = vadd.f32 %v5706_v14, %v6163_v55  ;;  %v2088_v54 = vadd.f32 %v5735_v21, %v6166_v43  ;;  %v6167_v21 = vld [vmem:[#allocation36_spill] sm:$0xff] }
 0x2a6   : > { %v2768_v15 = vrot.slane %v2684_v62, 2  ;;  %v2643_v13 = vmax.f32 %v2579_v34, 0.0  ;;  %v2505_v37 = vadd.f32 %v2413_v63, %v2074_v28  ;;  %v2580_v5 = vadd.f32 %v5544_v2, %v2504_v17 }
 0x2a7   : > { %2875 = vst [vmem:[#allocation2 + $0x90] sm:$0xff] %v2843_v20  ;;  %v2415_v3 = vpop.f32.mrf.mxu1  ;;  %v2092_v17 = vadd.f32 %v5742_v31, %v6167_v21 }
 0x2a8   : > { %v2769_v22 = vsel %vm2728_vm2, %v2766_v48, %v2768_v15  ;;  %v2685_v6 = vmax.f32 %v2642_v40, %v2643_v13  ;;  %v2581_v50 = vadd.f32 %v5552_v49, %v2505_v37  ;;  %v2506_v30 = vadd.f32 %v2415_v3, %v2076_v12 }
 0x2a9   : > { %v2844_v32 = vmax.f32 %v2683_v47, %v2769_v22  ;;  %v2644_v53 = vmax.f32 %v2580_v5, 0.0  ;;  %v2417_v9 = vpop.f32.mrf.mxu1 }
 0x2aa   : > { %v2770_v24 = vrot.slane %v2685_v6, 2  ;;  %v2645_v45 = vmax.f32 %v2581_v50, 0.0  ;;  %v2582_v16 = vadd.f32 %v5544_v2, %v2506_v30  ;;  %v2507_v27 = vadd.f32 %v2417_v9, %v2078_v39  ;;  %v6169_v39 = vld [vmem:[#allocation39_spill] sm:$0xff]  ;;  %v6170_v9 = vld [vmem:[#allocation40_spill] sm:$0xff] }
 0x2ab   : > { %2876 = vst [vmem:[#allocation2 + $0x98] sm:$0xff] %v2844_v32  ;;  %v2421_v58 = vpop.f32.mrf.mxu1  ;;  %v2096_v5 = vadd.f32 %v5760_v33, %v6169_v39 }
 0x2ac   : > { %v2771_v1 = vsel %vm2728_vm2, %v2768_v15, %v2770_v24  ;;  %v2686_v41 = vmax.f32 %v2644_v53, %v2645_v45  ;;  %v2583_v8 = vadd.f32 %v5552_v49, %v2507_v27  ;;  %v2508_v46 = vadd.f32 %v2421_v58, %v2082_v35  ;;  %v6168_v15 = vld [vmem:[#allocation37_spill] sm:$0xff] }
 0x2ad   : > { %v2845_v47 = vmax.f32 %v2684_v62, %v2771_v1  ;;  %v2423_v10 = vpop.f32.mrf.mxu1  ;;  %v2646_v59 = vmax.f32 %v2582_v16, 0.0  ;;  %v2105_v62 = vpop.f32.mrf.mxu0  ;;  %v2094_v40 = vadd.f32 %v5753_v7, %v6168_v15 }
 0x2ae   : > { %v2772_v0 = vrot.slane %v2686_v41, 2  ;;  %v2647_v14 = vmax.f32 %v2583_v8, 0.0  ;;  %v2509_v48 = vadd.f32 %v2423_v10, %v2084_v57  ;;  %v2584_v19 = vadd.f32 %v5544_v2, %v2508_v46  ;;  %v6172_v46 = vld [vmem:[#allocation43_spill] sm:$0xff] }
 0x2af   : > { %2877 = vst [vmem:[#allocation2 + $0xa0] sm:$0xff] %v2845_v47  ;;  %v2425_v44 = vpop.f32.mrf.mxu1  ;;  %v2107_v50 = vpop.f32.mrf.mxu0  ;;  %v2104_v10 = vadd.f32 %v2103_v56, %v6172_v46 }
 0x2b0   : > { %v2773_v4 = vsel %vm2728_vm2, %v2770_v24, %v2772_v0  ;;  %v2687_v25 = vmax.f32 %v2646_v59, %v2647_v14  ;;  %v2585_v23 = vadd.f32 %v5552_v49, %v2509_v48  ;;  %v2510_v60 = vadd.f32 %v2425_v44, %v2086_v42  ;;  %v6173_v48 = vld [vmem:[#allocation45_spill] sm:$0xff] }
 0x2b1   : > { %v2846_v61 = vmax.f32 %v2685_v6, %v2773_v4  ;;  %v2648_v28 = vmax.f32 %v2584_v19, 0.0  ;;  %v2427_v29 = vpop.f32.mrf.mxu1  ;;  %v2098_v24 = vadd.f32 %v5771_v18, %v6170_v9  ;;  %v2111_v57 = vpop.f32.mrf.mxu0  ;;  %v6171_v18 = vld [vmem:[#allocation42_spill] sm:$0xff]  ;;  %v2106_v43 = vadd.f32 %v2105_v62, %v6173_v48 }
 0x2b2   : > { %v2774_v34 = vrot.slane %v2687_v25, 2  ;;  %v2649_v52 = vmax.f32 %v2585_v23, 0.0  ;;  %v2586_v12 = vadd.f32 %v5544_v2, %v2510_v60  ;;  %v2511_v20 = vadd.f32 %v2427_v29, %v2088_v54 }
 0x2b3   : > { %2878 = vst [vmem:[#allocation2 + $0xa8] sm:$0xff] %v2846_v61  ;;  %v2431_v63 = vpop.f32.mrf.mxu1  ;;  %v2102_v42 = vadd.f32 %v5778_v11, %v6171_v18  ;;  %v2113_v4 = vpop.f32.mrf.mxu0  ;;  %v6174_v11 = vld [vmem:[#allocation46_spill] sm:$0xff]  ;;  %v2923_v18 = vld [vmem:[#allocation2 + $0x4] ss:$32 sm:$0x2] }
 0x2b4   : > { %v2775_v13 = vsel %vm2728_vm2, %v2772_v0, %v2774_v34  ;;  %v2688_v37 = vmax.f32 %v2648_v28, %v2649_v52  ;;  %v2587_v38 = vadd.f32 %v5552_v49, %v2511_v20  ;;  %v2512_v22 = vadd.f32 %v2431_v63, %v2092_v17 }
 0x2b5   : > { %v2847_v3 = vmax.f32 %v2686_v41, %v2775_v13  ;;  %v2433_v6 = vpop.f32.mrf.mxu1  ;;  %v2650_v32 = vmax.f32 %v2586_v12, 0.0  ;;  %v2108_v28 = vadd.f32 %v2107_v50, %v6174_v11  ;;  %v2115_v63 = vpop.f32.mrf.mxu0  ;;  %v2894_v11 = vld [vmem:[#allocation2] ss:$32 sm:$0x8] }
 0x2b6   : > { %v2776_v30 = vrot.slane %v2688_v37, 2  ;;  %v2651_v31 = vmax.f32 %v2587_v38, 0.0  ;;  %v2513_v53 = vadd.f32 %v2433_v6, %v2094_v40  ;;  %v2588_v7 = vadd.f32 %v5544_v2, %v2512_v22  ;;  %v6175_v38 = vld [vmem:[#allocation48_spill] sm:$0xff] }
 0x2b7   : > { %2879 = vst [vmem:[#allocation2 + $0xb0] sm:$0xff] %v2847_v3  ;;  %v2435_v45 = vpop.f32.mrf.mxu1  ;;  %v2112_v39 = vadd.f32 %v2111_v57, %v6175_v38  ;;  %v6176_v3 = vld [vmem:[#allocation49_spill] sm:$0xff] }
 0x2b8   : > { %v2777_v16 = vsel %vm2728_vm2, %v2774_v34, %v2776_v30  ;;  %v2689_v27 = vmax.f32 %v2650_v32, %v2651_v31  ;;  %v2589_v33 = vadd.f32 %v5552_v49, %v2513_v53  ;;  %v2514_v55 = vadd.f32 %v2435_v45, %v2096_v5  ;;  %v6177_v32 = vld [vmem:[#allocation51_spill] sm:$0xff] }
 0x2b9   : > { %v2848_v35 = vmax.f32 %v2687_v25, %v2777_v16  ;;  %v2652_v58 = vmax.f32 %v2588_v7, 0.0  ;;  %v2437_v51 = vpop.f32.mrf.mxu1  ;;  %v2114_v22 = vadd.f32 %v2113_v4, %v6176_v3  ;;  %v2116_v31 = vadd.f32 %v2115_v63, %v6177_v32  ;;  %v2117_v7 = vpop.f32.mrf.mxu0 }
 0x2ba   : > { %v2778_v1 = vrot.slane %v2689_v27, 2  ;;  %v2653_v41 = vmax.f32 %v2589_v33, 0.0  ;;  %v2590_v8 = vadd.f32 %v5544_v2, %v2514_v55  ;;  %v2515_v26 = vadd.f32 %v2437_v51, %v2098_v24  ;;  %v6178_v55 = vld [vmem:[#allocation52_spill] sm:$0xff] }
 0x2bb   : > { %2880 = vst [vmem:[#allocation2 + $0xb8] sm:$0xff] %v2848_v35  ;;  %v2441_v47 = vpop.f32.mrf.mxu1  ;;  %v2118_v35 = vadd.f32 %v2117_v7, %v6178_v55 }
 0x2bc   : > { %v2779_v0 = vsel %vm2728_vm2, %v2776_v30, %v2778_v1  ;;  %v2690_v59 = vmax.f32 %v2652_v58, %v2653_v41  ;;  %v2591_v14 = vadd.f32 %v5552_v49, %v2515_v26  ;;  %v2516_v19 = vadd.f32 %v2441_v47, %v2102_v42  ;;  %v2922_v26 = vld [vmem:[#allocation2 + $0x4] ss:$32 sm:$0x1]  ;;  %v2889_v42 = vld [vmem:[#allocation2] ss:$32 sm:$0x1] }
 0x2bd   : > { %v2849_v54 = vmax.f32 %v2688_v37, %v2779_v0  ;;  %v2443_v44 = vpop.f32.mrf.mxu1  ;;  %v2654_v23 = vmax.f32 %v2590_v8, 0.0  ;;  %v2890_v47 = vld [vmem:[#allocation2] ss:$32 sm:$0x2] }
 0x2be   : > { %v2780_v25 = vrot.slane %v2690_v59, 2  ;;  %v2655_v60 = vmax.f32 %v2591_v14, 0.0  ;;  %v2517_v61 = vadd.f32 %v2443_v44, %v2104_v10  ;;  %v2592_v56 = vadd.f32 %v5544_v2, %v2516_v19  ;;  %v2892_v19 = vld [vmem:[#allocation2] ss:$32 sm:$0x4] }
 0x2bf   : > { %2881 = vst [vmem:[#allocation2 + $0xc0] sm:$0xff] %v2849_v54  ;;  %v2445_v29 = vpop.f32.mrf.mxu1  ;;  %v2924_v44 = vor.u32 %v2923_v18, %v2922_v26  ;;  %v2891_v4 = vor.u32 %v2890_v47, %v2889_v42  ;;  %v3133_v26 = vld [vmem:[#allocation2 + $0x8] ss:$32 sm:$0x2]  ;;  %v4519_v42 = vld [vmem:[%s6057_s5 + $0x98] sm:$0xff]  }
 0x2c0   : > { %v2781_v34 = vsel %vm2728_vm2, %v2778_v1, %v2780_v25  ;;  %v2691_v52 = vmax.f32 %v2654_v23, %v2655_v60  ;;  %v2593_v12 = vadd.f32 %v5552_v49, %v2517_v61  ;;  %v2518_v62 = vadd.f32 %v2445_v29, %v2106_v43  ;;  %v2927_v61 = vld [vmem:[#allocation2 + $0x4] ss:$32 sm:$0x8]  ;;  %v3256_v18 = vld [vmem:[#allocation2 + $0xc] ss:$32 sm:$0x2] }
 0x2c1   : > { %v2850_v20 = vmax.f32 %v2689_v27, %v2781_v34  ;;  %v2656_v21 = vmax.f32 %v2592_v56, 0.0  ;;  %v2447_v17 = vpop.f32.mrf.mxu1  ;;  %v2929_v29 = vld [vmem:[#allocation2 + $0x4] ss:$32 sm:$0x10]  ;;  %v2893_v34 = vor.u32 %v2892_v19, %v2891_v4  ;;  %v4520_v47 = vld [vmem:[%s6057_s5 + $0xd8] sm:$0xff]   ;;  %v4522_v19 = vld [vmem:[%s6057_s5 + $0xd0] sm:$0xff]  }
 0x2c2   : > { %v2782_v15 = vrot.slane %v2691_v52, 2  ;;  %v2657_v40 = vmax.f32 %v2593_v12, 0.0  ;;  %v2594_v13 = vadd.f32 %v5544_v2, %v2518_v62  ;;  %v2519_v37 = vadd.f32 %v2447_v17, %v2108_v28 }
 0x2c3   : > { %2882 = vst [vmem:[#allocation2 + $0xc8] sm:$0xff] %v2850_v20  ;;  %v2451_v5 = vpop.f32.mrf.mxu1 }
 0x2c4   : > { %v2783_v6 = vsel %vm2728_vm2, %v2780_v25, %v2782_v15  ;;  %v2692_v50 = vmax.f32 %v2656_v21, %v2657_v40  ;;  %v2595_v30 = vadd.f32 %v5552_v49, %v2519_v37  ;;  %v2520_v9 = vadd.f32 %v2451_v5, %v2112_v39  ;;  %v2898_v40 = vld [vmem:[#allocation2] ss:$32 sm:$0x20] }
 0x2c5   : > { %v2851_v53 = vmax.f32 %v2690_v59, %v2783_v6  ;;  %v2453_v24 = vpop.f32.mrf.mxu1  ;;  %v2658_v16 = vmax.f32 %v2594_v13, 0.0  ;;  %v2925_v59 = vld [vmem:[#allocation2 + $0x4] ss:$32 sm:$0x4]  ;;  %v2895_v21 = vor.u32 %v2894_v11, %v2893_v34 }
 0x2c6   : > { %v2784_v45 = vrot.slane %v2692_v50, 2  ;;  %v2659_v27 = vmax.f32 %v2595_v30, 0.0  ;;  %v2521_v33 = vadd.f32 %v2453_v24, %v2114_v22  ;;  %v2596_v58 = vadd.f32 %v5544_v2, %v2520_v9  ;;  %v2933_v37 = vld [vmem:[#allocation2 + $0x4] ss:$32 sm:$0x40] }
 0x2c7   : > { %2883 = vst [vmem:[#allocation2 + $0xd0] sm:$0xff] %v2851_v53  ;;  %v2455_v51 = vpop.f32.mrf.mxu1  ;;  %v2926_v56 = vor.u32 %v2925_v59, %v2924_v44  ;;  %v2900_v5 = vld [vmem:[#allocation2] ss:$32 sm:$0x40] }
 0x2c8   : > { %v2785_v57 = vsel %vm2728_vm2, %v2782_v15, %v2784_v45  ;;  %v2693_v1 = vmax.f32 %v2658_v16, %v2659_v27  ;;  %v2597_v41 = vadd.f32 %v5552_v49, %v2521_v33  ;;  %v2522_v8 = vadd.f32 %v2455_v51, %v2116_v31  ;;  %v2931_v15 = vld [vmem:[#allocation2 + $0x4] ss:$32 sm:$0x20]  ;;  %v4511_v16 = vld [vmem:[%s6057_s5 + $0xb8] sm:$0xff]   ;;  %v4515_v51 = vld [vmem:[%s6057_s5 + $0xa8] sm:$0xff]  }
 0x2c9   : > { %v2852_v46 = vmax.f32 %v2691_v52, %v2785_v57  ;;  %v2660_v10 = vmax.f32 %v2596_v58, 0.0  ;;  %v2457_v0 = vpop.f32.mrf.mxu1  ;;  %v2928_v20 = vor.u32 %v2927_v61, %v2926_v56  ;;  %v4512_v27 = vld [vmem:[%s6057_s5 + $0xf8] sm:$0xff]   ;;  %v4514_v58 = vld [vmem:[%s6057_s5 + $0xf0] sm:$0xff]   ;;  %v4516_v57 = vld [vmem:[%s6057_s5 + $0xe8] sm:$0xff]  }
 0x2ca   : > { %v2786_v14 = vrot.slane %v2693_v1, 2  ;;  %v2661_v48 = vmax.f32 %v2597_v41, 0.0  ;;  %v2598_v43 = vadd.f32 %v5544_v2, %v2522_v8  ;;  %v2523_v54 = vadd.f32 %v2457_v0, %v2118_v35  ;;  %v2896_v2 = vld [vmem:[#allocation2] ss:$32 sm:$0x10]  ;;  %v4513_v35 = vld [vmem:[%s6057_s5 + $0xb0] sm:$0xff]  }
 0x2cb   : > { %2884 = vst [vmem:[#allocation2 + $0xd8] sm:$0xff] %v2852_v46  ;;  %v2897_v38 = vor.u32 %v2896_v2, %v2895_v21  ;;  %v4518_v41 = vld [vmem:[%s6057_s5 + $0xe0] sm:$0xff]   ;;  %v3132_v8 = vld [vmem:[#allocation2 + $0x8] ss:$32 sm:$0x1] }
 0x2cc   : > { %v2787_v25 = vsel %vm2728_vm2, %v2784_v45, %v2786_v14  ;;  %v2694_v23 = vmax.f32 %v2660_v10, %v2661_v48  ;;  %v2599_v60 = vadd.f32 %v5552_v49, %v2523_v54  ;;  %v2662_v12 = vmax.f32 %v2598_v43, 0.0  ;;  %v3255_v46 = vld [vmem:[#allocation2 + $0xc] ss:$32 sm:$0x1]  ;;  %v4521_v54 = vld [vmem:[%s6057_s5 + $0x90] sm:$0xff]  }
 0x2cd   : > { %v2853_v28 = vmax.f32 %v2692_v50, %v2787_v25  ;;  %v2930_v49 = vor.u32 %v2929_v29, %v2928_v20  ;;  %v2899_v22 = vor.u32 %v2898_v40, %v2897_v38  ;;  %v3135_v10 = vld [vmem:[#allocation2 + $0x8] ss:$32 sm:$0x4]  ;;  %v3258_v0 = vld [vmem:[#allocation2 + $0xc] ss:$32 sm:$0x4]  ;;  %v3134_v59 = vor.u32 %v3133_v26, %v3132_v8 }
 0x2ce   : > { %v2788_v52 = vrot.slane %v2694_v23, 2  ;;  %v2663_v62 = vmax.f32 %v2599_v60, 0.0  ;;  %v3137_v48 = vld [vmem:[#allocation2 + $0x8] ss:$32 sm:$0x8]  ;;  %v4525_v40 = vld [vmem:[%s6057_s5 + $0x80] sm:$0xff]  }
 0x2cf   : > { %2885 = vst [vmem:[#allocation2 + $0xe0] sm:$0xff] %v2853_v28  ;;  %v2932_v3 = vor.u32 %v2931_v15, %v2930_v49  ;;  %v2901_v53 = vor.u32 %v2900_v5, %v2899_v22  ;;  %v3260_v43 = vld [vmem:[#allocation2 + $0xc] ss:$32 sm:$0x8]  ;;  %v3136_v44 = vor.u32 %v3135_v10, %v3134_v59  ;;  %v4527_v38 = vld [vmem:[%s6057_s5 + $0x138] sm:$0xff]   ;;  %v4529_v22 = vld [vmem:[%s6057_s5 + $0x130] sm:$0xff]  }
 0x2d0   : > { %v2789_v17 = vsel %vm2728_vm2, %v2786_v14, %v2788_v52  ;;  %v2695_v63 = vmax.f32 %v2662_v12, %v2663_v62  ;;  %v3257_v14 = vor.u32 %v3256_v18, %v3255_v46  ;;  %v3139_v25 = vld [vmem:[#allocation2 + $0x8] ss:$32 sm:$0x10]  ;;  %v3264_v28 = vld [vmem:[#allocation2 + $0xc] ss:$32 sm:$0x20] }
 0x2d1   : > { %v2854_v13 = vmax.f32 %v2693_v1, %v2789_v17  ;;  %v2934_v31 = vor.u32 %v2933_v37, %v2932_v3  ;;  %v4517_v1 = vld [vmem:[%s6057_s5 + $0xa0] sm:$0xff]   ;;  %v3138_v60 = vor.u32 %v3137_v48, %v3136_v44  ;;  %v3141_v11 = vld [vmem:[#allocation2 + $0x8] ss:$32 sm:$0x20] }
 0x2d2   : > { %v2790_v39 = vrot.slane %v2695_v63, 2  ;;  %v3259_v4 = vor.u32 %v3258_v0, %v3257_v14  ;;  %v4523_v56 = vld [vmem:[%s6057_s5 + $0x88] sm:$0xff]   ;;  %v3385_v26 = vld [vmem:[#allocation2 + $0x10] ss:$32 sm:$0x10] }
 0x2d3   : > { %2886 = vst [vmem:[#allocation2 + $0xe8] sm:$0xff] %v2854_v13  ;;  %v4524_v29 = vld [vmem:[%s6057_s5 + $0xc8] sm:$0xff]   ;;  %v3140_v34 = vor.u32 %v3139_v25, %v3138_v60  ;;  %v4526_v13 = vld [vmem:[%s6057_s5 + $0xc0] sm:$0xff]   ;;  %v3508_v18 = vld [vmem:[#allocation2 + $0x14] ss:$32 sm:$0x10] }
 0x2d4   : > { %v2791_v6 = vsel %vm2728_vm2, %v2788_v52, %v2790_v39  ;;  %v2824_v50 = vsel %vm2728_vm2, %v2790_v39, 0.0  ;;  %v3261_v61 = vor.u32 %v3260_v43, %v3259_v4  ;;  %v3143_v12 = vld [vmem:[#allocation2 + $0x8] ss:$32 sm:$0x40]  ;;  %v4528_v39 = vld [vmem:[%s6057_s5 + $0x178] sm:$0xff]  }
 0x2d5   : > { %v2855_v30 = vmax.f32 %v2694_v23, %v2791_v6  ;;  %v2856_v32 = vmax.f32 %v2695_v63, %v2824_v50  ;;  %v3262_v23 = vld [vmem:[#allocation2 + $0xc] ss:$32 sm:$0x10]  ;;  %v3142_v2 = vor.u32 %v3141_v11, %v3140_v34  ;;  %v4530_v6 = vld [vmem:[%s6057_s5 + $0x170] sm:$0xff]   ;;  %v4542_v11 = vld [vmem:[%s6057_s5 + $0x140] sm:$0xff]  }
 0x2d6   : > { %v2935_v9 = vld [vmem:[#allocation2 + $0x4] ss:$32 sm:$0x80]  ;;  %v2902_v24 = vld [vmem:[#allocation2] ss:$32 sm:$0x80]  ;;  %v3263_v52 = vor.u32 %v3262_v23, %v3261_v61 }
 0x2d7   : > { %2887 = vst [vmem:[#allocation2 + $0xf0] sm:$0xff] %v2855_v30  ;;  %2888 = vst [vmem:[#allocation2 + $0xf8] sm:$0xff] %v2856_v32  ;;  %v2936_v7 = vor.u32 %v2935_v9, %v2934_v31  ;;  %v2903_v45 = vor.u32 %v2902_v24, %v2901_v53  ;;  %v3266_v62 = vld [vmem:[#allocation2 + $0xc] ss:$32 sm:$0x40]  ;;  %v3144_v63 = vor.u32 %v3143_v12, %v3142_v2  ;;  %v4533_v32 = vld [vmem:[%s6057_s5 + $0x120] sm:$0xff]  }
 0x2d8   : > { %v3265_v20 = vor.u32 %v3264_v28, %v3263_v52  ;;  %v4531_v50 = vld [vmem:[%s6057_s5 + $0x128] sm:$0xff]   ;;  %v4534_v31 = vld [vmem:[%s6057_s5 + $0x160] sm:$0xff]   ;;  %v3378_v53 = vld [vmem:[#allocation2 + $0x10] ss:$32 sm:$0x1] }
 0x2d9   : > { %v2937_v33 = vpack.c.bf16 %v2936_v7, %v2936_v7  ;;  %v2904_v55 = vpack.c.bf16 %v2903_v45, %v2903_v45  ;;  %v4532_v30 = vld [vmem:[%s6057_s5 + $0x168] sm:$0xff]   ;;  %v3379_v9 = vld [vmem:[#allocation2 + $0x10] ss:$32 sm:$0x2]  ;;  %v4535_v7 = vld [vmem:[%s6057_s5 + $0x118] sm:$0xff]  }
 0x2da   : > { %v3145_v21 = vld [vmem:[#allocation2 + $0x8] ss:$32 sm:$0x80]  ;;  %v3268_v17 = vld [vmem:[#allocation2 + $0xc] ss:$32 sm:$0x80]  ;;  %v3267_v15 = vor.u32 %v3266_v62, %v3265_v20 }
 0x2db   : > { %4224 = vmatmul.mubr.bf16.vlgmr.msra.gmra.mxu0 %v2937_v33  ;;  %4244 = vmatmul.mubr.bf16.vlgmr.msra.gmra.mxu1 %v2904_v55  ;;  %v3146_v49 = vor.u32 %v3145_v21, %v3144_v63  ;;  %v3502_v24 = vld [vmem:[#allocation2 + $0x14] ss:$32 sm:$0x2]  ;;  %v4536_v45 = vld [vmem:[%s6057_s5 + $0x158] sm:$0xff]   ;;  %v3380_v55 = vor.u32 %v3379_v9, %v3378_v53  ;;  %v4539_v0 = vld [vmem:[%s6057_s5 + $0x108] sm:$0xff]  }
 0x2dc   : > { %4248 = vmatpush3.bf16.msra.mxu0 %v4511_v16  ;;  %4268 = vmatpush3.bf16.msra.mxu1 %v4512_v27  ;;  %v3269_v37 = vor.u32 %v3268_v17, %v3267_v15  ;;  %v3501_v16 = vld [vmem:[#allocation2 + $0x14] ss:$32 sm:$0x1]  ;;  %v3381_v27 = vld [vmem:[#allocation2 + $0x10] ss:$32 sm:$0x4] }
 0x2dd   : > { %4249 = vmatprep.subr.bf16.mxu0 %v6095_v36  ;;  %4269 = vmatprep.subr.bf16.mxu1 %v6095_v36  ;;  %v3147_v5 = vpack.c.bf16 %v3146_v49, %v3146_v49  ;;  %v3504_v33 = vld [vmem:[#allocation2 + $0x14] ss:$32 sm:$0x4]  ;;  %v3387_v46 = vld [vmem:[#allocation2 + $0x10] ss:$32 sm:$0x20] }
 0x2de   : > { %4263 = vmatprep.mubr.msk.bf16.mxu0 %vm4616_vm3, %v6095_v36  ;;  %4283 = vmatprep.mubr.msk.bf16.mxu1 %vm4616_vm3, %v6095_v36  ;;  %v3270_v3 = vpack.c.bf16 %v3269_v37, %v3269_v37  ;;  %v3510_v10 = vld [vmem:[#allocation2 + $0x14] ss:$32 sm:$0x20]  ;;  %v4540_v59 = vld [vmem:[%s6057_s5 + $0x148] sm:$0xff]   ;;  %v4541_v61 = vld [vmem:[%s6057_s5 + $0x100] sm:$0xff]  }
 0x2df   : > { %v3389_v43 = vld [vmem:[#allocation2 + $0x10] ss:$32 sm:$0x40]  ;;  %v3514_v25 = vld [vmem:[#allocation2 + $0x14] ss:$32 sm:$0x80] }
 0x2e0   : > { %4250 = vmatpush3.bf16.msra.mxu0 %v4513_v35  ;;  %4270 = vmatpush3.bf16.msra.mxu1 %v4514_v58  ;;  %v3503_v35 = vor.u32 %v3502_v24, %v3501_v16  ;;  %v3383_v58 = vld [vmem:[#allocation2 + $0x10] ss:$32 sm:$0x8]  ;;  %v4545_v62 = vld [vmem:[%s6057_s5 + $0x1a8] sm:$0xff]   ;;  %v4546_v2 = vld [vmem:[%s6057_s5 + $0x1a0] sm:$0xff]  }
 0x2e1   : > { %4251 = vmatprep.subr.bf16.mxu0 %v6095_v36  ;;  %4271 = vmatprep.subr.bf16.mxu1 %v6095_v36  ;;  %v3391_v4 = vld [vmem:[#allocation2 + $0x10] ss:$32 sm:$0x80]  ;;  %v3625_v20 = vld [vmem:[#allocation2 + $0x18] ss:$32 sm:$0x2] }
 0x2e2   : > { %v3505_v8 = vor.u32 %v3504_v33, %v3503_v35  ;;  %v4544_v12 = vld [vmem:[%s6057_s5 + $0x1b0] sm:$0xff]   ;;  %v3624_v21 = vld [vmem:[#allocation2 + $0x18] ss:$32 sm:$0x1] }
 0x2e3   : > { %v4547_v17 = vld [vmem:[%s6057_s5 + $0x198] sm:$0xff]   ;;  %v3626_v15 = vor.u32 %v3625_v20, %v3624_v21  ;;  %v4548_v49 = vld [vmem:[%s6057_s5 + $0x190] sm:$0xff]  }
 0x2e4   : > { %4252 = vmatpush3.bf16.msra.mxu0 %v4515_v51  ;;  %4272 = vmatpush3.bf16.msra.mxu1 %v4516_v57  ;;  %v3506_v51 = vld [vmem:[#allocation2 + $0x14] ss:$32 sm:$0x8]  ;;  %v3627_v63 = vld [vmem:[#allocation2 + $0x18] ss:$32 sm:$0x4] }
 0x2e5   : > { %4253 = vmatprep.subr.bf16.mxu0 %v6095_v36  ;;  %4273 = vmatprep.subr.bf16.mxu1 %v6095_v36  ;;  %v4537_v57 = vld [vmem:[%s6057_s5 + $0x110] sm:$0xff]   ;;  %v3631_v37 = vld [vmem:[#allocation2 + $0x18] ss:$32 sm:$0x10] }
 0x2e8   : > { %4254 = vmatpush3.bf16.msra.mxu0 %v4517_v1  ;;  %4274 = vmatpush3.bf16.msra.mxu1 %v4518_v41  ;;  %v4538_v1 = vld [vmem:[%s6057_s5 + $0x150] sm:$0xff]   ;;  %v3382_v41 = vor.u32 %v3381_v27, %v3380_v55 }
 0x2e9   : > { %4255 = vmatprep.subr.bf16.mxu0 %v6095_v36  ;;  %4275 = vmatprep.subr.bf16.mxu1 %v6095_v36 }
 0x2ec   : > { %4256 = vmatpush3.bf16.msra.mxu0 %v4519_v42  ;;  %4276 = vmatpush3.bf16.msra.mxu1 %v4520_v47  ;;  %v3384_v42 = vor.u32 %v3383_v58, %v3382_v41  ;;  %v3507_v47 = vor.u32 %v3506_v51, %v3505_v8 }
 0x2ed   : > { %4257 = vmatprep.subr.bf16.mxu0 %v6095_v36  ;;  %4277 = vmatprep.subr.bf16.mxu1 %v6095_v36 }
 0x2ee   : > { %v3386_v14 = vor.u32 %v3385_v26, %v3384_v42  ;;  %v3509_v48 = vor.u32 %v3508_v18, %v3507_v47 }
 0x2f0   : > { %4258 = vmatpush3.bf16.msra.mxu0 %v4521_v54  ;;  %4278 = vmatpush3.bf16.msra.mxu1 %v4522_v19  ;;  %v3512_v54 = vld [vmem:[#allocation2 + $0x14] ss:$32 sm:$0x40]  ;;  %v3388_v19 = vor.u32 %v3387_v46, %v3386_v14  ;;  %v3511_v44 = vor.u32 %v3510_v10, %v3509_v48 }
 0x2f1   : > { %4259 = vmatprep.subr.bf16.mxu0 %v6095_v36  ;;  %4279 = vmatprep.subr.bf16.mxu1 %v6095_v36 }
 0x2f2   : > { %v3390_v23 = vor.u32 %v3389_v43, %v3388_v19  ;;  %v3513_v60 = vor.u32 %v3512_v54, %v3511_v44 }
 0x2f4   : > { %4260 = vmatpush3.bf16.msra.mxu0 %v4523_v56  ;;  %4280 = vmatpush3.bf16.msra.mxu1 %v4524_v29  ;;  %v3392_v28 = vor.u32 %v3391_v4, %v3390_v23  ;;  %v3515_v56 = vor.u32 %v3514_v25, %v3513_v60  ;;  %v4543_v29 = vld [vmem:[%s6057_s5 + $0x1b8] sm:$0xff]   ;;  %v4139_v4 = vld [vmem:[%s6058_s6] ss:$0 sm:$0xff] }
 0x2f5   : > { %4261 = vmatprep.subr.bf16.mxu0 %v6095_v36  ;;  %4281 = vmatprep.subr.bf16.mxu1 %v6095_v36 }
 0x2f6   : > { %v3393_v34 = vpack.c.bf16 %v3392_v28, %v3392_v28  ;;  %v3516_v52 = vpack.c.bf16 %v3515_v56, %v3515_v56 }
 0x2f8   : > { %4262 = vmatpush3.bf16.msra.mxu0 %v4525_v40  ;;  %4282 = vmatpush3.bf16.msra.mxu1 %v4526_v13  ;;  %v3629_v40 = vld [vmem:[#allocation2 + $0x18] ss:$32 sm:$0x8]  ;;  %v3628_v13 = vor.u32 %v3627_v63, %v3626_v15 }
 0x2f9   : > { %4287 = vmatprep.subr.bf16.mxu0 %v6095_v36  ;;  %4307 = vmatprep.subr.bf16.mxu1 %v6095_v36 }
 0x2fb   : > { %4264 = vmatmul.mubr.bf16.vlgmr.msra.gmra.mxu0 %v3147_v5  ;;  %4284 = vmatmul.mubr.bf16.vlgmr.msra.gmra.mxu1 %v3270_v3  ;;  %v4549_v3 = vld [vmem:[%s6057_s5 + $0x188] sm:$0xff]  }
 0x2fc   : > { %4288 = vmatpush3.bf16.msra.mxu0 %v4527_v38  ;;  %4308 = vmatpush3.bf16.msra.mxu1 %v4528_v39  ;;  %v3630_v38 = vor.u32 %v3629_v40, %v3628_v13  ;;  %v3633_v39 = vld [vmem:[#allocation2 + $0x18] ss:$32 sm:$0x20] }
 0x2fd   : > { %4289 = vmatprep.subr.bf16.mxu0 %v6095_v36  ;;  %4309 = vmatprep.subr.bf16.mxu1 %v6095_v36 }
 0x2fe   : > { %4303 = vmatprep.mubr.msk.bf16.mxu0 %vm4616_vm3, %v6095_v36  ;;  %4323 = vmatprep.mubr.msk.bf16.mxu1 %vm4616_vm3, %v6095_v36  ;;  %v3632_v5 = vor.u32 %v3631_v37, %v3630_v38 }
 0x300   : > { %4290 = vmatpush3.bf16.msra.mxu0 %v4529_v22  ;;  %4310 = vmatpush3.bf16.msra.mxu1 %v4530_v6  ;;  %v3635_v22 = vld [vmem:[#allocation2 + $0x18] ss:$32 sm:$0x40]  ;;  %v3634_v6 = vor.u32 %v3633_v39, %v3632_v5 }
 0x301   : > { %4291 = vmatprep.subr.bf16.mxu0 %v6095_v36  ;;  %4311 = vmatprep.subr.bf16.mxu1 %v6095_v36 }
 0x304   : > { %4292 = vmatpush3.bf16.msra.mxu0 %v4531_v50  ;;  %4312 = vmatpush3.bf16.msra.mxu1 %v4532_v30  ;;  %v3637_v50 = vld [vmem:[#allocation2 + $0x18] ss:$32 sm:$0x80]  ;;  %v3636_v30 = vor.u32 %v3635_v22, %v3634_v6 }
 0x305   : > { %4293 = vmatprep.subr.bf16.mxu0 %v6095_v36  ;;  %4313 = vmatprep.subr.bf16.mxu1 %v6095_v36 }
 0x308   : > { %4294 = vmatpush3.bf16.msra.mxu0 %v4533_v32  ;;  %4314 = vmatpush3.bf16.msra.mxu1 %v4534_v31  ;;  %v4550_v32 = vld [vmem:[%s6057_s5 + $0x180] sm:$0xff]   ;;  %v3638_v31 = vor.u32 %v3637_v50, %v3636_v30 }
 0x309   : > { %4295 = vmatprep.subr.bf16.mxu0 %v6095_v36  ;;  %4315 = vmatprep.subr.bf16.mxu1 %v6095_v36 }
 0x30a   : > { %v3639_v53 = vpack.c.bf16 %v3638_v31, %v3638_v31 }
 0x30c   : > { %4296 = vmatpush3.bf16.msra.mxu0 %v4535_v7  ;;  %4316 = vmatpush3.bf16.msra.mxu1 %v4536_v45 }
 0x30d   : > { %4297 = vmatprep.subr.bf16.mxu0 %v6095_v36  ;;  %4317 = vmatprep.subr.bf16.mxu1 %v6095_v36 }
 0x310   : > { %4298 = vmatpush3.bf16.msra.mxu0 %v4537_v57  ;;  %4318 = vmatpush3.bf16.msra.mxu1 %v4538_v1 }
 0x311   : > { %4299 = vmatprep.subr.bf16.mxu0 %v6095_v36  ;;  %4319 = vmatprep.subr.bf16.mxu1 %v6095_v36 }
 0x314   : > { %4300 = vmatpush3.bf16.msra.mxu0 %v4539_v0  ;;  %4320 = vmatpush3.bf16.msra.mxu1 %v4540_v59 }
 0x315   : > { %4301 = vmatprep.subr.bf16.mxu0 %v6095_v36  ;;  %4321 = vmatprep.subr.bf16.mxu1 %v6095_v36 }
 0x318   : > { %4302 = vmatpush3.bf16.msra.mxu0 %v4541_v61  ;;  %4322 = vmatpush3.bf16.msra.mxu1 %v4542_v11 }
 0x319   : > { %4327 = vmatprep.subr.bf16.mxu0 %v6095_v36 }
 0x31b   : > { %4304 = vmatmul.mubr.bf16.vlgmr.msra.gmra.mxu0 %v3393_v34  ;;  %4324 = vmatmul.mubr.bf16.vlgmr.msra.gmra.mxu1 %v3516_v52 }
 0x31c   : > { %4328 = vmatpush3.bf16.msra.mxu0 %v4543_v29  ;;  %4343 = vmatprep.mubr.msk.bf16.mxu0 %vm4616_vm3, %v6095_v36 }
 0x31d   : > { %4329 = vmatprep.subr.bf16.mxu0 %v6095_v36 }
 0x320   : > { %4330 = vmatpush3.bf16.msra.mxu0 %v4544_v12 }
 0x321   : > { %4331 = vmatprep.subr.bf16.mxu0 %v6095_v36 }
 0x324   : > { %4332 = vmatpush3.bf16.msra.mxu0 %v4545_v62 }
 0x325   : > { %4333 = vmatprep.subr.bf16.mxu0 %v6095_v36 }
 0x328   : > { %4334 = vmatpush3.bf16.msra.mxu0 %v4546_v2 }
 0x329   : > { %4335 = vmatprep.subr.bf16.mxu0 %v6095_v36 }
 0x32c   : > { %4336 = vmatpush3.bf16.msra.mxu0 %v4547_v17 }
 0x32d   : > { %4337 = vmatprep.subr.bf16.mxu0 %v6095_v36 }
 0x330   : > { %4338 = vmatpush3.bf16.msra.mxu0 %v4548_v49 }
 0x331   : > { %4339 = vmatprep.subr.bf16.mxu0 %v6095_v36 }
 0x334   : > { %4340 = vmatpush3.bf16.msra.mxu0 %v4549_v3 }
 0x335   : > { %4341 = vmatprep.subr.bf16.mxu0 %v6095_v36 }
 0x338   : > { %4342 = vmatpush3.bf16.msra.mxu0 %v4550_v32 }
 0x33b   : > { %4344 = vmatmul.mubr.bf16.vlgmr.msra.gmra.mxu0 %v3639_v53 }
 0x39b   : > { %v3037_v9 = vpop.f32.mrf.mxu0  ;;  %v3125_v24 = vpop.f32.mrf.mxu1 }
 0x39c   : > { %v3126_v7 = vadd.f32 %v3125_v24, %v3037_v9 }
 0x39d   : > { %v4225_v45 = vpop.f32.mrf.mxu0  ;;  %v4245_v16 = vpop.f32.mrf.mxu1 }
 0x39f   : > { %v3040_v27 = vpop.f32.mrf.mxu0  ;;  %v3128_v33 = vpop.f32.mrf.mxu1 }
 0x3a1   : > { %v4226_v55 = vpop.f32.mrf.mxu0  ;;  %v4246_v35 = vpop.f32.mrf.mxu1 }
 0x3bb   : > { %v3247_v58 = vpop.f32.mrf.mxu0  ;;  %v3370_v51 = vpop.f32.mrf.mxu1 }
 0x3bc   : > { %v3253_v48 = vadd.f32 %v3247_v58, %v3126_v7 }
 0x3bd   : > { %v4265_v57 = vpop.f32.mrf.mxu0  ;;  %v4285_v1 = vpop.f32.mrf.mxu1 }
 0x3be   : > { %v3376_v43 = vadd.f32 %v3370_v51, %v3253_v48 }
 0x3bf   : > { %v3250_v41 = vpop.f32.mrf.mxu0  ;;  %v3373_v36 = vpop.f32.mrf.mxu1 }
 0x3c1   : > { %v4266_v8 = vpop.f32.mrf.mxu0  ;;  %v4286_v26 = vpop.f32.mrf.mxu1 }
 0x3db   : > { %v3493_v18 = vpop.f32.mrf.mxu0  ;;  %v3616_v42 = vpop.f32.mrf.mxu1 }
 0x3dc   : > { %v3499_v54 = vadd.f32 %v3493_v18, %v3376_v43 }
 0x3dd   : > { %v4305_v47 = vpop.f32.mrf.mxu0  ;;  %v4325_v46 = vpop.f32.mrf.mxu1 }
 0x3de   : > { %v3622_v19 = vadd.f32 %v3616_v42, %v3499_v54 }
 0x3df   : > { %v3496_v10 = vpop.f32.mrf.mxu0  ;;  %v3619_v0 = vpop.f32.mrf.mxu1 }
 0x3e1   : > { %v4306_v59 = vpop.f32.mrf.mxu0  ;;  %v4326_v14 = vpop.f32.mrf.mxu1 }
 0x3fb   : > { %v3739_v44 = vpop.f32.mrf.mxu0 }
 0x3fc   : > { %v3745_v25 = vadd.f32 %v3739_v44, %v3622_v19 }
 0x3fd   : > { %v4345_v23 = vpop.f32.mrf.mxu0 }
 0x3fe   : > { %v3753_v60 = vadd.f32 %v4139_v4, %v3745_v25 }
 0x3ff   : > { %v3742_v61 = vpop.f32.mrf.mxu0 }
 0x400   : > { %3754 = vst [vmem:[%s272_s29] sm:$0xff] %v3753_v60 }
 0x401   : > { %v4346_v11 = vpop.f32.mrf.mxu0 }
 0x402   : > { %4564 = shalt.err (!%p4561_p3)
}
 0x403   : > { %s4565_s20 = scalar_lea.hbm %s6011_s15, 128  ;;  %s4569_s22 = scalar_lea.hbm %s6059_s7, 256 }
 0x404   : > { %p4566_p4 = scmp.ne.s32.totalorder %s6011_s15, %s4565_s20  ;;  %p4570_p9 = scmp.lt.s32.totalorder %s6011_s15, %s6059_s7 }
 0x405   : > { %p4571_p10 = scmp.lt.s32.totalorder %s4569_s22, %s4565_s20 }
 0x406   : > { %p4567_p7 = pnand %p4566_p4, %p4696_p5 }
 0x407   : > { %p4572_p11 = por %p4571_p10, %p4570_p9 }
 0x408   : > { %p4568_p8 = pneg %p4567_p7 }
 0x40a   : > { %p4573_p12 = pnand %p4572_p11, %p4568_p8 }
 0x40c   : > { %4576 = shalt.err (!%p4573_p12)
}
 0x40d   : > { %4347 = dma.vmem_to_hbm [thread:$0]  (%p4696_p5), %s6013_s9, 128, %s6011_s15, %s3756_s8  }
 0x40e PF: > { %p4353_p13 = scmp.ge.s32.totalorder %s4611_s27, 2  ;;  %s3781_s13 = sand.u32 1, %s4599_s24  }
 0x40f   : > { %s3782_s14 = scalar_lea.sflag [#allocation4], %s3781_s13 }
 0x410   : > { %p4350_p0 = pnand %p4353_p13, %p4700_p6 }
 0x412   : > { %p4351_p1 = pneg %p4350_p0 }
 0x414   : > { %4594 = dma.done.wait (%p4351_p1), %s3782_s14, 128  }
 0x415   : > { %4596 = vsyncadd (%p4351_p1), %s3782_s14, 4294967168  ;;  %p17_p2 = scmp.ge.s32.totalorder %s4683_s30, 4   ;;  %s6179_s24 = smov %s4603_s25 }
 0x416   : > { %s6180_s25 = smov %s4607_s26  ;;  %s6181_s26 = smov %s4694_s10 }
 0x417   : > { %s6182_s27 = smov %s4683_s30  ;;  %19 = sbr.rel (!%p17_p2) target bundleno = 3 (0x3), region = 97 }
 0x41c   :  { %3787 = vsyncpa [#allocation4], 1 }
 0x41d   :  { %3789 = vsyncpa [#allocation4 + $0x1], 1 }

</bundles_post_ra>
